<compile_context>
chip_gen: v7x
topology: tpu7x:2x2x1
jax: 0.10.0
libtpu: 0.0.40
codegen_flags: <defaults>
</compile_context>

<pallas_src>
import functools

import jax
import jax.numpy as jnp
import numpy as np
from jax.experimental import pallas as pl
from jax.experimental.pallas import tpu as pltpu


# -----------------------------------------------------------------------------
# Fused encoder kernel: conv1 -> conv2 -> FC for a tile of B images
# -----------------------------------------------------------------------------
def _encoder_kernel(xp_ref, t1_ref, b1_ref, t2_ref, b2_ref, wfc_ref, bfc_ref,
                    out_ref, a1p_ref, *, H, W, C1, C2, B):
    f32 = jnp.float32

    # ---- conv1 + ReLU: 3 Toeplitz matmuls over the lane (x, channel) dim -----
    # xp_ref: (B, H+2, W) y-padded input; x-padding is folded into T1.
    acc1 = jnp.zeros((B * H, W * C1), f32)
    for dy in range(3):
        # Row-offset load; collapsing (B, H) leading dims (H multiple of 8) is
        # layout-trivial -- no strided compaction copy.
        tap = xp_ref[:, dy:dy + H, :].reshape(B * H, W)
        acc1 = acc1 + jnp.dot(tap, t1_ref[dy], preferred_element_type=f32)
    a1 = jnp.maximum(acc1 + b1_ref[...], 0.0)          # (B*H, W*C1), lane = w*C1+c1

    # ---- stage y-padded conv2 input; zero only the two 1-row borders ---------
    a1p_ref[:, 1:H + 1, :] = a1.reshape(B, H, W * C1)
    zrow = jnp.zeros((B, 1, W * C1), f32)
    a1p_ref[:, 0:1, :] = zrow                           # re-done every step: safe
    a1p_ref[:, H + 1:H + 2, :] = zrow                   # under megacore sharding

    # ---- conv2 + ReLU: 3 Toeplitz matmuls, K = W*C1, N = W*C2 -----------------
    acc2 = jnp.zeros((B * H, W * C2), f32)
    for dy in range(3):
        tap = a1p_ref[:, dy:dy + H, :].reshape(B * H, W * C1)
        acc2 = acc2 + jnp.dot(tap, t2_ref[dy], preferred_element_type=f32)
    a2 = jnp.maximum(acc2 + b2_ref[...], 0.0)          # (B*H, W*C2), lane = w*C2+c2

    # ---- FC: one (B, H*W*C2) @ (H*W*C2, E) MXU matmul for the whole tile ------
    flat = a2.reshape(B, H * W * C2)                   # single NHWC flatten per tile
    emb = jnp.dot(flat, wfc_ref[...], preferred_element_type=f32) + bfc_ref[...]
    out_ref[...] = emb.astype(out_ref.dtype)


# -----------------------------------------------------------------------------
# One-time parameter layout prep (hoisted out of the per-call path)
# -----------------------------------------------------------------------------
def prepare_params(pt_params, *, H, W):
    """PyTorch-layout params -> kernel-layout params (call once at init)."""
    w1 = np.asarray(pt_params["conv1_w"], np.float32)   # (C1, Cin=1, 3, 3) OIHW
    b1 = np.asarray(pt_params["conv1_b"], np.float32)   # (C1,)
    w2 = np.asarray(pt_params["conv2_w"], np.float32)   # (C2, C1, 3, 3)
    b2 = np.asarray(pt_params["conv2_b"], np.float32)   # (C2,)
    fw = np.asarray(pt_params["fc_w"], np.float32)      # (E, C2*H*W)
    fb = np.asarray(pt_params["fc_b"], np.float32)      # (E,)
    C1, Cin, kh, kw = w1.shape
    C2 = w2.shape[0]
    E = fw.shape[0]
    assert Cin == 1 and (kh, kw) == (3, 3) and w2.shape[1:] == (C1, 3, 3)
    assert fw.shape[1] == C2 * H * W

    # Per-dy Toeplitz matrices: fold dx shift + x zero-padding + channel
    # contraction of one kernel row into a single lane->lane matmul.
    t1 = np.zeros((3, W, W * C1), np.float32)
    t2 = np.zeros((3, W * C1, W * C2), np.float32)
    for dy in range(3):
        for dx in range(3):
            for wo in range(W):
                u = wo + dx - 1                          # input column (unpadded)
                if 0 <= u < W:
                    t1[dy, u, wo * C1:(wo + 1) * C1] = w1[:, 0, dy, dx]
                    t2[dy, u * C1:(u + 1) * C1, wo * C2:(wo + 1) * C2] = \
                        w2[:, :, dy, dx].T               # (ci, c2)

    # fc_w columns are PyTorch NCHW-flatten (c*H*W + h*W + w); the kernel's flat
    # activation is NHWC-flatten (h*W*C2 + w*C2 + c): permute + transpose once.
    wfc = fw.reshape(E, C2, H, W).transpose(2, 3, 1, 0).reshape(H * W * C2, E)

    return {
        "t1": jnp.asarray(t1),                               # (3, W, W*C1)
        "b1": jnp.asarray(np.tile(b1, W)[None, :]),          # (1, W*C1)
        "t2": jnp.asarray(t2),                               # (3, W*C1, W*C2)
        "b2": jnp.asarray(np.tile(b2, W)[None, :]),          # (1, W*C2)
        "wfc": jnp.asarray(wfc),                             # (H*W*C2, E)
        "bfc": jnp.asarray(fb[None, :]),                     # (1, E)
    }


# -----------------------------------------------------------------------------
# SimpleEmbedding.forward == encoder.encode(img), as one fused pallas_call
# -----------------------------------------------------------------------------
def simple_embedding_forward(img_nchw, kp, *, batch_block=8):
    """img_nchw: (N, 1, H, W) float32 -> (N, emb_dim) float32."""
    N, Cin, H, W = img_nchw.shape
    assert Cin == 1
    C1 = kp["t1"].shape[2] // W
    C2 = kp["t2"].shape[2] // W
    E = kp["bfc"].shape[1]

    # y-pad once in the wrapper (pure layout plumbing; x-padding lives in T1/T2).
    xp = jnp.pad(img_nchw[:, 0].astype(jnp.float32), ((0, 0), (1, 1), (0, 0)))

    # Batch tile per grid step (keep >=2 grid steps when N allows so v7x
    # megacore gets work on both TensorCores).  For very large N raise to 32-128.
    B = batch_block if N >= batch_block else N
    G = (N + B - 1) // B
    Npad = G * B
    if Npad != N:
        xp = jnp.pad(xp, ((0, Npad - N), (0, 0), (0, 0)))

    flops = 2 * Npad * H * W * (9 * C1 + 9 * C1 * C2 + C2 * E)
    bytes_accessed = 4 * (Npad * (H + 2) * W + int(kp["t1"].size)
                          + int(kp["t2"].size) + int(kp["wfc"].size) + Npad * E)

    kernel = functools.partial(_encoder_kernel, H=H, W=W, C1=C1, C2=C2, B=B)

    out = pl.pallas_call(
        kernel,
        out_shape=jax.ShapeDtypeStruct((Npad, E), jnp.float32),
        grid=(G,),
        in_specs=[
            pl.BlockSpec((B, H + 2, W), lambda g: (g, 0, 0)),         # image tile
            pl.BlockSpec((3, W, W * C1), lambda g: (0, 0, 0)),        # conv1 Toeplitz
            pl.BlockSpec((1, W * C1), lambda g: (0, 0)),              # conv1 bias row
            pl.BlockSpec((3, W * C1, W * C2), lambda g: (0, 0, 0)),   # conv2 Toeplitz
            pl.BlockSpec((1, W * C2), lambda g: (0, 0)),              # conv2 bias row
            pl.BlockSpec((H * W * C2, E), lambda g: (0, 0)),          # fc weight
            pl.BlockSpec((1, E), lambda g: (0, 0)),                   # fc bias
        ],
        out_specs=pl.BlockSpec((B, E), lambda g: (g, 0)),
        scratch_shapes=[
            pltpu.VMEM((B, H + 2, W * C1), jnp.float32),   # y-padded conv2 input
        ],
        compiler_params=pltpu.CompilerParams(
            dimension_semantics=("parallel",)),
        cost_estimate=pl.CostEstimate(flops=flops, transcendentals=0,
                                      bytes_accessed=bytes_accessed),
    )(xp, kp["t1"], kp["b1"], kp["t2"], kp["b2"], kp["wfc"], kp["bfc"])

    return out[:N]


# -----------------------------------------------------------------------------
# PyTorch-layout parameter init + pure-JAX reference
# -----------------------------------------------------------------------------
def init_params(key, *, cin=1, c1=8, c2=16, h=16, w=16, emb_dim=32):
    ks = jax.random.split(key, 6)
    s = 0.05
    return {
        "conv1_w": s * jax.random.normal(ks[0], (c1, cin, 3, 3), jnp.float32),
        "conv1_b": s * jax.random.normal(ks[1], (c1,), jnp.float32),
        "conv2_w": s * jax.random.normal(ks[2], (c2, c1, 3, 3), jnp.float32),
        "conv2_b": s * jax.random.normal(ks[3], (c2,), jnp.float32),
        "fc_w": s * jax.random.normal(ks[4], (emb_dim, c2 * h * w), jnp.float32),
        "fc_b": s * jax.random.normal(ks[5], (emb_dim,), jnp.float32),
    }


def ref_forward(img_nchw, p):
    hi = jax.lax.Precision.HIGHEST
    x = jax.lax.conv_general_dilated(
        img_nchw, p["conv1_w"], (1, 1), "SAME",
        dimension_numbers=("NCHW", "OIHW", "NCHW"), precision=hi)
    x = jax.nn.relu(x + p["conv1_b"][None, :, None, None])
    x = jax.lax.conv_general_dilated(
        x, p["conv2_w"], (1, 1), "SAME",
        dimension_numbers=("NCHW", "OIHW", "NCHW"), precision=hi)
    x = jax.nn.relu(x + p["conv2_b"][None, :, None, None])
    x = x.reshape(x.shape[0], -1)
    return jnp.dot(x, p["fc_w"].T, precision=hi) + p["fc_b"]


if __name__ == "__main__":
    key = jax.random.PRNGKey(0)
    k_img, k_par = jax.random.split(key)

    N, Cin, H, W = 16, 1, 16, 16          # 16 images -> 2 grid steps of B=8
    img = jax.random.normal(k_img, (N, Cin, H, W), jnp.float32)
    pt_params = init_params(k_par, cin=Cin, h=H, w=W)

    kparams = prepare_params(pt_params, H=H, W=W)   # one-time layout prep
    fwd = jax.jit(simple_embedding_forward)

    emb = jax.block_until_ready(fwd(img, kparams))
    assert emb.shape == (N, 32), emb.shape
    assert emb.dtype == jnp.float32

    ref = ref_forward(img, pt_params)
    max_err = float(jnp.max(jnp.abs(emb - ref)))
    assert jnp.allclose(emb, ref, atol=2e-3, rtol=2e-3), max_err

    print("KERNEL_OK")
</pallas_src>

<mosaic_0001>
module attributes {stable_mosaic.version = 11 : i64} {
  func.func @_encoder_kernel(%arg0: i32, %arg1: memref<8x18x16xf32, #tpu.memory_space<vmem>>, %arg2: memref<3x16x128xf32, #tpu.memory_space<vmem>>, %arg3: memref<1x128xf32, #tpu.memory_space<vmem>>, %arg4: memref<3x128x256xf32, #tpu.memory_space<vmem>>, %arg5: memref<1x256xf32, #tpu.memory_space<vmem>>, %arg6: memref<4096x32xf32, #tpu.memory_space<vmem>>, %arg7: memref<1x32xf32, #tpu.memory_space<vmem>>, %arg8: memref<8x32xf32, #tpu.memory_space<vmem>>, %arg9: memref<8x18x128xf32, #tpu.memory_space<vmem>>) attributes {dimension_semantics = [#tpu.dimension_semantics<parallel>], iteration_bounds = array<i64: 2>, scalar_prefetch = 0 : i64, scratch_operands = 1 : i64, tpu.core_type = #tpu.core_type<tc>, window_params = [{transform_indices = @transform_0, window_bounds = array<i64: 8, 18, 16>}, {pipeline_mode = #tpu.pipeline_mode<synchronous>, transform_indices = @transform_1, window_bounds = array<i64: 3, 16, 128>}, {pipeline_mode = #tpu.pipeline_mode<synchronous>, transform_indices = @transform_2, window_bounds = array<i64: 1, 128>}, {pipeline_mode = #tpu.pipeline_mode<synchronous>, transform_indices = @transform_3, window_bounds = array<i64: 3, 128, 256>}, {pipeline_mode = #tpu.pipeline_mode<synchronous>, transform_indices = @transform_4, window_bounds = array<i64: 1, 256>}, {pipeline_mode = #tpu.pipeline_mode<synchronous>, transform_indices = @transform_5, window_bounds = array<i64: 4096, 32>}, {pipeline_mode = #tpu.pipeline_mode<synchronous>, transform_indices = @transform_6, window_bounds = array<i64: 1, 32>}, {transform_indices = @transform_7, window_bounds = array<i64: 8, 32>}]} {
    %cst = arith.constant 0.000000e+00 : f32
    %0 = vector.broadcast %cst : f32 to vector<128x128xf32>
    %c0 = arith.constant 0 : index
    %c0_0 = arith.constant 0 : index
    %c0_1 = arith.constant 0 : index
    %1 = vector.load %arg1[%c0, %c0_0, %c0_1] : memref<8x18x16xf32, #tpu.memory_space<vmem>>, vector<8x16x16xf32>
    %2 = vector.shape_cast %1 : vector<8x16x16xf32> to vector<128x16xf32>
    %c0_2 = arith.constant 0 : index
    %c0_3 = arith.constant 0 : index
    %c0_4 = arith.constant 0 : index
    %3 = vector.load %arg2[%c0_2, %c0_3, %c0_4] : memref<3x16x128xf32, #tpu.memory_space<vmem>>, vector<1x16x128xf32>
    %4 = vector.shape_cast %3 : vector<1x16x128xf32> to vector<16x128xf32>
    %cst_5 = arith.constant dense<0.000000e+00> : vector<128x128xf32>
    %5 = tpu.matmul %2, %4, %cst_5 {dimension_numbers = #tpu.dot_dimension_numbers<[1], [0], [0], [1], [0, 0, 1, 1], [], []>} : vector<128x16xf32>, vector<16x128xf32>, vector<128x128xf32> -> vector<128x128xf32>
    %6 = arith.addf %0, %5 : vector<128x128xf32>
    %c0_6 = arith.constant 0 : index
    %c1 = arith.constant 1 : index
    %c0_7 = arith.constant 0 : index
    %7 = vector.load %arg1[%c0_6, %c1, %c0_7] : memref<8x18x16xf32, #tpu.memory_space<vmem>>, vector<8x16x16xf32>
    %8 = vector.shape_cast %7 : vector<8x16x16xf32> to vector<128x16xf32>
    %c1_8 = arith.constant 1 : index
    %c0_9 = arith.constant 0 : index
    %c0_10 = arith.constant 0 : index
    %9 = vector.load %arg2[%c1_8, %c0_9, %c0_10] : memref<3x16x128xf32, #tpu.memory_space<vmem>>, vector<1x16x128xf32>
    %10 = vector.shape_cast %9 : vector<1x16x128xf32> to vector<16x128xf32>
    %cst_11 = arith.constant dense<0.000000e+00> : vector<128x128xf32>
    %11 = tpu.matmul %8, %10, %cst_11 {dimension_numbers = #tpu.dot_dimension_numbers<[1], [0], [0], [1], [0, 0, 1, 1], [], []>} : vector<128x16xf32>, vector<16x128xf32>, vector<128x128xf32> -> vector<128x128xf32>
    %12 = arith.addf %6, %11 : vector<128x128xf32>
    %c0_12 = arith.constant 0 : index
    %c2 = arith.constant 2 : index
    %c0_13 = arith.constant 0 : index
    %13 = vector.load %arg1[%c0_12, %c2, %c0_13] : memref<8x18x16xf32, #tpu.memory_space<vmem>>, vector<8x16x16xf32>
    %14 = vector.shape_cast %13 : vector<8x16x16xf32> to vector<128x16xf32>
    %c2_14 = arith.constant 2 : index
    %c0_15 = arith.constant 0 : index
    %c0_16 = arith.constant 0 : index
    %15 = vector.load %arg2[%c2_14, %c0_15, %c0_16] : memref<3x16x128xf32, #tpu.memory_space<vmem>>, vector<1x16x128xf32>
    %16 = vector.shape_cast %15 : vector<1x16x128xf32> to vector<16x128xf32>
    %cst_17 = arith.constant dense<0.000000e+00> : vector<128x128xf32>
    %17 = tpu.matmul %14, %16, %cst_17 {dimension_numbers = #tpu.dot_dimension_numbers<[1], [0], [0], [1], [0, 0, 1, 1], [], []>} : vector<128x16xf32>, vector<16x128xf32>, vector<128x128xf32> -> vector<128x128xf32>
    %18 = arith.addf %12, %17 : vector<128x128xf32>
    %c0_18 = arith.constant 0 : index
    %c0_19 = arith.constant 0 : index
    %19 = vector.load %arg3[%c0_18, %c0_19] : memref<1x128xf32, #tpu.memory_space<vmem>>, vector<1x128xf32>
    %20 = vector.broadcast %19 : vector<1x128xf32> to vector<128x128xf32>
    %21 = arith.addf %18, %20 : vector<128x128xf32>
    %cst_20 = arith.constant 0.000000e+00 : f32
    %22 = vector.broadcast %cst_20 : f32 to vector<128x128xf32>
    %23 = arith.maximumf %21, %22 : vector<128x128xf32>
    %24 = vector.shape_cast %23 : vector<128x128xf32> to vector<8x16x128xf32>
    %c0_21 = arith.constant 0 : index
    %c1_22 = arith.constant 1 : index
    %c0_23 = arith.constant 0 : index
    %25 = vector.load %arg9[%c0_21, %c1_22, %c0_23] : memref<8x18x128xf32, #tpu.memory_space<vmem>>, vector<8x16x128xf32>
    tpu.vector_store %arg9[%c0_21, %c1_22, %c0_23], %24 {strides = array<i32>} : memref<8x18x128xf32, #tpu.memory_space<vmem>>, vector<8x16x128xf32>,
    %cst_24 = arith.constant 0.000000e+00 : f32
    %26 = vector.broadcast %cst_24 : f32 to vector<8x1x128xf32>
    %c0_25 = arith.constant 0 : index
    %c0_26 = arith.constant 0 : index
    %c0_27 = arith.constant 0 : index
    %27 = vector.load %arg9[%c0_25, %c0_26, %c0_27] : memref<8x18x128xf32, #tpu.memory_space<vmem>>, vector<8x1x128xf32>
    tpu.vector_store %arg9[%c0_25, %c0_26, %c0_27], %26 {strides = array<i32>} : memref<8x18x128xf32, #tpu.memory_space<vmem>>, vector<8x1x128xf32>,
    %c0_28 = arith.constant 0 : index
    %c17 = arith.constant 17 : index
    %c0_29 = arith.constant 0 : index
    %28 = vector.load %arg9[%c0_28, %c17, %c0_29] : memref<8x18x128xf32, #tpu.memory_space<vmem>>, vector<8x1x128xf32>
    tpu.vector_store %arg9[%c0_28, %c17, %c0_29], %26 {strides = array<i32>} : memref<8x18x128xf32, #tpu.memory_space<vmem>>, vector<8x1x128xf32>,
    %cst_30 = arith.constant 0.000000e+00 : f32
    %29 = vector.broadcast %cst_30 : f32 to vector<128x256xf32>
    %c0_31 = arith.constant 0 : index
    %c0_32 = arith.constant 0 : index
    %c0_33 = arith.constant 0 : index
    %30 = vector.load %arg9[%c0_31, %c0_32, %c0_33] : memref<8x18x128xf32, #tpu.memory_space<vmem>>, vector<8x16x128xf32>
    %31 = vector.shape_cast %30 : vector<8x16x128xf32> to vector<128x128xf32>
    %c0_34 = arith.constant 0 : index
    %c0_35 = arith.constant 0 : index
    %c0_36 = arith.constant 0 : index
    %32 = vector.load %arg4[%c0_34, %c0_35, %c0_36] : memref<3x128x256xf32, #tpu.memory_space<vmem>>, vector<1x128x256xf32>
    %33 = vector.shape_cast %32 : vector<1x128x256xf32> to vector<128x256xf32>
    %cst_37 = arith.constant dense<0.000000e+00> : vector<128x256xf32>
    %34 = tpu.matmul %31, %33, %cst_37 {dimension_numbers = #tpu.dot_dimension_numbers<[1], [0], [0], [1], [0, 0, 1, 1], [], []>} : vector<128x128xf32>, vector<128x256xf32>, vector<128x256xf32> -> vector<128x256xf32>
    %35 = arith.addf %29, %34 : vector<128x256xf32>
    %c0_38 = arith.constant 0 : index
    %c1_39 = arith.constant 1 : index
    %c0_40 = arith.constant 0 : index
    %36 = vector.load %arg9[%c0_38, %c1_39, %c0_40] : memref<8x18x128xf32, #tpu.memory_space<vmem>>, vector<8x16x128xf32>
    %37 = vector.shape_cast %36 : vector<8x16x128xf32> to vector<128x128xf32>
    %c1_41 = arith.constant 1 : index
    %c0_42 = arith.constant 0 : index
    %c0_43 = arith.constant 0 : index
    %38 = vector.load %arg4[%c1_41, %c0_42, %c0_43] : memref<3x128x256xf32, #tpu.memory_space<vmem>>, vector<1x128x256xf32>
    %39 = vector.shape_cast %38 : vector<1x128x256xf32> to vector<128x256xf32>
    %cst_44 = arith.constant dense<0.000000e+00> : vector<128x256xf32>
    %40 = tpu.matmul %37, %39, %cst_44 {dimension_numbers = #tpu.dot_dimension_numbers<[1], [0], [0], [1], [0, 0, 1, 1], [], []>} : vector<128x128xf32>, vector<128x256xf32>, vector<128x256xf32> -> vector<128x256xf32>
    %41 = arith.addf %35, %40 : vector<128x256xf32>
    %c0_45 = arith.constant 0 : index
    %c2_46 = arith.constant 2 : index
    %c0_47 = arith.constant 0 : index
    %42 = vector.load %arg9[%c0_45, %c2_46, %c0_47] : memref<8x18x128xf32, #tpu.memory_space<vmem>>, vector<8x16x128xf32>
    %43 = vector.shape_cast %42 : vector<8x16x128xf32> to vector<128x128xf32>
    %c2_48 = arith.constant 2 : index
    %c0_49 = arith.constant 0 : index
    %c0_50 = arith.constant 0 : index
    %44 = vector.load %arg4[%c2_48, %c0_49, %c0_50] : memref<3x128x256xf32, #tpu.memory_space<vmem>>, vector<1x128x256xf32>
    %45 = vector.shape_cast %44 : vector<1x128x256xf32> to vector<128x256xf32>
    %cst_51 = arith.constant dense<0.000000e+00> : vector<128x256xf32>
    %46 = tpu.matmul %43, %45, %cst_51 {dimension_numbers = #tpu.dot_dimension_numbers<[1], [0], [0], [1], [0, 0, 1, 1], [], []>} : vector<128x128xf32>, vector<128x256xf32>, vector<128x256xf32> -> vector<128x256xf32>
    %47 = arith.addf %41, %46 : vector<128x256xf32>
    %c0_52 = arith.constant 0 : index
    %c0_53 = arith.constant 0 : index
    %48 = vector.load %arg5[%c0_52, %c0_53] : memref<1x256xf32, #tpu.memory_space<vmem>>, vector<1x256xf32>
    %49 = vector.broadcast %48 : vector<1x256xf32> to vector<128x256xf32>
    %50 = arith.addf %47, %49 : vector<128x256xf32>
    %cst_54 = arith.constant 0.000000e+00 : f32
    %51 = vector.broadcast %cst_54 : f32 to vector<128x256xf32>
    %52 = arith.maximumf %50, %51 : vector<128x256xf32>
    %53 = vector.shape_cast %52 : vector<128x256xf32> to vector<8x4096xf32>
    %c0_55 = arith.constant 0 : index
    %c0_56 = arith.constant 0 : index
    %54 = vector.load %arg6[%c0_55, %c0_56] : memref<4096x32xf32, #tpu.memory_space<vmem>>, vector<4096x32xf32>
    %cst_57 = arith.constant dense<0.000000e+00> : vector<8x32xf32>
    %55 = tpu.matmul %53, %54, %cst_57 {dimension_numbers = #tpu.dot_dimension_numbers<[1], [0], [0], [1], [0, 0, 1, 1], [], []>} : vector<8x4096xf32>, vector<4096x32xf32>, vector<8x32xf32> -> vector<8x32xf32>
    %c0_58 = arith.constant 0 : index
    %c0_59 = arith.constant 0 : index
    %56 = vector.load %arg7[%c0_58, %c0_59] : memref<1x32xf32, #tpu.memory_space<vmem>>, vector<1x32xf32>
    %57 = vector.broadcast %56 : vector<1x32xf32> to vector<8x32xf32>
    %58 = arith.addf %55, %57 : vector<8x32xf32>
    %c0_60 = arith.constant 0 : index
    %c0_61 = arith.constant 0 : index
    %59 = vector.load %arg8[%c0_60, %c0_61] : memref<8x32xf32, #tpu.memory_space<vmem>>, vector<8x32xf32>
    tpu.vector_store %arg8[%c0_60, %c0_61], %58 {strides = array<i32>} : memref<8x32xf32, #tpu.memory_space<vmem>>, vector<8x32xf32>,
    return
  }
  func.func @transform_0(%arg0: i32) -> (i32, i32, i32) {
    %c0_i32 = arith.constant 0 : i32
    %c0_i32_0 = arith.constant 0 : i32
    %c0_i32_1 = arith.constant 0 : i32
    return %arg0, %c0_i32, %c0_i32_0 : i32, i32, i32
  }
  func.func @transform_1(%arg0: i32) -> (i32, i32, i32) {
    %c0_i32 = arith.constant 0 : i32
    %c0_i32_0 = arith.constant 0 : i32
    %c0_i32_1 = arith.constant 0 : i32
    %c0_i32_2 = arith.constant 0 : i32
    return %c0_i32, %c0_i32_0, %c0_i32_1 : i32, i32, i32
  }
  func.func @transform_2(%arg0: i32) -> (i32, i32) {
    %c0_i32 = arith.constant 0 : i32
    %c0_i32_0 = arith.constant 0 : i32
    %c0_i32_1 = arith.constant 0 : i32
    return %c0_i32, %c0_i32_0 : i32, i32
  }
  func.func @transform_3(%arg0: i32) -> (i32, i32, i32) {
    %c0_i32 = arith.constant 0 : i32
    %c0_i32_0 = arith.constant 0 : i32
    %c0_i32_1 = arith.constant 0 : i32
    %c0_i32_2 = arith.constant 0 : i32
    return %c0_i32, %c0_i32_0, %c0_i32_1 : i32, i32, i32
  }
  func.func @transform_4(%arg0: i32) -> (i32, i32) {
    %c0_i32 = arith.constant 0 : i32
    %c0_i32_0 = arith.constant 0 : i32
    %c0_i32_1 = arith.constant 0 : i32
    return %c0_i32, %c0_i32_0 : i32, i32
  }
  func.func @transform_5(%arg0: i32) -> (i32, i32) {
    %c0_i32 = arith.constant 0 : i32
    %c0_i32_0 = arith.constant 0 : i32
    %c0_i32_1 = arith.constant 0 : i32
    return %c0_i32, %c0_i32_0 : i32, i32
  }
  func.func @transform_6(%arg0: i32) -> (i32, i32) {
    %c0_i32 = arith.constant 0 : i32
    %c0_i32_0 = arith.constant 0 : i32
    %c0_i32_1 = arith.constant 0 : i32
    return %c0_i32, %c0_i32_0 : i32, i32
  }
  func.func @transform_7(%arg0: i32) -> (i32, i32) {
    %c0_i32 = arith.constant 0 : i32
    %c0_i32_0 = arith.constant 0 : i32
    return %arg0, %c0_i32 : i32, i32
  }
}

</mosaic_0001>

<bundles_post_ra>
// kernel: simple_embedding_forward.1
= control target key start
LH: loop header
LB: loop body
LE: loop exit
PB: predicated region body
PF: predicated region fallthrough
CT: control target
= control target key end

     0   :  { %12 = vsyncpa [#allocation4], 0  ;;  %s8834_s0 = inlined_call_operand.vmem [shape: f32[16,18,16], index: 0, kind: input, shape index: {}]   ;;  %s8835_s1 = inlined_call_operand.vmem [shape: f32[3,16,128], index: 1, kind: input, shape index: {}]   ;;  %s8836_s2 = inlined_call_operand.vmem [shape: f32[1,128], index: 2, kind: input, shape index: {}]   ;;  %s8837_s3 = inlined_call_operand.vmem [shape: f32[3,128,256], index: 3, kind: input, shape index: {}]   ;;  %s8838_s4 = inlined_call_operand.vmem [shape: f32[1,256], index: 4, kind: input, shape index: {}]   ;;  %s8839_s5 = inlined_call_operand.vmem [shape: f32[4096,32], index: 5, kind: input, shape index: {}]   ;;  %s8840_s6 = inlined_call_operand.vmem [shape: f32[1,32], index: 6, kind: input, shape index: {}]   ;;  %s8841_s7 = inlined_call_operand.hbm [shape: f32[16,32], index: 7, kind: output, shape index: {}]  }
   0x1   :  { %14 = vsyncpa [#allocation4 + $0x1], 0  ;;  %s6078_s24 = smov 0   ;;  %s6080_s25 = smov 0  }
   0x2   :  { %s6082_s26 = smov 0   ;;  %s6084_s27 = smov 0  }
   0x3 LB: > { %s6099_s28 = sadd.s32 4294967295, %s6032_s27   ;;  %s4384_s29 = sadd.s32 4294967294, %s6032_s27   ;;  %s6032_s27 = sphi %s6084_s27, %s8866_s27   ;;  %s6028_s26 = sphi %s6082_s26, %s8865_s26   ;;  %s6024_s25 = sphi %s6080_s25, %s8864_s25   ;;  %s6020_s24 = sphi %s6078_s24, %s8863_s24  }
   0x4   : > { %s6103_s30 = sadd.s32 1, %s6032_s27   ;;  %s179_s8 = sadd.s32 1, %s6028_s26 }
   0x5   : > { %s176_s9 = ssub.s32 %s6032_s27, %s6103_s30  ;;  %p189_p0 = scmp.ne.s32.totalorder %s6028_s26, %s6024_s25 }
   0x6   : > { %p177_p1 = scmp.eq.s32.totalorder %s176_s9, 0  ;;  %p190_p2 = scmp.eq.s32.totalorder %s6099_s28, 1 }
   0x7   : > { %p195_p3 = scmp.ne.s32.totalorder %s6024_s25, %s6020_s24  ;;  %p196_p4 = scmp.eq.s32.totalorder %s4384_s29, 1 }
   0x8   : > { %s6114_s10 = scalar_select %p177_p1, %s6028_s26, %s179_s8  }
   0x9   : > { %p6116_p5 = por %p190_p2, %p189_p0  ;;  %p6120_p6 = por %p196_p4, %p195_p3 }
   0xa   : > { %p4387_p7 = scmp.ge.s32.totalorder %s6032_s27, 1  ;;  %p242_p8 = scmp.lt.s32.totalorder %s6032_s27, 3 }
   0xc   : > { %p243_p9 = pnand %p4387_p7, %p242_p8 }
   0xd   : > { %v4391_v0 = vld [vmem:[%s8835_s1 + $0x10] sm:$0xff] (!%p243_p9)  ;;  %v4392_v1 = vld [vmem:[%s8835_s1 + $0x18] sm:$0xff] (!%p243_p9)  ;;  %s4389_s17 = sshll.u32 (!%p243_p9), %s6099_s28, 3  ;;  %v298_v2 = vld [vmem:[%s8835_s1] sm:$0xff] (!%p243_p9)  ;;  %vm319_vm0 = vcmask (!%p243_p9), 130048   ;;  %vm4309_vm1 = vcmask (!%p243_p9), 261120  }
   0xe   : > { %246 = sbr.rel (%p243_p9) target bundleno = 1247 (0x4df), region = 48  ;;  %v5211_v3 = vpack.c.bf16 (!%p243_p9), %v4392_v1, %v4391_v0  ;;  %p276_p10 = scmp.lt.s32.totalorder (!%p243_p9), %s4389_s17, 15  ;;  %v299_v4 = vld [vmem:[%s8835_s1 + $0x8] sm:$0xff] (!%p243_p9)  ;;  %v4447_v7 = vld [vmem:[%s8837_s3 + $0x118] sm:$0xff] (!%p243_p9)  ;;  %v4444_v8 = vld [vmem:[%s8837_s3 + $0x100] sm:$0xff] (!%p243_p9) }
   0xf   : > { %v5215_v5 = vpack.c.bf16 (!%p243_p9), %v299_v4, %v298_v2  ;;  %v4445_v6 = vld [vmem:[%s8837_s3 + $0x108] sm:$0xff] (!%p243_p9)  ;;  %v4446_v10 = vld [vmem:[%s8837_s3 + $0x110] sm:$0xff] (!%p243_p9)  ;;  %v4451_v12 = vld [vmem:[%s8837_s3 + $0x138] sm:$0xff] (!%p243_p9) }
  0x10   : > { %5212 = vmatprep.subr.bf16.mxu0 (!%p243_p9), %v5211_v3  ;;  %v5223_v9 = vpack.c.bf16 (!%p243_p9), %v4447_v7, %v4445_v6  ;;  %v4449_v11 = vld [vmem:[%s8837_s3 + $0x128] sm:$0xff] (!%p243_p9)  ;;  %v4425_v13 = vld [vmem:[%s8835_s1 + $0x20] sm:$0xff] (!%p243_p9)  ;;  %v5225_v14 = vpack.c.bf16 (!%p243_p9), %v4446_v10, %v4444_v8  ;;  %v4450_v17 = vld [vmem:[%s8837_s3 + $0x130] sm:$0xff] (!%p243_p9) }
  0x11   : > { %5214 = vmatpush3.bf16.msra.mxu0 (!%p243_p9), %v5211_v3  ;;  %v5227_v15 = vpack.c.bf16 (!%p243_p9), %v4451_v12, %v4449_v11  ;;  %v4448_v16 = vld [vmem:[%s8837_s3 + $0x120] sm:$0xff] (!%p243_p9)  ;;  %v4426_v18 = vld [vmem:[%s8835_s1 + $0x28] sm:$0xff] (!%p243_p9)  ;;  %v4455_v20 = vld [vmem:[%s8837_s3 + $0x158] sm:$0xff] (!%p243_p9) }
  0x12   : > { %5216 = vmatprep.subr.bf16.mxu0 (!%p243_p9), %v5215_v5  ;;  %5224 = vmatprep.subr.bf16.mxu1 (!%p243_p9), %v5223_v9  ;;  %v4453_v19 = vld [vmem:[%s8837_s3 + $0x148] sm:$0xff] (!%p243_p9)  ;;  %v5229_v21 = vpack.c.bf16 (!%p243_p9), %v4450_v17, %v4448_v16  ;;  %v4452_v22 = vld [vmem:[%s8837_s3 + $0x140] sm:$0xff] (!%p243_p9)  ;;  %v4454_v23 = vld [vmem:[%s8837_s3 + $0x150] sm:$0xff] (!%p243_p9)  ;;  %v5219_v29 = vpack.c.bf16 (!%p243_p9), %v4426_v18, %v4425_v13 }
  0x13   : > { %5226 = vmatpush1.bf16.msra.mxu1 (!%p243_p9), %v5225_v14  ;;  %v4457_v24 = vld [vmem:[%s8837_s3 + $0x168] sm:$0xff] (!%p243_p9)  ;;  %v4459_v25 = vld [vmem:[%s8837_s3 + $0x178] sm:$0xff] (!%p243_p9)  ;;  %v5231_v30 = vpack.c.bf16 (!%p243_p9), %v4455_v20, %v4453_v19  ;;  %v5233_v31 = vpack.c.bf16 (!%p243_p9), %v4454_v23, %v4452_v22  ;;  %v4456_v34 = vld [vmem:[%s8837_s3 + $0x160] sm:$0xff] (!%p243_p9) }
  0x14   : > { %5228 = vmatprep.subr.bf16.mxu1 (!%p243_p9), %v5227_v15  ;;  %v5235_v33 = vpack.c.bf16 (!%p243_p9), %v4459_v25, %v4457_v24  ;;  %v4458_v35 = vld [vmem:[%s8837_s3 + $0x170] sm:$0xff] (!%p243_p9)  ;;  %v4461_v37 = vld [vmem:[%s8837_s3 + $0x188] sm:$0xff] (!%p243_p9)  ;;  %v4463_v38 = vld [vmem:[%s8837_s3 + $0x198] sm:$0xff] (!%p243_p9) }
  0x15   : > { %s8868_s17 = smov (!%p276_p10, %s4389_s17), 15  ;;  %v5237_v39 = vpack.c.bf16 %v4458_v35, %v4456_v34  ;;  %v5239_v41 = vpack.c.bf16 %v4463_v38, %v4461_v37  ;;  %v4460_v47 = vld [vmem:[%s8837_s3 + $0x180] sm:$0xff]  ;;  %v4462_v48 = vld [vmem:[%s8837_s3 + $0x190] sm:$0xff]  ;;  %v4465_v23 = vld [vmem:[%s8837_s3 + $0x1a8] sm:$0xff] }
  0x16   : > { %s5927_s13 = smul.u32 24, %s8868_s17  ;;  %v5241_v49 = vpack.c.bf16 %v4462_v48, %v4460_v47  ;;  %v4467_v24 = vld [vmem:[%s8837_s3 + $0x1b8] sm:$0xff]  ;;  %v4473_v35 = vld [vmem:[%s8837_s3 + $0x1e8] sm:$0xff]  ;;  %v4472_v38 = vld [vmem:[%s8837_s3 + $0x1e0] sm:$0xff]  ;;  %s272_s17 = sand.u32 1, %s6024_s25  }
  0x17   : > { %5230 = vmatpush1.bf16.msra.mxu1 %v5229_v21  ;;  %v5243_v25 = vpack.c.bf16 %v4467_v24, %v4465_v23  ;;  %v1021_v47 = vld [vmem:[%s8837_s3] sm:$0xff]  ;;  %v1023_v48 = vld [vmem:[%s8837_s3 + $0x10] sm:$0xff]  ;;  %v1038_v23 = vld [vmem:[%s8837_s3 + $0x88] sm:$0xff]  ;;  %s4388_s23 = sshll.u32 %s272_s17, 3  ;;  %s4312_s18 = scalar_lea.sflag [#allocation4], %s272_s17 }
  0x18   : > { %s6181_s29 = scalar_lea.vmem %s8834_s0, %s5927_s13  ;;  %5232 = vmatprep.subr.bf16.mxu1 %v5231_v30  ;;  %v4471_v30 = vld [vmem:[%s8837_s3 + $0x1d8] sm:$0xff]  ;;  %s274_s8 = scalar_lea.vmem [#allocation3], %s4388_s23 }
  0x19   : > { %v300_v26 = vld [vmem:[%s6181_s29 + $0x1] sm:$0xff]  ;;  %v301_v27 = vld [vmem:[%s6181_s29 + $0x9] sm:$0xff]  ;;  %v302_v28 = vld [vmem:[%s6181_s29 + $0x19] sm:$0xff]  ;;  %s4325_s9 = sshll.u32 %s274_s8, 4  ;;  %s8794_s9 = int_to_ptr.vmem [resolvable:$true] %s4325_s9 }
  0x1a   : > { %5131 = vmatprep.mubr.msk.f32.mxu0 %vm319_vm0, %v300_v26  ;;  %v303_v32 = vld [vmem:[%s6181_s29 + $0x21] sm:$0xff]  ;;  %v304_v36 = vld [vmem:[%s6181_s29 + $0x31] sm:$0xff]  ;;  %v305_v40 = vld [vmem:[%s6181_s29 + $0x39] sm:$0xff]  ;;  %s5970_s13 = scalar_lea.vmem %s8794_s9, 128 }
  0x1b   : > { %5132 = vmatmul.mubr.msk.f32.vlgmr.msra.gmra.mrb[0].mxu0 %vm319_vm0, %v301_v27  ;;  %5234 = vmatpush1.bf16.msra.mxu1 %v5233_v31  ;;  %v306_v42 = vld [vmem:[%s6181_s29 + $0x49] sm:$0xff]  ;;  %v307_v43 = vld [vmem:[%s6181_s29 + $0x51] sm:$0xff]  ;;  %v308_v44 = vld [vmem:[%s6181_s29 + $0x61] sm:$0xff]  ;;  %p5971_p11 = scmp.ne.s32.totalorder %s8794_s9, %s5970_s13 }
  0x1c   : > { %5218 = vmatpush3.bf16.msra.mxu0 %v5215_v5  ;;  %5134 = vmatprep.mubr.msk.f32.mxu0 %vm319_vm0, %v302_v28  ;;  %v309_v45 = vld [vmem:[%s6181_s29 + $0x69] sm:$0xff]  ;;  %v310_v46 = vld [vmem:[%s6181_s29 + $0x79] sm:$0xff]  ;;  %v311_v50 = vld [vmem:[%s6181_s29 + $0x81] sm:$0xff] }
  0x1d   : > { %5220 = vmatprep.subr.bf16.mxu0 %v5219_v29  ;;  %5236 = vmatprep.subr.bf16.mxu1 %v5235_v33  ;;  %v312_v51 = vld [vmem:[%s6181_s29 + $0x91] sm:$0xff]  ;;  %v313_v52 = vld [vmem:[%s6181_s29 + $0x99] sm:$0xff]  ;;  %v314_v53 = vld [vmem:[%s6181_s29 + $0xa9] sm:$0xff]  ;;  %p5972_p12 = pnand %p5971_p11, %p6116_p5 }
  0x1e   : > { %v315_v54 = vld [vmem:[%s6181_s29 + $0xb1] sm:$0xff]  ;;  %v282_v55 = vld [vmem:[%s6181_s29] sm:$0xff]  ;;  %v283_v56 = vld [vmem:[%s6181_s29 + $0x8] sm:$0xff] }
  0x1f   : > { %5135 = vmatmul.mubr.msk.f32.gmra.mrb[2].mxu0 %vm319_vm0, %v303_v32  ;;  %5238 = vmatpush1.bf16.msra.mxu1 %v5237_v39  ;;  %v284_v57 = vld [vmem:[%s6181_s29 + $0x18] sm:$0xff]  ;;  %v285_v58 = vld [vmem:[%s6181_s29 + $0x20] sm:$0xff]  ;;  %v286_v59 = vld [vmem:[%s6181_s29 + $0x30] sm:$0xff]  ;;  %p5973_p13 = pneg %p5972_p12 }
  0x20   : > { %5137 = vmatprep.mubr.msk.f32.mxu0 %vm319_vm0, %v304_v36  ;;  %5240 = vmatprep.subr.bf16.mxu1 %v5239_v41  ;;  %v287_v60 = vld [vmem:[%s6181_s29 + $0x38] sm:$0xff]  ;;  %v288_v61 = vld [vmem:[%s6181_s29 + $0x48] sm:$0xff]  ;;  %v289_v62 = vld [vmem:[%s6181_s29 + $0x50] sm:$0xff]  ;;  %v6034_v41 = vmov 0.0  }
  0x21   : > { %v290_v63 = vld [vmem:[%s6181_s29 + $0x60] sm:$0xff]  ;;  %v291_v0 = vld [vmem:[%s6181_s29 + $0x68] sm:$0xff]  ;;  %v292_v1 = vld [vmem:[%s6181_s29 + $0x78] sm:$0xff]  ;;  %1166 = vmatprep.mubr.f32.mxu1 %v6034_v41  ;;  %989 = vst [vmem:[#allocation2] sm:$0x1] %v6034_v41 }
  0x22   : > { %v293_v2 = vld [vmem:[%s6181_s29 + $0x80] sm:$0xff]  ;;  %v294_v3 = vld [vmem:[%s6181_s29 + $0x90] sm:$0xff]  ;;  %v295_v4 = vld [vmem:[%s6181_s29 + $0x98] sm:$0xff]  ;;  %990 = vst [vmem:[#allocation2 + $0x18] sm:$0x1] %v6034_v41 }
  0x23   : > { %5138 = vmatmul.mubr.msk.f32.gmra.mrb[4].mxu0 %vm319_vm0, %v305_v40  ;;  %5242 = vmatpush1.bf16.msra.mxu1 %v5241_v49  ;;  %v296_v5 = vld [vmem:[%s6181_s29 + $0xa8] sm:$0xff]  ;;  %v297_v6 = vld [vmem:[%s6181_s29 + $0xb0] sm:$0xff]  ;;  %v708_v9 = vld [vmem:[%s6181_s29 + $0x1a] sm:$0xff]  ;;  %991 = vst [vmem:[#allocation2 + $0x30] sm:$0x1] %v6034_v41 }
  0x24   : > { %5140 = vmatprep.mubr.msk.f32.mxu0 %vm319_vm0, %v306_v42  ;;  %v706_v7 = vld [vmem:[%s6181_s29 + $0x2] sm:$0xff]  ;;  %v707_v8 = vld [vmem:[%s6181_s29 + $0xa] sm:$0xff]  ;;  %v710_v11 = vld [vmem:[%s6181_s29 + $0x32] sm:$0xff]  ;;  %5244 = vmatprep.subr.bf16.mxu1 %v5243_v25  ;;  %992 = vst [vmem:[#allocation2 + $0x48] sm:$0x1] %v6034_v41 }
  0x25   : > { %v709_v10 = vld [vmem:[%s6181_s29 + $0x22] sm:$0xff]  ;;  %v711_v12 = vld [vmem:[%s6181_s29 + $0x3a] sm:$0xff]  ;;  %v712_v13 = vld [vmem:[%s6181_s29 + $0x4a] sm:$0xff]  ;;  %993 = vst [vmem:[#allocation2 + $0x60] sm:$0x1] %v6034_v41 }
  0x26   : > { %v713_v14 = vld [vmem:[%s6181_s29 + $0x52] sm:$0xff]  ;;  %v714_v15 = vld [vmem:[%s6181_s29 + $0x62] sm:$0xff]  ;;  %v715_v16 = vld [vmem:[%s6181_s29 + $0x6a] sm:$0xff]  ;;  %994 = vst [vmem:[#allocation2 + $0x78] sm:$0x1] %v6034_v41 }
  0x27   : > { %5141 = vmatmul.mubr.msk.f32.gmra.mrb[6].mxu0 %vm319_vm0, %v307_v43  ;;  %v716_v17 = vld [vmem:[%s6181_s29 + $0x7a] sm:$0xff]  ;;  %v717_v18 = vld [vmem:[%s6181_s29 + $0x82] sm:$0xff]  ;;  %v718_v19 = vld [vmem:[%s6181_s29 + $0x92] sm:$0xff]  ;;  %995 = vst [vmem:[#allocation2 + $0x90] sm:$0x1] %v6034_v41 }
  0x28   : > { %5143 = vmatprep.mubr.msk.f32.mxu0 %vm319_vm0, %v308_v44  ;;  %v719_v20 = vld [vmem:[%s6181_s29 + $0x9a] sm:$0xff]  ;;  %v720_v21 = vld [vmem:[%s6181_s29 + $0xaa] sm:$0xff]  ;;  %v721_v22 = vld [vmem:[%s6181_s29 + $0xb2] sm:$0xff]  ;;  %996 = vst [vmem:[#allocation2 + $0xa8] sm:$0x1] %v6034_v41  ;;  %s4510_s29 = sshll.u32 %s6099_s28, 7 }
  0x29   : > { %v4464_v26 = vld [vmem:[%s8837_s3 + $0x1a0] sm:$0xff]  ;;  %v4466_v27 = vld [vmem:[%s8837_s3 + $0x1b0] sm:$0xff]  ;;  %v4475_v36 = vld [vmem:[%s8837_s3 + $0x1f8] sm:$0xff]  ;;  %997 = vst [vmem:[#allocation2 + $0x11] sm:$0x1] %v6034_v41  ;;  %s8792_s16 = scalar_lea.hbm %s8841_s7, %s4510_s29  ;;  %s6037_s28 = smov [#allocation3]  }
  0x2a   : > { %v5245_v28 = vpack.c.bf16 %v4466_v27, %v4464_v26  ;;  %v4468_v32 = vld [vmem:[%s8837_s3 + $0x1c0] sm:$0xff]  ;;  %v4470_v33 = vld [vmem:[%s8837_s3 + $0x1d0] sm:$0xff]  ;;  %v5251_v37 = vpack.c.bf16 %v4475_v36, %v4473_v35  ;;  %998 = vst [vmem:[#allocation2 + $0x29] sm:$0x1] %v6034_v41  ;;  %999 = vst [vmem:[#allocation2 + $0x41] sm:$0x1] %v6034_v41 }
  0x2b   : > { %5144 = vmatmul.mubr.msk.f32.gmra.mrb[8].mxu0 %vm319_vm0, %v309_v45  ;;  %v5249_v34 = vpack.c.bf16 %v4470_v33, %v4468_v32  ;;  %v4474_v39 = vld [vmem:[%s8837_s3 + $0x1f0] sm:$0xff]  ;;  %1000 = vst [vmem:[#allocation2 + $0x59] sm:$0x1] %v6034_v41  ;;  %1001 = vst [vmem:[#allocation2 + $0x71] sm:$0x1] %v6034_v41  ;;  %v1022_v42 = vld [vmem:[%s8837_s3 + $0x8] sm:$0xff] }
  0x2c   : > { %5146 = vmatprep.mubr.msk.f32.mxu0 %vm319_vm0, %v310_v46  ;;  %5246 = vmatpush1.bf16.msra.mxu1 %v5245_v28  ;;  %v5253_v40 = vpack.c.bf16 %v4474_v39, %v4472_v38  ;;  %1002 = vst [vmem:[#allocation2 + $0x89] sm:$0x1] %v6034_v41  ;;  %1003 = vst [vmem:[#allocation2 + $0xa1] sm:$0x1] %v6034_v41  ;;  %v1024_v43 = vld [vmem:[%s8837_s3 + $0x18] sm:$0xff]  ;;  %v1039_v32 = vld [vmem:[%s8837_s3 + $0x90] sm:$0xff] }
  0x2d   : > { %1004 = vst [vmem:[#allocation2 + $0xb9] sm:$0x1] %v6034_v41  ;;  %v5255_v44 = vpack.c.bf16 %v1024_v43, %v1022_v42  ;;  %v6368_v45 = vld [vmem:[%s8836_s2] ss:$0 sm:$0xff]  ;;  %v1040_v24 = vld [vmem:[%s8837_s3 + $0x98] sm:$0xff]  ;;  %v1042_v35 = vld [vmem:[%s8837_s3 + $0xa8] sm:$0xff] }
  0x2e   : > { %v1044_v36 = vld [vmem:[%s8837_s3 + $0xb8] sm:$0xff]  ;;  %s5974_s19 = sshll.u32 %s6037_s28, 4  ;;  %s5975_s19 = int_to_ptr.vmem [resolvable:$false] %s5974_s19 }
  0x2f   : > { %5147 = vmatmul.mubr.msk.f32.gmra.mrb[10].mxu0 %vm319_vm0, %v311_v50  ;;  %v5275_v43 = vpack.c.bf16 %v1044_v36, %v1042_v35  ;;  %v4488_v35 = vld [vmem:[%s8837_s3 + $0x260] sm:$0xff]  ;;  %v4490_v36 = vld [vmem:[%s8837_s3 + $0x270] sm:$0xff]  ;;  %s5976_s20 = scalar_lea.vmem %s5975_s19, 256  ;;  %p5977_p0 = scmp.lt.s32.totalorder %s8794_s9, %s5975_s19 }
  0x30   : > { %5149 = vmatprep.mubr.msk.f32.mxu0 %vm319_vm0, %v312_v51  ;;  %v1026_v51 = vld [vmem:[%s8837_s3 + $0x28] sm:$0xff]  ;;  %p5978_p1 = scmp.lt.s32.totalorder %s5976_s20, %s5970_s13 }
  0x32   : > { %p5979_p2 = por %p5978_p1, %p5977_p0 }
  0x33   : > { %5150 = vmatmul.mubr.msk.f32.gmra.mrb[12].mxu0 %vm319_vm0, %v313_v52  ;;  %v1028_v52 = vld [vmem:[%s8837_s3 + $0x38] sm:$0xff] }
  0x34   : > { %5152 = vmatprep.mubr.msk.f32.mxu0 %vm319_vm0, %v314_v53  ;;  %p5980_p3 = pnand %p5979_p2, %p5973_p13 }
  0x37   : > { %5153 = vmatmul.mubr.msk.f32.gmra.mrb[14].mxu0 %vm319_vm0, %v315_v54 }
  0x38   : > { %5159 = vmatprep.mubr.msk.f32.mxu0 %vm319_vm0, %v282_v55  ;;  %v5257_v55 = vpack.c.bf16 %v1023_v48, %v1021_v47 }
  0x3b   : > { %5160 = vmatmul.mubr.msk.f32.vlgmr.msra.gmra.mrb[0].mxu0 %vm319_vm0, %v283_v56 }
  0x3c   : > { %5222 = vmatpush3.bf16.msra.mxu0 %v5219_v29  ;;  %5162 = vmatprep.mubr.msk.f32.mxu0 %vm319_vm0, %v284_v57  ;;  %v4469_v29 = vld [vmem:[%s8837_s3 + $0x1c8] sm:$0xff] }
  0x3d   : > { %v5247_v31 = vpack.c.bf16 %v4471_v30, %v4469_v29  ;;  %v5271_v30 = vpack.c.bf16 %v1040_v24, %v1038_v23  ;;  %v4485_v24 = vld [vmem:[%s8837_s3 + $0x248] sm:$0xff] }
  0x3f   : > { %5163 = vmatmul.mubr.msk.f32.gmra.mrb[2].mxu0 %vm319_vm0, %v285_v58  ;;  %5248 = vmatprep.subr.bf16.mxu1 %v5247_v31  ;;  %v5259_v58 = vpack.c.bf16 %v1028_v52, %v1026_v51  ;;  %v1037_v31 = vld [vmem:[%s8837_s3 + $0x80] sm:$0xff] }
  0x40   : > { %5165 = vmatprep.mubr.msk.f32.mxu0 %vm319_vm0, %v286_v59  ;;  %5250 = vmatpush1.bf16.msra.mxu1 %v5249_v34  ;;  %v1025_v59 = vld [vmem:[%s8837_s3 + $0x20] sm:$0xff]  ;;  %v5273_v39 = vpack.c.bf16 %v1039_v32, %v1037_v31  ;;  %v4489_v31 = vld [vmem:[%s8837_s3 + $0x268] sm:$0xff]  ;;  %v4491_v32 = vld [vmem:[%s8837_s3 + $0x278] sm:$0xff] }
  0x41   : > { %5252 = vmatprep.subr.bf16.mxu1 %v5251_v37 }
  0x43   : > { %5166 = vmatmul.mubr.msk.f32.gmra.mrb[4].mxu0 %vm319_vm0, %v287_v60  ;;  %v1027_v60 = vld [vmem:[%s8837_s3 + $0x30] sm:$0xff] }
  0x44   : > { %5168 = vmatprep.mubr.msk.f32.mxu0 %vm319_vm0, %v288_v61  ;;  %5254 = vmatpush1.bf16.msra.mxu1 %v5253_v40 }
  0x45   : > { %5256 = vmatprep.subr.bf16.mxu1 %v5255_v44  ;;  %v1041_v44 = vld [vmem:[%s8837_s3 + $0xa0] sm:$0xff] }
  0x47   : > { %5169 = vmatmul.mubr.msk.f32.gmra.mrb[6].mxu0 %vm319_vm0, %v289_v62 }
  0x48   : > { %5171 = vmatprep.mubr.msk.f32.mxu0 %vm319_vm0, %v290_v63  ;;  %v1030_v63 = vld [vmem:[%s8837_s3 + $0x48] sm:$0xff] }
  0x4b   : > { %5172 = vmatmul.mubr.msk.f32.gmra.mrb[8].mxu0 %vm319_vm0, %v291_v0  ;;  %v1032_v0 = vld [vmem:[%s8837_s3 + $0x58] sm:$0xff] }
  0x4c   : > { %5174 = vmatprep.mubr.msk.f32.mxu0 %vm319_vm0, %v292_v1 }
  0x4f   : > { %5175 = vmatmul.mubr.msk.f32.gmra.mrb[10].mxu0 %vm319_vm0, %v293_v2 }
  0x50   : > { %5177 = vmatprep.mubr.msk.f32.mxu0 %vm319_vm0, %v294_v3  ;;  %v5261_v3 = vpack.c.bf16 %v1027_v60, %v1025_v59 }
  0x53   : > { %5178 = vmatmul.mubr.msk.f32.gmra.mrb[12].mxu0 %vm319_vm0, %v295_v4 }
  0x54   : > { %5180 = vmatprep.mubr.msk.f32.mxu0 %vm319_vm0, %v296_v5 }
  0x57   : > { %5181 = vmatmul.mubr.msk.f32.gmra.mrb[14].mxu0 %vm319_vm0, %v297_v6  ;;  %v5263_v6 = vpack.c.bf16 %v1032_v0, %v1030_v63 }
  0x58   : > { %5187 = vmatprep.mubr.msk.f32.mxu0 %vm319_vm0, %v706_v7  ;;  %v1029_v7 = vld [vmem:[%s8837_s3 + $0x40] sm:$0xff] }
  0x5b   : > { %5188 = vmatmul.mubr.msk.f32.vlgmr.msra.gmra.mrb[0].mxu0 %vm319_vm0, %v707_v8  ;;  %v1031_v8 = vld [vmem:[%s8837_s3 + $0x50] sm:$0xff] }
  0x5c   : > { %5190 = vmatprep.mubr.msk.f32.mxu0 %vm319_vm0, %v708_v9 }
  0x5f   : > { %5191 = vmatmul.mubr.msk.f32.gmra.mrb[2].mxu0 %vm319_vm0, %v709_v10 }
  0x60   : > { %5193 = vmatprep.mubr.msk.f32.mxu0 %vm319_vm0, %v710_v11  ;;  %v1034_v11 = vld [vmem:[%s8837_s3 + $0x68] sm:$0xff] }
  0x63   : > { %5194 = vmatmul.mubr.msk.f32.gmra.mrb[4].mxu0 %vm319_vm0, %v711_v12  ;;  %v1036_v12 = vld [vmem:[%s8837_s3 + $0x78] sm:$0xff] }
  0x64   : > { %5196 = vmatprep.mubr.msk.f32.mxu0 %vm319_vm0, %v712_v13 }
  0x67   : > { %5197 = vmatmul.mubr.msk.f32.gmra.mrb[6].mxu0 %vm319_vm0, %v713_v14 }
  0x68   : > { %5199 = vmatprep.mubr.msk.f32.mxu0 %vm319_vm0, %v714_v15  ;;  %v5265_v15 = vpack.c.bf16 %v1031_v8, %v1029_v7 }
  0x6b   : > { %5200 = vmatmul.mubr.msk.f32.gmra.mrb[8].mxu0 %vm319_vm0, %v715_v16 }
  0x6c   : > { %5202 = vmatprep.mubr.msk.f32.mxu0 %vm319_vm0, %v716_v17 }
  0x6f   : > { %5203 = vmatmul.mubr.msk.f32.gmra.mrb[10].mxu0 %vm319_vm0, %v717_v18  ;;  %v5267_v18 = vpack.c.bf16 %v1036_v12, %v1034_v11 }
  0x70   : > { %5205 = vmatprep.mubr.msk.f32.mxu0 %vm319_vm0, %v718_v19  ;;  %v1033_v19 = vld [vmem:[%s8837_s3 + $0x60] sm:$0xff] }
  0x73   : > { %5206 = vmatmul.mubr.msk.f32.gmra.mrb[12].mxu0 %vm319_vm0, %v719_v20  ;;  %v1035_v20 = vld [vmem:[%s8837_s3 + $0x70] sm:$0xff] }
  0x74   : > { %5208 = vmatprep.mubr.msk.f32.mxu0 %vm319_vm0, %v720_v21  ;;  %v5269_v27 = vpack.c.bf16 %v1035_v20, %v1033_v19 }
  0x77   : > { %5209 = vmatmul.mubr.msk.f32.gmra.mrb[14].mxu0 %vm319_vm0, %v721_v22 }
 0x12e   : > { %v5189_v46 = vpop.f32.mrb[0].mxu0 }
 0x12f   : > { %v942_v49 = vadd.f32 %v5189_v46, %v6368_v45  ;;  %v839_v50 = vpop.f32.mrb[1].mxu0  ;;  %v1043_v46 = vld [vmem:[%s8837_s3 + $0xb0] sm:$0xff] }
 0x130   : > { %v941_v53 = vadd.f32 %v6368_v45, %v839_v50  ;;  %v1048_v50 = vld [vmem:[%s8837_s3 + $0xd8] sm:$0xff] }
 0x131   : > { %v958_v54 = vmax.f32 %v942_v49, 0.0  ;;  %v1046_v49 = vld [vmem:[%s8837_s3 + $0xc8] sm:$0xff] }
 0x132   : > { %v957_v56 = vmax.f32 %v941_v53, 0.0  ;;  %v5192_v57 = vpop.f32.mrb[2].mxu0  ;;  %v5277_v53 = vpack.c.bf16 %v1043_v46, %v1041_v44  ;;  %v4494_v44 = vld [vmem:[%s8837_s3 + $0x290] sm:$0xff] }
 0x133   : > { %974 = vst [vmem:[#allocation2 + $0x9] sm:$0xff] %v958_v54  ;;  %v944_v61 = vadd.f32 %v5192_v57, %v6368_v45  ;;  %v849_v62 = vpop.f32.mrb[3].mxu0  ;;  %v1045_v57 = vld [vmem:[%s8837_s3 + $0xc0] sm:$0xff] }
 0x134   : > { %973 = vst [vmem:[#allocation2 + $0x1] sm:$0xff] %v957_v56  ;;  %v943_v1 = vadd.f32 %v6368_v45, %v849_v62  ;;  %1167 = vmatmul.mubr.f32.vlgmr.msra.gmra.mrb[0].mxu1 %v957_v56  ;;  %v5279_v56 = vpack.c.bf16 %v1048_v50, %v1046_v49  ;;  %v1052_v62 = vld [vmem:[%s8837_s3 + $0xf8] sm:$0xff] }
 0x135   : > { %v960_v2 = vmax.f32 %v944_v61, 0.0  ;;  %5258 = vmatpush1.bf16.msra.mxu1 %v5257_v55  ;;  %1172 = vmatprep.mubr.f32.mxu1 %v6034_v41  ;;  %v1050_v61 = vld [vmem:[%s8837_s3 + $0xe8] sm:$0xff] }
 0x136   : > { %v959_v4 = vmax.f32 %v943_v1, 0.0  ;;  %v5195_v5 = vpop.f32.mrb[4].mxu0  ;;  %5260 = vmatprep.subr.bf16.mxu1 %v5259_v58  ;;  %v1047_v58 = vld [vmem:[%s8837_s3 + $0xd0] sm:$0xff] }
 0x137   : > { %976 = vst [vmem:[#allocation2 + $0x21] sm:$0xff] %v960_v2  ;;  %v6406_v9 = vadd.f32 %v5195_v5, %v6368_v45  ;;  %v859_v10 = vpop.f32.mrb[5].mxu0  ;;  %v5281_v1 = vpack.c.bf16 %v1047_v58, %v1045_v57  ;;  %v1049_v5 = vld [vmem:[%s8837_s3 + $0xe0] sm:$0xff] }
 0x138   : > { %975 = vst [vmem:[#allocation2 + $0x19] sm:$0xff] %v959_v4  ;;  %v945_v13 = vadd.f32 %v6368_v45, %v859_v10  ;;  %1173 = vmatmul.mubr.f32.gmra.mrb[2].mxu1 %v958_v54  ;;  %v4479_v10 = vld [vmem:[%s8837_s3 + $0x218] sm:$0xff]  ;;  %v4500_v58 = vld [vmem:[%s8837_s3 + $0x2c0] sm:$0xff] }
 0x139   : > { %v962_v14 = vmax.f32 %v6406_v9, 0.0  ;;  %1178 = vmatprep.mubr.f32.mxu1 %v6034_v41  ;;  %5262 = vmatpush1.bf16.msra.mxu1 %v5261_v3  ;;  %v4477_v9 = vld [vmem:[%s8837_s3 + $0x208] sm:$0xff] }
 0x13a   : > { %v961_v16 = vmax.f32 %v945_v13, 0.0  ;;  %v5198_v17 = vpop.f32.mrb[6].mxu0  ;;  %5264 = vmatprep.subr.bf16.mxu1 %v5263_v6  ;;  %v1051_v6 = vld [vmem:[%s8837_s3 + $0xf0] sm:$0xff] }
 0x13b   : > { %978 = vst [vmem:[#allocation2 + $0x39] sm:$0xff] %v962_v14  ;;  %v6426_v21 = vadd.f32 %v5198_v17, %v6368_v45  ;;  %v869_v22 = vpop.f32.mrb[7].mxu0  ;;  %v5285_v13 = vpack.c.bf16 %v1051_v6, %v1049_v5  ;;  %v4481_v17 = vld [vmem:[%s8837_s3 + $0x228] sm:$0xff]  ;;  %v1005_v23 = vld [vmem:[#allocation2] sm:$0xff] }
 0x13c   : > { %977 = vst [vmem:[#allocation2 + $0x31] sm:$0xff] %v961_v16  ;;  %v6435_v25 = vadd.f32 %v6368_v45, %v869_v22  ;;  %1179 = vmatmul.mubr.f32.gmra.mrb[4].mxu1 %v959_v4  ;;  %v5283_v4 = vpack.c.bf16 %v1052_v62, %v1050_v61  ;;  %v4482_v22 = vld [vmem:[%s8837_s3 + $0x230] sm:$0xff]  ;;  %v4505_v61 = vld [vmem:[%s8837_s3 + $0x2e8] sm:$0xff]  ;;  %v4507_v62 = vld [vmem:[%s8837_s3 + $0x2f8] sm:$0xff] }
 0x13d   : > { %v964_v26 = vmax.f32 %v6426_v21, 0.0  ;;  %1184 = vmatprep.mubr.f32.mxu1 %v6034_v41  ;;  %5266 = vmatpush1.bf16.msra.mxu1 %v5265_v15  ;;  %v5287_v15 = vpack.c.bf16 %v4479_v10, %v4477_v9  ;;  %v4480_v21 = vld [vmem:[%s8837_s3 + $0x220] sm:$0xff] }
 0x13e   : > { %v963_v28 = vmax.f32 %v6435_v25, 0.0  ;;  %v5201_v29 = vpop.f32.mrb[8].mxu0  ;;  %5268 = vmatprep.subr.bf16.mxu1 %v5267_v18  ;;  %v4483_v18 = vld [vmem:[%s8837_s3 + $0x238] sm:$0xff] }
 0x13f   : > { %980 = vst [vmem:[#allocation2 + $0x51] sm:$0xff] %v964_v26  ;;  %v6449_v33 = vadd.f32 %v5201_v29, %v6368_v45  ;;  %v879_v34 = vpop.f32.mrb[9].mxu0  ;;  %v5291_v20 = vpack.c.bf16 %v4483_v18, %v4481_v17  ;;  %v4487_v25 = vld [vmem:[%s8837_s3 + $0x258] sm:$0xff]  ;;  %v4486_v29 = vld [vmem:[%s8837_s3 + $0x250] sm:$0xff]  ;;  %v1008_v46 = vld [vmem:[#allocation2 + $0x20] sm:$0xff] }
 0x140   : > { %979 = vst [vmem:[#allocation2 + $0x49] sm:$0xff] %v963_v28  ;;  %v6460_v37 = vadd.f32 %v6368_v45, %v879_v34  ;;  %1185 = vmatmul.mubr.f32.gmra.mrb[6].mxu1 %v960_v2  ;;  %v5299_v34 = vpack.c.bf16 %v4491_v32, %v4489_v31  ;;  %v2206_v31 = vld [vmem:[%s8839_s5 + $0x480] sm:$0xff] }
 0x141   : > { %v966_v38 = vmax.f32 %v6449_v33, 0.0  ;;  %1190 = vmatprep.mubr.f32.mxu1 %v6034_v41  ;;  %5270 = vmatpush1.bf16.msra.mxu1 %v5269_v27  ;;  %v5295_v27 = vpack.c.bf16 %v4487_v25, %v4485_v24 }
 0x142   : > { %v965_v40 = vmax.f32 %v6460_v37, 0.0  ;;  %v5204_v42 = vpop.f32.mrb[10].mxu0  ;;  %5272 = vmatprep.subr.bf16.mxu1 %v5271_v30  ;;  %v1006_v30 = vld [vmem:[#allocation2 + $0x8] sm:$0xff]  ;;  %v1007_v37 = vld [vmem:[#allocation2 + $0x18] sm:$0xff] }
 0x143   : > { %982 = vst [vmem:[#allocation2 + $0x69] sm:$0xff] %v966_v38  ;;  %v952_v47 = vadd.f32 %v5204_v42, %v6368_v45  ;;  %v889_v48 = vpop.f32.mrb[11].mxu0  ;;  %v1428_v17 = vld [vmem:[#allocation2 + $0x32] sm:$0xff]  ;;  %v1429_v18 = vld [vmem:[#allocation2 + $0x3a] sm:$0xff] }
 0x144   : > { %981 = vst [vmem:[#allocation2 + $0x61] sm:$0xff] %v965_v40  ;;  %v951_v51 = vadd.f32 %v6368_v45, %v889_v48  ;;  %1191 = vmatmul.mubr.f32.gmra.mrb[8].mxu1 %v961_v16  ;;  %v4478_v16 = vld [vmem:[%s8837_s3 + $0x210] sm:$0xff]  ;;  %v4499_v48 = vld [vmem:[%s8837_s3 + $0x2b8] sm:$0xff] }
 0x145   : > { %v968_v52 = vmax.f32 %v952_v47, 0.0  ;;  %1196 = vmatprep.mubr.f32.mxu1 %v6034_v41  ;;  %5274 = vmatpush1.bf16.msra.mxu1 %v5273_v39  ;;  %v4495_v39 = vld [vmem:[%s8837_s3 + $0x298] sm:$0xff]  ;;  %v4497_v47 = vld [vmem:[%s8837_s3 + $0x2a8] sm:$0xff] }
 0x146   : > { %v967_v54 = vmax.f32 %v951_v51, 0.0  ;;  %v5207_v55 = vpop.f32.mrb[12].mxu0  ;;  %5276 = vmatprep.subr.bf16.mxu1 %v5275_v43  ;;  %v4492_v43 = vld [vmem:[%s8837_s3 + $0x280] sm:$0xff]  ;;  %v5307_v50 = vpack.c.bf16 %v4499_v48, %v4497_v47  ;;  %v2064_v47 = vld [vmem:[%s8839_s5 + $0x10] sm:$0xff]  ;;  %v2065_v48 = vld [vmem:[%s8839_s5 + $0x18] sm:$0xff] }
 0x147   : > { %984 = vst [vmem:[#allocation2 + $0x81] sm:$0xff] %v968_v52  ;;  %v954_v59 = vadd.f32 %v5207_v55, %v6368_v45  ;;  %v899_v60 = vpop.f32.mrb[13].mxu0  ;;  %v5305_v49 = vpack.c.bf16 %v4494_v44, %v4492_v43  ;;  %v4496_v51 = vld [vmem:[%s8837_s3 + $0x2a0] sm:$0xff]  ;;  %v4503_v55 = vld [vmem:[%s8837_s3 + $0x2d8] sm:$0xff]  ;;  %v1012_v5 = vld [vmem:[#allocation2 + $0x50] sm:$0xff] }
 0x148   : > { %983 = vst [vmem:[#allocation2 + $0x79] sm:$0xff] %v967_v54  ;;  %v953_v63 = vadd.f32 %v6368_v45, %v899_v60  ;;  %1197 = vmatmul.mubr.f32.gmra.mrb[10].mxu1 %v962_v14  ;;  %v1010_v60 = vld [vmem:[#allocation2 + $0x38] sm:$0xff]  ;;  %v2208_v43 = vld [vmem:[%s8839_s5 + $0x490] sm:$0xff] }
 0x149   : > { %v970_v0 = vmax.f32 %v954_v59, 0.0  ;;  %1202 = vmatprep.mubr.f32.mxu1 %v6034_v41  ;;  %5278 = vmatpush1.bf16.msra.mxu1 %v5277_v53  ;;  %v1009_v53 = vld [vmem:[#allocation2 + $0x30] sm:$0xff] }
 0x14a   : > { %v969_v2 = vmax.f32 %v953_v63, 0.0  ;;  %v5210_v3 = vpop.f32.mrb[14].mxu0  ;;  %5280 = vmatprep.subr.bf16.mxu1 %v5279_v56  ;;  %v4502_v59 = vld [vmem:[%s8837_s3 + $0x2d0] sm:$0xff] }
 0x14b   : > { %986 = vst [vmem:[#allocation2 + $0x99] sm:$0xff] %v970_v0  ;;  %v956_v7 = vadd.f32 %v5210_v3, %v6368_v45  ;;  %v909_v8 = vpop.f32.mrb[15].mxu0  ;;  %v5313_v63 = vpack.c.bf16 %v4502_v59, %v4500_v58  ;;  %v1011_v3 = vld [vmem:[#allocation2 + $0x48] sm:$0xff]  ;;  %v1013_v6 = vld [vmem:[#allocation2 + $0x60] sm:$0xff] }
 0x14c   : > { %985 = vst [vmem:[#allocation2 + $0x91] sm:$0xff] %v969_v2  ;;  %v955_v11 = vadd.f32 %v6368_v45, %v909_v8  ;;  %1203 = vmatmul.mubr.f32.gmra.mrb[12].mxu1 %v963_v28  ;;  %v4476_v45 = vld [vmem:[%s8837_s3 + $0x200] sm:$0xff]  ;;  %v2211_v58 = vld [vmem:[%s8839_s5 + $0x4a8] sm:$0xff] }
 0x14d   : > { %v972_v12 = vmax.f32 %v956_v7, 0.0  ;;  %1208 = vmatprep.mubr.f32.mxu1 %v6034_v41  ;;  %5282 = vmatpush1.bf16.msra.mxu1 %v5281_v1  ;;  %v5289_v19 = vpack.c.bf16 %v4478_v16, %v4476_v45  ;;  %v4484_v28 = vld [vmem:[%s8837_s3 + $0x240] sm:$0xff]  ;;  %v1014_v7 = vld [vmem:[#allocation2 + $0x68] sm:$0xff] }
 0x14e   : > { %v971_v14 = vmax.f32 %v955_v11, 0.0  ;;  %5284 = vmatprep.subr.bf16.mxu1 %v5283_v4  ;;  %v5297_v33 = vpack.c.bf16 %v4486_v29, %v4484_v28  ;;  %v4504_v1 = vld [vmem:[%s8837_s3 + $0x2e0] sm:$0xff] }
 0x14f   : > { %988 = vst [vmem:[#allocation2 + $0xb1] sm:$0xff] %v972_v12  ;;  %v1015_v8 = vld [vmem:[#allocation2 + $0x78] sm:$0xff]  ;;  %v1016_v9 = vld [vmem:[#allocation2 + $0x80] sm:$0xff] }
 0x150   : > { %987 = vst [vmem:[#allocation2 + $0xa9] sm:$0xff] %v971_v14  ;;  %1209 = vmatmul.mubr.f32.gmra.mrb[14].mxu1 %v964_v26  ;;  %v5293_v26 = vpack.c.bf16 %v4482_v22, %v4480_v21  ;;  %v1426_v45 = vld [vmem:[#allocation2 + $0x1a] sm:$0xff]  ;;  %v1427_v16 = vld [vmem:[#allocation2 + $0x22] sm:$0xff]  ;;  %v1433_v22 = vld [vmem:[#allocation2 + $0x6a] sm:$0xff] }
 0x151   : > { %1214 = vmatprep.mubr.f32.mxu1 %v6034_v41  ;;  %5286 = vmatpush1.bf16.msra.mxu1 %v5285_v13  ;;  %v1432_v21 = vld [vmem:[#allocation2 + $0x62] sm:$0xff] }
 0x152   : > { %5288 = vmatprep.subr.bf16.mxu1 %v5287_v15  ;;  %v1425_v15 = vld [vmem:[#allocation2 + $0xa] sm:$0xff]  ;;  %v1435_v24 = vld [vmem:[#allocation2 + $0x82] sm:$0xff] }
 0x153   : > { %v1017_v10 = vld [vmem:[#allocation2 + $0x90] sm:$0xff]  ;;  %v1018_v11 = vld [vmem:[#allocation2 + $0x98] sm:$0xff]  ;;  %v2078_v29 = vld [vmem:[%s8839_s5 + $0x80] sm:$0xff] }
 0x154   : > { %1215 = vmatmul.mubr.f32.gmra.mrb[16].mxu1 %v965_v40  ;;  %v5301_v40 = vpack.c.bf16 %v4490_v36, %v4488_v35  ;;  %v1436_v25 = vld [vmem:[#allocation2 + $0x92] sm:$0xff]  ;;  %v2066_v59 = vld [vmem:[%s8839_s5 + $0x20] sm:$0xff] }
 0x155   : > { %1220 = vmatprep.mubr.f32.mxu1 %v6034_v41 }
 0x156   : > { %v1439_v28 = vld [vmem:[#allocation2 + $0xb2] sm:$0xff] }
 0x157   : > { %v1020_v13 = vld [vmem:[#allocation2 + $0xb0] sm:$0xff] }
 0x158   : > { %1221 = vmatmul.mubr.f32.gmra.mrb[18].mxu1 %v966_v38  ;;  %v4493_v38 = vld [vmem:[%s8837_s3 + $0x288] sm:$0xff] }
 0x159   : > { %1226 = vmatprep.mubr.f32.mxu1 %v6034_v41  ;;  %v5303_v42 = vpack.c.bf16 %v4495_v39, %v4493_v38  ;;  %v2191_v38 = vld [vmem:[%s8839_s5 + $0x408] sm:$0xff] }
 0x15c   : > { %1227 = vmatmul.mubr.f32.gmra.mrb[20].mxu1 %v967_v54  ;;  %v4501_v54 = vld [vmem:[%s8837_s3 + $0x2c8] sm:$0xff] }
 0x15d   : > { %1232 = vmatprep.mubr.f32.mxu1 %v6034_v41  ;;  %v5311_v57 = vpack.c.bf16 %v4503_v55, %v4501_v54  ;;  %v2082_v54 = vld [vmem:[%s8839_s5 + $0xa0] sm:$0xff]  ;;  %v2083_v55 = vld [vmem:[%s8839_s5 + $0xa8] sm:$0xff] }
 0x160   : > { %1233 = vmatmul.mubr.f32.gmra.mrb[22].mxu1 %v968_v52  ;;  %v4498_v52 = vld [vmem:[%s8837_s3 + $0x2b0] sm:$0xff] }
 0x161   : > { %1238 = vmatprep.mubr.f32.mxu1 %v6034_v41  ;;  %v5309_v56 = vpack.c.bf16 %v4498_v52, %v4496_v51  ;;  %v2192_v51 = vld [vmem:[%s8839_s5 + $0x410] sm:$0xff]  ;;  %v2193_v52 = vld [vmem:[%s8839_s5 + $0x418] sm:$0xff] }
 0x164   : > { %1239 = vmatmul.mubr.f32.gmra.mrb[24].mxu1 %v969_v2  ;;  %v4506_v2 = vld [vmem:[%s8837_s3 + $0x2f0] sm:$0xff] }
 0x165   : > { %1244 = vmatprep.mubr.f32.mxu1 %v6034_v41  ;;  %v5317_v4 = vpack.c.bf16 %v4506_v2, %v4504_v1  ;;  %v2084_v2 = vld [vmem:[%s8839_s5 + $0xb0] sm:$0xff] }
 0x168   : > { %1245 = vmatmul.mubr.f32.gmra.mrb[26].mxu1 %v970_v0  ;;  %v5315_v0 = vpack.c.bf16 %v4507_v62, %v4505_v61 }
 0x169   : > { %1250 = vmatprep.mubr.f32.mxu1 %v6034_v41 }
 0x16c   : > { %1251 = vmatmul.mubr.f32.gmra.mrb[28].mxu1 %v971_v14  ;;  %v1424_v14 = vld [vmem:[#allocation2 + $0x2] sm:$0xff] }
 0x16d   : > { %1256 = vmatprep.mubr.f32.mxu1 %v6034_v41 }
 0x170   : > { %1257 = vmatmul.mubr.f32.gmra.mrb[30].mxu1 %v972_v12  ;;  %v1019_v12 = vld [vmem:[#allocation2 + $0xa8] sm:$0xff] }
 0x171   : > { %1327 = vmatprep.mubr.f32.mxu1 %v6034_v41 }
 0x174   : > { %1328 = vmatmul.mubr.f32.vlgmr.msra.gmra.mrb[0].mxu1 %v1005_v23  ;;  %v1434_v23 = vld [vmem:[#allocation2 + $0x7a] sm:$0xff] }
 0x175   : > { %5290 = vmatpush1.bf16.msra.mxu1 %v5289_v19  ;;  %1333 = vmatprep.mubr.f32.mxu1 %v6034_v41  ;;  %v1430_v19 = vld [vmem:[#allocation2 + $0x4a] sm:$0xff] }
 0x176   : > { %5292 = vmatprep.subr.bf16.mxu1 %v5291_v20  ;;  %v1431_v20 = vld [vmem:[#allocation2 + $0x52] sm:$0xff] }
 0x178   : > { %1334 = vmatmul.mubr.f32.gmra.mrb[2].mxu1 %v1006_v30  ;;  %v2079_v30 = vld [vmem:[%s8839_s5 + $0x88] sm:$0xff] }
 0x179   : > { %1339 = vmatprep.mubr.f32.mxu1 %v6034_v41  ;;  %5294 = vmatpush1.bf16.msra.mxu1 %v5293_v26  ;;  %v1437_v26 = vld [vmem:[#allocation2 + $0x9a] sm:$0xff]  ;;  %v5319_v32 = vpack.c.bf16 %v2079_v30, %v2078_v29  ;;  %v2072_v30 = vld [vmem:[%s8839_s5 + $0x50] sm:$0xff] }
 0x17a   : > { %5296 = vmatprep.subr.bf16.mxu1 %v5295_v27  ;;  %v1438_v27 = vld [vmem:[#allocation2 + $0xaa] sm:$0xff]  ;;  %v2217_v29 = vld [vmem:[%s8839_s5 + $0x4d8] sm:$0xff] }
 0x17b   : > { %5320 = vmatprep.subr.bf16.mxu0 %v5319_v32 }
 0x17c   : > { %1340 = vmatmul.mubr.f32.gmra.mrb[4].mxu1 %v1007_v37  ;;  %v2190_v37 = vld [vmem:[%s8839_s5 + $0x400] sm:$0xff] }
 0x17d   : > { %1345 = vmatprep.mubr.f32.mxu1 %v6034_v41  ;;  %5298 = vmatpush1.bf16.msra.mxu1 %v5297_v33  ;;  %v2207_v33 = vld [vmem:[%s8839_s5 + $0x488] sm:$0xff]  ;;  %v5449_v39 = vpack.c.bf16 %v2191_v38, %v2190_v37  ;;  %v2218_v38 = vld [vmem:[%s8839_s5 + $0x4e0] sm:$0xff] }
 0x17e   : > { %5300 = vmatprep.subr.bf16.mxu1 %v5299_v34  ;;  %v2063_v34 = vld [vmem:[%s8839_s5 + $0x8] sm:$0xff]  ;;  %v5447_v35 = vpack.c.bf16 %v2207_v33, %v2206_v31  ;;  %v2073_v31 = vld [vmem:[%s8839_s5 + $0x58] sm:$0xff] }
 0x17f   : > { %v5341_v33 = vpack.c.bf16 %v2073_v31, %v2072_v30  ;;  %v2091_v37 = vld [vmem:[%s8839_s5 + $0xe8] sm:$0xff] }
 0x180   : > { %1346 = vmatmul.mubr.f32.gmra.mrb[6].mxu1 %v1008_v46  ;;  %v2209_v46 = vld [vmem:[%s8839_s5 + $0x498] sm:$0xff] }
 0x181   : > { %1351 = vmatprep.mubr.f32.mxu1 %v6034_v41  ;;  %5302 = vmatpush1.bf16.msra.mxu1 %v5301_v40  ;;  %v2080_v40 = vld [vmem:[%s8839_s5 + $0x90] sm:$0xff] }
 0x182   : > { %5304 = vmatprep.subr.bf16.mxu1 %v5303_v42  ;;  %v2081_v42 = vld [vmem:[%s8839_s5 + $0x98] sm:$0xff] }
 0x183   : > { %v5323_v44 = vpack.c.bf16 %v2081_v42, %v2080_v40  ;;  %v2219_v40 = vld [vmem:[%s8839_s5 + $0x4e8] sm:$0xff]  ;;  %v2074_v42 = vld [vmem:[%s8839_s5 + $0x60] sm:$0xff] }
 0x184   : > { %1352 = vmatmul.mubr.f32.gmra.mrb[8].mxu1 %v1009_v53  ;;  %v5453_v53 = vpack.c.bf16 %v2193_v52, %v2192_v51  ;;  %v2093_v51 = vld [vmem:[%s8839_s5 + $0xf8] sm:$0xff]  ;;  %v2220_v52 = vld [vmem:[%s8839_s5 + $0x4f0] sm:$0xff] }
 0x185   : > { %1357 = vmatprep.mubr.f32.mxu1 %v6034_v41  ;;  %5306 = vmatpush1.bf16.msra.mxu1 %v5305_v49  ;;  %v5451_v49 = vpack.c.bf16 %v2209_v46, %v2208_v43  ;;  %v2075_v43 = vld [vmem:[%s8839_s5 + $0x68] sm:$0xff] }
 0x186   : > { %5308 = vmatprep.subr.bf16.mxu1 %v5307_v50  ;;  %v5325_v50 = vpack.c.bf16 %v2065_v48, %v2064_v47  ;;  %v5345_v46 = vpack.c.bf16 %v2075_v43, %v2074_v42  ;;  %v2202_v47 = vld [vmem:[%s8839_s5 + $0x460] sm:$0xff]  ;;  %v2203_v48 = vld [vmem:[%s8839_s5 + $0x468] sm:$0xff] }
 0x188   : > { %1358 = vmatmul.mubr.f32.gmra.mrb[10].mxu1 %v1010_v60  ;;  %v2067_v60 = vld [vmem:[%s8839_s5 + $0x28] sm:$0xff] }
 0x189   : > { %1363 = vmatprep.mubr.f32.mxu1 %v6034_v41  ;;  %5310 = vmatpush1.bf16.msra.mxu1 %v5309_v56  ;;  %v2210_v56 = vld [vmem:[%s8839_s5 + $0x4a0] sm:$0xff]  ;;  %v5329_v62 = vpack.c.bf16 %v2067_v60, %v2066_v59  ;;  %v2204_v59 = vld [vmem:[%s8839_s5 + $0x470] sm:$0xff]  ;;  %v2205_v60 = vld [vmem:[%s8839_s5 + $0x478] sm:$0xff] }
 0x18a   : > { %5312 = vmatprep.subr.bf16.mxu1 %v5311_v57  ;;  %v5327_v57 = vpack.c.bf16 %v2083_v55, %v2082_v54  ;;  %v5455_v61 = vpack.c.bf16 %v2211_v58, %v2210_v56  ;;  %v2221_v54 = vld [vmem:[%s8839_s5 + $0x4f8] sm:$0xff]  ;;  %v2076_v55 = vld [vmem:[%s8839_s5 + $0x70] sm:$0xff] }
 0x18b   : > { %v2077_v56 = vld [vmem:[%s8839_s5 + $0x78] sm:$0xff] }
 0x18c   : > { %1364 = vmatmul.mubr.f32.gmra.mrb[12].mxu1 %v1011_v3  ;;  %v2085_v3 = vld [vmem:[%s8839_s5 + $0xb8] sm:$0xff]  ;;  %v5349_v58 = vpack.c.bf16 %v2077_v56, %v2076_v55 }
 0x18d   : > { %1369 = vmatprep.mubr.f32.mxu1 %v6034_v41  ;;  %5314 = vmatpush1.bf16.msra.mxu1 %v5313_v63  ;;  %v2194_v63 = vld [vmem:[%s8839_s5 + $0x420] sm:$0xff] }
 0x18e   : > { %5316 = vmatprep.subr.bf16.mxu1 %v5315_v0  ;;  %v2195_v0 = vld [vmem:[%s8839_s5 + $0x428] sm:$0xff] }
 0x18f   : > { %v5457_v1 = vpack.c.bf16 %v2195_v0, %v2194_v63  ;;  %v2111_v63 = vld [vmem:[%s8839_s5 + $0x188] sm:$0xff]  ;;  %v2270_v0 = vld [vmem:[%s8839_s5 + $0x680] sm:$0xff] }
 0x190   : > { %1370 = vmatmul.mubr.f32.gmra.mrb[14].mxu1 %v1012_v5  ;;  %v5331_v5 = vpack.c.bf16 %v2085_v3, %v2084_v2  ;;  %v2271_v2 = vld [vmem:[%s8839_s5 + $0x688] sm:$0xff] }
 0x191   : > { %1375 = vmatprep.mubr.f32.mxu1 %v6034_v41  ;;  %5318 = vmatpush1.bf16.msra.mxu1 %v5317_v4  ;;  %v2212_v4 = vld [vmem:[%s8839_s5 + $0x4b0] sm:$0xff]  ;;  %v5511_v3 = vpack.c.bf16 %v2271_v2, %v2270_v0 }
 0x192   : > { %5448 = vmatprep.subr.bf16.mxu1 %v5447_v35 }
 0x194   : > { %1376 = vmatmul.mubr.f32.gmra.mrb[16].mxu1 %v1013_v6  ;;  %v2213_v6 = vld [vmem:[%s8839_s5 + $0x4b8] sm:$0xff] }
 0x195   : > { %1381 = vmatprep.mubr.f32.mxu1 %v6034_v41 }
 0x198   : > { %1382 = vmatmul.mubr.f32.gmra.mrb[18].mxu1 %v1014_v7  ;;  %v2068_v7 = vld [vmem:[%s8839_s5 + $0x30] sm:$0xff] }
 0x199   : > { %1387 = vmatprep.mubr.f32.mxu1 %v6034_v41 }
 0x19c   : > { %1388 = vmatmul.mubr.f32.gmra.mrb[20].mxu1 %v1015_v8  ;;  %v2069_v8 = vld [vmem:[%s8839_s5 + $0x38] sm:$0xff] }
 0x19d   : > { %1393 = vmatprep.mubr.f32.mxu1 %v6034_v41 }
 0x1a0   : > { %1394 = vmatmul.mubr.f32.gmra.mrb[22].mxu1 %v1016_v9  ;;  %v5459_v9 = vpack.c.bf16 %v2213_v6, %v2212_v4  ;;  %v1668_v4 = vlaneseq }
 0x1a1   : > { %1399 = vmatprep.mubr.f32.mxu1 %v6034_v41 }
 0x1a4   : > { %1400 = vmatmul.mubr.f32.gmra.mrb[24].mxu1 %v1017_v10  ;;  %v5333_v10 = vpack.c.bf16 %v2069_v8, %v2068_v7  ;;  %v1666_v7 = vld [vmem:[%s8838_s4] sm:$0x3] }
 0x1a5   : > { %1405 = vmatprep.mubr.f32.mxu1 %v6034_v41 }
 0x1a8   : > { %1406 = vmatmul.mubr.f32.gmra.mrb[26].mxu1 %v1018_v11  ;;  %v2196_v11 = vld [vmem:[%s8839_s5 + $0x430] sm:$0xff] }
 0x1a9   : > { %1411 = vmatprep.mubr.f32.mxu1 %v6034_v41 }
 0x1ac   : > { %1412 = vmatmul.mubr.f32.gmra.mrb[28].mxu1 %v1019_v12  ;;  %v2197_v12 = vld [vmem:[%s8839_s5 + $0x438] sm:$0xff] }
 0x1ad   : > { %1417 = vmatprep.mubr.f32.mxu1 %v6034_v41 }
 0x1b0   : > { %1418 = vmatmul.mubr.f32.gmra.mrb[30].mxu1 %v1020_v13  ;;  %v5461_v13 = vpack.c.bf16 %v2197_v12, %v2196_v11 }
 0x1b1   : > { %1537 = vmatprep.mubr.f32.mxu1 %v6034_v41 }
 0x1b4   : > { %1538 = vmatmul.mubr.f32.vlgmr.msra.gmra.mrb[0].mxu1 %v1424_v14  ;;  %v2086_v14 = vld [vmem:[%s8839_s5 + $0xc0] sm:$0xff] }
 0x1b5   : > { %1543 = vmatprep.mubr.f32.mxu1 %v6034_v41  ;;  %5450 = vmatpush3.bf16.msra.mxu1 %v5449_v39 }
 0x1b6   : > { %5452 = vmatprep.subr.bf16.mxu1 %v5451_v49  ;;  %v5473_v49 = vpack.c.bf16 %v2203_v48, %v2202_v47 }
 0x1b8   : > { %1544 = vmatmul.mubr.f32.gmra.mrb[2].mxu1 %v1425_v15  ;;  %v2087_v15 = vld [vmem:[%s8839_s5 + $0xc8] sm:$0xff] }
 0x1b9   : > { %1549 = vmatprep.mubr.f32.mxu1 %v6034_v41  ;;  %5454 = vmatpush3.bf16.msra.mxu1 %v5453_v53 }
 0x1ba   : > { %5456 = vmatprep.subr.bf16.mxu1 %v5455_v61  ;;  %v5477_v61 = vpack.c.bf16 %v2205_v60, %v2204_v59 }
 0x1bc   : > { %1550 = vmatmul.mubr.f32.gmra.mrb[4].mxu1 %v1426_v45  ;;  %v2214_v45 = vld [vmem:[%s8839_s5 + $0x4c0] sm:$0xff] }
 0x1bd   : > { %1555 = vmatprep.mubr.f32.mxu1 %v6034_v41  ;;  %5458 = vmatpush3.bf16.msra.mxu1 %v5457_v1 }
 0x1be   : > { %5460 = vmatprep.subr.bf16.mxu1 %v5459_v9 }
 0x1c0   : > { %1556 = vmatmul.mubr.f32.gmra.mrb[6].mxu1 %v1427_v16  ;;  %v5335_v16 = vpack.c.bf16 %v2087_v15, %v2086_v14  ;;  %v6035_v14 = vmov 1935823168  }
 0x1c1   : > { %1561 = vmatprep.mubr.f32.mxu1 %v6034_v41  ;;  %5462 = vmatpush3.bf16.msra.mxu1 %v5461_v13  ;;  %v1839_v15 = vunpack.c.l.s4 %v6035_v14 }
 0x1c4   : > { %1562 = vmatmul.mubr.f32.gmra.mrb[8].mxu1 %v1428_v17  ;;  %v2215_v17 = vld [vmem:[%s8839_s5 + $0x4c8] sm:$0xff] }
 0x1c5   : > { %1567 = vmatprep.mubr.f32.mxu1 %v6034_v41 }
 0x1c8   : > { %1568 = vmatmul.mubr.f32.gmra.mrb[10].mxu1 %v1429_v18  ;;  %v2070_v18 = vld [vmem:[%s8839_s5 + $0x40] sm:$0xff] }
 0x1c9   : > { %1573 = vmatprep.mubr.f32.mxu1 %v6034_v41 }
 0x1cc   : > { %1574 = vmatmul.mubr.f32.gmra.mrb[12].mxu1 %v1430_v19  ;;  %v2071_v19 = vld [vmem:[%s8839_s5 + $0x48] sm:$0xff] }
 0x1cd   : > { %1579 = vmatprep.mubr.f32.mxu1 %v6034_v41 }
 0x1d0   : > { %1580 = vmatmul.mubr.f32.gmra.mrb[14].mxu1 %v1431_v20  ;;  %v5463_v20 = vpack.c.bf16 %v2215_v17, %v2214_v45 }
 0x1d1   : > { %1585 = vmatprep.mubr.f32.mxu1 %v6034_v41 }
 0x1d2   : > { %5464 = vmatprep.subr.bf16.mxu1 %v5463_v20 }
 0x1d4   : > { %1586 = vmatmul.mubr.f32.gmra.mrb[16].mxu1 %v1432_v21  ;;  %v5337_v21 = vpack.c.bf16 %v2071_v19, %v2070_v18  ;;  %v1840_v19 = vunpack.c.0.s8 %v1839_v15 }
 0x1d5   : > { %1591 = vmatprep.mubr.f32.mxu1 %v6034_v41 }
 0x1d8   : > { %1592 = vmatmul.mubr.f32.gmra.mrb[18].mxu1 %v1433_v22  ;;  %v2198_v22 = vld [vmem:[%s8839_s5 + $0x440] sm:$0xff] }
 0x1d9   : > { %1597 = vmatprep.mubr.f32.mxu1 %v6034_v41 }
 0x1dc   : > { %1598 = vmatmul.mubr.f32.gmra.mrb[20].mxu1 %v1434_v23  ;;  %v2199_v23 = vld [vmem:[%s8839_s5 + $0x448] sm:$0xff] }
 0x1dd   : > { %1603 = vmatprep.mubr.f32.mxu1 %v6034_v41 }
 0x1e0   : > { %1604 = vmatmul.mubr.f32.gmra.mrb[22].mxu1 %v1435_v24  ;;  %v5465_v24 = vpack.c.bf16 %v2199_v23, %v2198_v22 }
 0x1e1   : > { %1609 = vmatprep.mubr.f32.mxu1 %v6034_v41 }
 0x1e2   : > { %5466 = vmatpush3.bf16.msra.mxu1 %v5465_v24 }
 0x1e4   : > { %1610 = vmatmul.mubr.f32.gmra.mrb[24].mxu1 %v1436_v25  ;;  %v2088_v25 = vld [vmem:[%s8839_s5 + $0xd0] sm:$0xff] }
 0x1e5   : > { %1615 = vmatprep.mubr.f32.mxu1 %v6034_v41 }
 0x1e8   : > { %1616 = vmatmul.mubr.f32.gmra.mrb[26].mxu1 %v1437_v26  ;;  %v2089_v26 = vld [vmem:[%s8839_s5 + $0xd8] sm:$0xff] }
 0x1e9   : > { %1621 = vmatprep.mubr.f32.mxu1 %v6034_v41 }
 0x1ec   : > { %1622 = vmatmul.mubr.f32.gmra.mrb[28].mxu1 %v1438_v27  ;;  %v2216_v27 = vld [vmem:[%s8839_s5 + $0x4d0] sm:$0xff] }
 0x1ed   : > { %1627 = vmatprep.mubr.f32.mxu1 %v6034_v41  ;;  %v2062_v41 = vld [vmem:[%s8839_s5] sm:$0xff]  ;;  %v5467_v32 = vpack.c.bf16 %v2217_v29, %v2216_v27 }
 0x1ee   : > { %v5321_v36 = vpack.c.bf16 %v2063_v34, %v2062_v41  ;;  %v2200_v41 = vld [vmem:[%s8839_s5 + $0x450] sm:$0xff]  ;;  %v2201_v34 = vld [vmem:[%s8839_s5 + $0x458] sm:$0xff] }
 0x1ef   : > { %v5469_v35 = vpack.c.bf16 %v2201_v34, %v2200_v41  ;;  %5468 = vmatprep.subr.bf16.mxu1 %v5467_v32 }
 0x1f0   : > { %1628 = vmatmul.mubr.f32.gmra.mrb[30].mxu1 %v1439_v28  ;;  %5322 = vmatpush3.bf16.msra.mxu0 %v5321_v36  ;;  %v5339_v28 = vpack.c.bf16 %v2089_v26, %v2088_v25  ;;  %v2090_v36 = vld [vmem:[%s8839_s5 + $0xe0] sm:$0xff] }
 0x1f1   : > { %5324 = vmatprep.subr.bf16.mxu0 %v5323_v44  ;;  %5470 = vmatpush3.bf16.msra.mxu1 %v5469_v35  ;;  %v5343_v39 = vpack.c.bf16 %v2091_v37, %v2090_v36  ;;  %v5471_v44 = vpack.c.bf16 %v2219_v40, %v2218_v38  ;;  %v6036_v37 = vmov 1966171168  }
 0x1f2   : > { %v2622_v38 = vunpack.c.l.s4 %v6036_v37 }
 0x1f3   : > { %5472 = vmatprep.subr.bf16.mxu1 %v5471_v44 }
 0x1f4   : > { %5326 = vmatpush3.bf16.msra.mxu0 %v5325_v50  ;;  %v2092_v50 = vld [vmem:[%s8839_s5 + $0xf0] sm:$0xff] }
 0x1f5   : > { %5328 = vmatprep.subr.bf16.mxu0 %v5327_v57  ;;  %v5347_v53 = vpack.c.bf16 %v2093_v51, %v2092_v50  ;;  %5474 = vmatpush3.bf16.msra.mxu1 %v5473_v49  ;;  %v5475_v57 = vpack.c.bf16 %v2221_v54, %v2220_v52 }
 0x1f7   : > { %5476 = vmatprep.subr.bf16.mxu1 %v5475_v57 }
 0x1f8   : > { %5330 = vmatpush3.bf16.msra.mxu0 %v5329_v62  ;;  %v2110_v62 = vld [vmem:[%s8839_s5 + $0x180] sm:$0xff] }
 0x1f9   : > { %5332 = vmatprep.subr.bf16.mxu0 %v5331_v5  ;;  %5478 = vmatpush3.bf16.msra.mxu1 %v5477_v61  ;;  %v5351_v1 = vpack.c.bf16 %v2111_v63, %v2110_v62  ;;  %v6854_v5 = vshrl.u32 %v1668_v4, 7 }
 0x1fa   : > { %5512 = vmatprep.subr.bf16.mxu1 %v5511_v3 }
 0x1fb   : > { %v1670_v6 = vsub.s32 0, %v6854_v5  ;;  %v1674_v8 = vsub.s32 1, %v6854_v5 }
 0x1fc   : > { %5334 = vmatpush3.bf16.msra.mxu0 %v5333_v10 }
 0x1fd   : > { %5336 = vmatprep.subr.bf16.mxu0 %v5335_v16  ;;  %v6861_v9 = vrot.slane %v1666_v7, %v1670_v6  ;;  %v6863_v10 = vrot.slane %v1666_v7, %v1674_v8 }
 0x200   : > { %5338 = vmatpush3.bf16.msra.mxu0 %v5337_v21 }
 0x201   : > { %5340 = vmatprep.subr.bf16.mxu0 %v5339_v28  ;;  %v6870_v28 = vsub.s32 %v1840_v19, %v6854_v5 }
 0x204   : > { %5342 = vmatpush3.bf16.msra.mxu0 %v5341_v33 }
 0x205   : > { %5344 = vmatprep.subr.bf16.mxu0 %v5343_v39 }
 0x208   : > { %5346 = vmatpush3.bf16.msra.mxu0 %v5345_v46 }
 0x209   : > { %5348 = vmatprep.subr.bf16.mxu0 %v5347_v53  ;;  %v2623_v53 = vunpack.c.0.s8 %v2622_v38 }
 0x20b   : > { %v6890_v8 = vsub.s32 %v2623_v53, %v6854_v5 }
 0x20c   : > { %5350 = vmatpush3.bf16.msra.mxu0 %v5349_v58 }
 0x20d   : > { %5352 = vmatprep.subr.bf16.mxu0 %v5351_v1 }
 0x287   : > { %v1539_v11 = vpop.f32.mrb[0].mxu1 }
 0x288   : > { %v1678_v12 = vadd.f32 %v6861_v9, %v1539_v11  ;;  %v1541_v13 = vpop.f32.mrb[1].mxu1 }
 0x289   : > { %v1679_v45 = vadd.f32 %v6863_v10, %v1541_v13 }
 0x28a   : > { %v1710_v16 = vmax.f32 %v1678_v12, 0.0 }
 0x28b   : > { %v1711_v17 = vmax.f32 %v1679_v45, 0.0  ;;  %v1545_v18 = vpop.f32.mrb[2].mxu1 }
 0x28c   : > { %v1680_v20 = vadd.f32 %v6861_v9, %v1545_v18  ;;  %v1547_v21 = vpop.f32.mrb[3].mxu1 }
 0x28d   : > { %v1774_v22 = vcombine.low %v1710_v16, %v1711_v17  ;;  %v1775_v23 = vcombine.high %v1710_v16, %v1711_v17  ;;  %v1681_v24 = vadd.f32 %v6863_v10, %v1547_v21 }
 0x28e   : > { %v1712_v25 = vmax.f32 %v1680_v20, 0.0 }
 0x28f   : > { %v1713_v26 = vmax.f32 %v1681_v24, 0.0  ;;  %v1551_v27 = vpop.f32.mrb[4].mxu1  ;;  %v1844_v46 = vrot.slane %v1774_v22, %v6870_v28  ;;  %v1851_v48 = vrot.slane %v1775_v23, %v6870_v28 }
 0x290   : > { %v1682_v29 = vadd.f32 %v6861_v9, %v1551_v27  ;;  %v1553_v30 = vpop.f32.mrb[5].mxu1 }
 0x291   : > { %v1776_v31 = vcombine.low %v1712_v25, %v1713_v26  ;;  %v1777_v32 = vcombine.high %v1712_v25, %v1713_v26  ;;  %v1683_v33 = vadd.f32 %v6863_v10, %v1553_v30 }
 0x292   : > { %v1714_v41 = vmax.f32 %v1682_v29, 0.0 }
 0x293   : > { %v6875_v34 = vrot.slane %v1777_v32, %v6870_v28  ;;  %v1715_v35 = vmax.f32 %v1683_v33, 0.0  ;;  %v1557_v36 = vpop.f32.mrb[6].mxu1  ;;  %v1858_v63 = vrot.slane %v1776_v31, %v6870_v28 }
 0x294   : > { %v1684_v39 = vadd.f32 %v6861_v9, %v1557_v36  ;;  %v1559_v40 = vpop.f32.mrb[7].mxu1 }
 0x295   : > { %v1778_v42 = vcombine.low %v1714_v41, %v1715_v35  ;;  %v1779_v43 = vcombine.high %v1714_v41, %v1715_v35  ;;  %v1685_v44 = vadd.f32 %v6863_v10, %v1559_v40 }
 0x296   : > { %v1716_v47 = vmax.f32 %v1684_v39, 0.0 }
 0x297   : > { %v1872_v49 = vrot.slane %v1778_v42, %v6870_v28  ;;  %v1879_v50 = vrot.slane %v1779_v43, %v6870_v28  ;;  %v1717_v51 = vmax.f32 %v1685_v44, 0.0  ;;  %v1563_v52 = vpop.f32.mrb[8].mxu1 }
 0x298   : > { %v1686_v54 = vadd.f32 %v6861_v9, %v1563_v52  ;;  %v1565_v55 = vpop.f32.mrb[9].mxu1 }
 0x299   : > { %v2613_v56 = vcombine.low %v1844_v46, %v1872_v49  ;;  %v2614_v57 = vcombine.high %v1844_v46, %v1872_v49  ;;  %v2749_v58 = vcombine.low %v1851_v48, %v1879_v50  ;;  %v2750_v59 = vcombine.high %v1851_v48, %v1879_v50 }
 0x29a   : > { %v1780_v60 = vcombine.low %v1716_v47, %v1717_v51  ;;  %v1781_v61 = vcombine.high %v1716_v47, %v1717_v51  ;;  %v1687_v62 = vadd.f32 %v6863_v10, %v1565_v55  ;;  %v1718_v0 = vmax.f32 %v1686_v54, 0.0 }
 0x29b   : > { %v1569_v1 = vpop.f32.mrb[10].mxu1  ;;  %v6898_v24 = vrot.slane %v2613_v56, %v6890_v8  ;;  %v6902_v27 = vrot.slane %v2614_v57, %v6890_v8  ;;  %v6906_v33 = vrot.slane %v2749_v58, %v6890_v8  ;;  %v6909_v41 = vrot.slane %v2750_v59, %v6890_v8 }
 0x29c   : > { %v1886_v2 = vrot.slane %v1780_v60, %v6870_v28  ;;  %v1893_v3 = vrot.slane %v1781_v61, %v6870_v28  ;;  %v1719_v4 = vmax.f32 %v1687_v62, 0.0  ;;  %v1688_v6 = vadd.f32 %v6861_v9, %v1569_v1  ;;  %v1571_v7 = vpop.f32.mrb[11].mxu1 }
 0x29d   : > { %v1689_v11 = vadd.f32 %v6863_v10, %v1571_v7 }
 0x29e   : > { %v2885_v12 = vcombine.low %v1858_v63, %v1886_v2  ;;  %v2886_v13 = vcombine.high %v1858_v63, %v1886_v2  ;;  %v3021_v14 = vcombine.low %v6875_v34, %v1893_v3  ;;  %v3022_v15 = vcombine.high %v6875_v34, %v1893_v3 }
 0x29f   : > { %v1782_v45 = vcombine.low %v1718_v0, %v1719_v4  ;;  %v1783_v16 = vcombine.high %v1718_v0, %v1719_v4  ;;  %v1720_v17 = vmax.f32 %v1688_v6, 0.0  ;;  %v1721_v18 = vmax.f32 %v1689_v11, 0.0  ;;  %v1575_v19 = vpop.f32.mrb[12].mxu1 }
 0x2a0   : > { %v1577_v20 = vpop.f32.mrb[13].mxu1  ;;  %v1690_v23 = vadd.f32 %v6861_v9, %v1575_v19  ;;  %v6912_v34 = vrot.slane %v2885_v12, %v6890_v8  ;;  %v6916_v36 = vrot.slane %v2886_v13, %v6890_v8  ;;  %v6919_v40 = vrot.slane %v3021_v14, %v6890_v8 }
 0x2a1   : > { %v1784_v21 = vcombine.low %v1720_v17, %v1721_v18  ;;  %v1785_v22 = vcombine.high %v1720_v17, %v1721_v18  ;;  %v1691_v5 = vadd.f32 %v6863_v10, %v1577_v20  ;;  %v6922_v42 = vrot.slane %v3022_v15, %v6890_v8 }
 0x2a2   : > { %v1722_v29 = vmax.f32 %v1690_v23, 0.0  ;;  %v1900_v43 = vrot.slane %v1782_v45, %v6870_v28  ;;  %v1907_v47 = vrot.slane %v1783_v16, %v6870_v28 }
 0x2a3   : > { %v1921_v25 = vrot.slane %v1785_v22, %v6870_v28  ;;  %v1581_v26 = vpop.f32.mrb[14].mxu1  ;;  %v1723_v30 = vmax.f32 %v1691_v5, 0.0  ;;  %v1914_v52 = vrot.slane %v1784_v21, %v6870_v28 }
 0x2a4   : > { %v1692_v31 = vadd.f32 %v6861_v9, %v1581_v26  ;;  %v1583_v32 = vpop.f32.mrb[15].mxu1 }
 0x2a5   : > { %v1693_v35 = vadd.f32 %v6863_v10, %v1583_v32  ;;  %v1786_v37 = vcombine.low %v1722_v29, %v1723_v30  ;;  %v1787_v38 = vcombine.high %v1722_v29, %v1723_v30  ;;  %v7071_v30 = vld [vmem:[%s8839_s5 + $0x610] sm:$0xff] }
 0x2a6   : > { %v1724_v39 = vmax.f32 %v1692_v31, 0.0 }
 0x2a7   : > { %v1725_v44 = vmax.f32 %v1693_v35, 0.0  ;;  %v1587_v46 = vpop.f32.mrb[16].mxu1  ;;  %v1928_v48 = vrot.slane %v1786_v37, %v6870_v28  ;;  %v1935_v49 = vrot.slane %v1787_v38, %v6870_v28 }
 0x2a8   : > { %v1694_v50 = vadd.f32 %v6861_v9, %v1587_v46  ;;  %v1589_v51 = vpop.f32.mrb[17].mxu1  ;;  %v6989_v46 = vld [vmem:[%s8839_s5 + $0x108] sm:$0xff] }
 0x2a9   : > { %v1788_v53 = vcombine.low %v1724_v39, %v1725_v44  ;;  %v1789_v54 = vcombine.high %v1724_v39, %v1725_v44  ;;  %v1695_v55 = vadd.f32 %v6863_v10, %v1589_v51  ;;  %v2615_v56 = vcombine.low %v1900_v43, %v1928_v48  ;;  %v6984_v44 = vld [vmem:[%s8839_s5 + $0x100] sm:$0xff] }
 0x2aa   : > { %v2616_v57 = vcombine.high %v1900_v43, %v1928_v48  ;;  %v2751_v58 = vcombine.low %v1907_v47, %v1935_v49  ;;  %v2752_v59 = vcombine.high %v1907_v47, %v1935_v49  ;;  %v1726_v62 = vmax.f32 %v1694_v50, 0.0 }
 0x2ab   : > { %v1942_v60 = vrot.slane %v1788_v53, %v6870_v28  ;;  %v1949_v61 = vrot.slane %v1789_v54, %v6870_v28  ;;  %v1727_v63 = vmax.f32 %v1695_v55, 0.0  ;;  %v1593_v0 = vpop.f32.mrb[18].mxu1  ;;  %v6934_v1 = vrot.slane %v2615_v56, %v6890_v8 }
 0x2ac   : > { %v6937_v2 = vrot.slane %v2616_v57, %v6890_v8  ;;  %v6940_v3 = vrot.slane %v2751_v58, %v6890_v8  ;;  %v6943_v4 = vrot.slane %v2752_v59, %v6890_v8  ;;  %v1595_v6 = vpop.f32.mrb[19].mxu1  ;;  %v1696_v31 = vadd.f32 %v6861_v9, %v1593_v0 }
 0x2ad   : > { %v2887_v7 = vcombine.low %v1914_v52, %v1942_v60  ;;  %v2888_v11 = vcombine.high %v1914_v52, %v1942_v60  ;;  %v3023_v12 = vcombine.low %v1921_v25, %v1949_v61  ;;  %v3024_v13 = vcombine.high %v1921_v25, %v1949_v61 }
 0x2ae   : > { %v2677_v14 = vcombine.low %v6898_v24, %v6934_v1  ;;  %v2813_v45 = vcombine.low %v6906_v33, %v6940_v3  ;;  %v2815_v16 = vcombine.low %v6909_v41, %v6943_v4  ;;  %v1790_v22 = vcombine.low %v1726_v62, %v1727_v63 }
 0x2af   : > { %v6954_v17 = vrot.slane %v2887_v7, %v6890_v8  ;;  %v6957_v18 = vrot.slane %v2888_v11, %v6890_v8  ;;  %v6960_v19 = vrot.slane %v3023_v12, %v6890_v8  ;;  %v6963_v20 = vrot.slane %v3024_v13, %v6890_v8  ;;  %v1599_v21 = vpop.f32.mrb[20].mxu1  ;;  %v7013_v13 = vld [vmem:[%s8839_s5 + $0x600] sm:$0xff] }
 0x2b0   : > { %v1791_v23 = vcombine.high %v1726_v62, %v1727_v63  ;;  %v1601_v5 = vpop.f32.mrb[21].mxu1  ;;  %v1697_v32 = vadd.f32 %v6863_v10, %v1595_v6  ;;  %v1698_v35 = vadd.f32 %v6861_v9, %v1599_v21  ;;  %v2678_v39 = vcombine.high %v6898_v24, %v6934_v1  ;;  %v7018_v21 = vld [vmem:[%s8839_s5 + $0x608] sm:$0xff] }
 0x2b1   : > { %v1699_v37 = vadd.f32 %v6863_v10, %v1601_v5  ;;  %v2814_v43 = vcombine.high %v6906_v33, %v6940_v3  ;;  %v1728_v47 = vmax.f32 %v1696_v31, 0.0  ;;  %v2816_v51 = vcombine.high %v6909_v41, %v6943_v4 }
 0x2b2   : > { %v1729_v48 = vmax.f32 %v1697_v32, 0.0  ;;  %v1730_v52 = vmax.f32 %v1698_v35, 0.0  ;;  %v6998_v59 = vrot.slane %v1790_v22, %v6870_v28  ;;  %v7001_v0 = vrot.slane %v1791_v23, %v6870_v28  ;;  %v7027_v32 = vld [vmem:[%s8839_s5 + $0x190] sm:$0xff]  ;;  %v7032_v35 = vld [vmem:[%s8839_s5 + $0x198] sm:$0xff] }
 0x2b3   : > { %v1605_v38 = vpop.f32.mrb[22].mxu1  ;;  %v1731_v53 = vmax.f32 %v1699_v37, 0.0  ;;  %v7037_v37 = vld [vmem:[%s8839_s5 + $0x690] sm:$0xff]  ;;  %v7105_v15 = vrot.slane %v2677_v14, %v6890_v8  ;;  %v7122_v14 = vrot.slane %v2678_v39, %v6890_v8  ;;  %v7144_v24 = vrot.slane %v2815_v16, %v6890_v8 }
 0x2b4   : > { %v1700_v49 = vadd.f32 %v6861_v9, %v1605_v38  ;;  %v1607_v50 = vpop.f32.mrb[23].mxu1  ;;  %v1792_v55 = vcombine.low %v1728_v47, %v1729_v48  ;;  %v1793_v56 = vcombine.high %v1728_v47, %v1729_v48  ;;  %v7043_v48 = vld [vmem:[%s8839_s5 + $0x698] sm:$0xff] }
 0x2b5   : > { %v1701_v54 = vadd.f32 %v6863_v10, %v1607_v50  ;;  %v1794_v60 = vcombine.low %v1730_v52, %v1731_v53  ;;  %v1795_v61 = vcombine.high %v1730_v52, %v1731_v53  ;;  %v7053_v50 = vld [vmem:[%s8839_s5 + $0x118] sm:$0xff]  ;;  %v2680_v52 = vcombine.high %v6902_v27, %v6937_v2 }
 0x2b6   : > { %v1732_v57 = vmax.f32 %v1700_v49, 0.0  ;;  %v7004_v6 = vrot.slane %v1792_v55, %v6870_v28  ;;  %v7007_v7 = vrot.slane %v1793_v56, %v6870_v28  ;;  %v7048_v49 = vld [vmem:[%s8839_s5 + $0x110] sm:$0xff]  ;;  %v2950_v53 = vcombine.high %v6912_v34, %v6954_v17 }
 0x2b7   : > { %v1733_v62 = vmax.f32 %v1701_v54, 0.0  ;;  %v1611_v63 = vpop.f32.mrb[24].mxu1  ;;  %v1984_v22 = vrot.slane %v1794_v60, %v6870_v28  ;;  %v7022_v23 = vrot.slane %v1795_v61, %v6870_v28 }
 0x2b8   : > { %v1702_v11 = vadd.f32 %v6861_v9, %v1611_v63  ;;  %v1613_v12 = vpop.f32.mrb[25].mxu1 }
 0x2b9   : > { %v1796_v5 = vcombine.low %v1732_v57, %v1733_v62  ;;  %v1797_v31 = vcombine.high %v1732_v57, %v1733_v62  ;;  %v1703_v47 = vadd.f32 %v6863_v10, %v1613_v12  ;;  %v2617_v54 = vcombine.low %v6998_v59, %v1984_v22 }
 0x2ba   : > { %v1734_v38 = vmax.f32 %v1702_v11, 0.0  ;;  %v2618_v55 = vcombine.high %v6998_v59, %v1984_v22  ;;  %v2753_v56 = vcombine.low %v7001_v0, %v7022_v23  ;;  %v2754_v57 = vcombine.high %v7001_v0, %v7022_v23 }
 0x2bb   : > { %v1617_v60 = vpop.f32.mrb[26].mxu1  ;;  %v1998_v61 = vrot.slane %v1796_v5, %v6870_v28  ;;  %v2005_v62 = vrot.slane %v1797_v31, %v6870_v28  ;;  %v1735_v63 = vmax.f32 %v1703_v47, 0.0  ;;  %v7084_v5 = vld [vmem:[%s8839_s5 + $0x618] sm:$0xff]  ;;  %v7089_v31 = vld [vmem:[%s8839_s5 + $0x1a0] sm:$0xff]  ;;  %v7094_v47 = vld [vmem:[%s8839_s5 + $0x1a8] sm:$0xff] }
 0x2bc   : > { %v1704_v11 = vadd.f32 %v6861_v9, %v1617_v60  ;;  %v1619_v12 = vpop.f32.mrb[27].mxu1  ;;  %v7147_v33 = vrot.slane %v2618_v55, %v6890_v8  ;;  %v7154_v41 = vrot.slane %v2754_v57, %v6890_v8 }
 0x2bd   : > { %v2889_v60 = vcombine.low %v7004_v6, %v1998_v61  ;;  %v2890_v29 = vcombine.high %v7004_v6, %v1998_v61  ;;  %v3025_v23 = vcombine.low %v7007_v7, %v2005_v62  ;;  %v3026_v26 = vcombine.high %v7007_v7, %v2005_v62 }
 0x2be   : > { %v1798_v22 = vcombine.low %v1734_v38, %v1735_v63  ;;  %v1799_v0 = vcombine.high %v1734_v38, %v1735_v63  ;;  %v1736_v59 = vmax.f32 %v1704_v11, 0.0  ;;  %v1705_v58 = vadd.f32 %v6863_v10, %v1619_v12 }
 0x2bf   : > { %v1623_v25 = vpop.f32.mrb[28].mxu1  ;;  %v7111_v6 = vrot.slane %v2813_v45, %v6890_v8  ;;  %v5517_v7 = vpack.c.bf16 %v7084_v5, %v7071_v30  ;;  %v7128_v45 = vrot.slane %v2814_v43, %v6890_v8  ;;  %v7131_v11 = vrot.slane %v2617_v54, %v6890_v8  ;;  %v2260_v30 = vld [vmem:[%s8839_s5 + $0x630] sm:$0xff]  ;;  %v2118_v5 = vld [vmem:[%s8839_s5 + $0x1c0] sm:$0xff] }
 0x2c0   : > { %v1625_v61 = vpop.f32.mrb[29].mxu1  ;;  %v1737_v62 = vmax.f32 %v1705_v58, 0.0  ;;  %v1706_v63 = vadd.f32 %v6861_v9, %v1623_v25  ;;  %v7138_v25 = vrot.slane %v2816_v51, %v6890_v8  ;;  %v2791_v58 = vrot.slane %v2753_v56, %v6890_v8 }
 0x2c1   : > { %v1707_v12 = vadd.f32 %v6863_v10, %v1625_v61  ;;  %v2952_v38 = vcombine.high %v6916_v36, %v6957_v18  ;;  %v7157_v4 = vrot.slane %v2889_v60, %v6890_v8  ;;  %v2012_v57 = vrot.slane %v1798_v22, %v6870_v28 }
 0x2c2   : > { %v1800_v1 = vcombine.low %v1736_v59, %v1737_v62  ;;  %v1801_v3 = vcombine.high %v1736_v59, %v1737_v62  ;;  %v1738_v39 = vmax.f32 %v1706_v63, 0.0  ;;  %v7162_v59 = vrot.slane %v2890_v29, %v6890_v8 }
 0x2c3   : > { %v1629_v43 = vpop.f32.mrb[30].mxu1  ;;  %v1739_v54 = vmax.f32 %v1707_v12, 0.0  ;;  %v7165_v63 = vrot.slane %v3025_v23, %v6890_v8  ;;  %v7168_v12 = vrot.slane %v3026_v26, %v6890_v8  ;;  %v7178_v29 = vrot.slane %v2680_v52, %v6890_v8 }
 0x2c4   : > { %v1708_v61 = vadd.f32 %v6861_v9, %v1629_v43  ;;  %v1631_v51 = vpop.f32.mrb[31].mxu1  ;;  %v2033_v16 = vrot.slane %v1801_v3, %v6870_v28  ;;  %v2019_v43 = vrot.slane %v1799_v0, %v6870_v28  ;;  %v7184_v26 = vrot.slane %v2950_v53, %v6890_v8 }
 0x2c5   : > { %v1709_v55 = vadd.f32 %v6863_v10, %v1631_v51  ;;  %v1802_v56 = vcombine.low %v1738_v39, %v1739_v54  ;;  %v1803_v62 = vcombine.high %v1738_v39, %v1739_v54  ;;  %v8844_v0 = vcombine.low %v6902_v27, %v6937_v2 }
 0x2c6   : > { %v1740_v9 = vmax.f32 %v1708_v61, 0.0  ;;  %v2026_v52 = vrot.slane %v1800_v1, %v6870_v28  ;;  %v8845_v53 = vcombine.low %v6912_v34, %v6954_v17 }
 0x2c7   : > { %v1741_v60 = vmax.f32 %v1709_v55, 0.0  ;;  %v2040_v3 = vrot.slane %v1802_v56, %v6870_v28  ;;  %v2047_v10 = vrot.slane %v1803_v62, %v6870_v28  ;;  %v7190_v22 = vrot.slane %v8844_v0, %v6890_v8 }
 0x2c9   : > { %v1804_v23 = vcombine.low %v1740_v9, %v1741_v60  ;;  %v1805_v39 = vcombine.high %v1740_v9, %v1741_v60  ;;  %v2619_v54 = vcombine.low %v2012_v57, %v2040_v3  ;;  %v2620_v61 = vcombine.high %v2012_v57, %v2040_v3 }
 0x2ca   : > { %v2755_v51 = vcombine.low %v2019_v43, %v2047_v10  ;;  %v2756_v55 = vcombine.high %v2019_v43, %v2047_v10  ;;  %v7199_v9 = vrot.slane %v8845_v53, %v6890_v8 }
 0x2cb   : > { %v2054_v56 = vrot.slane %v1804_v23, %v6870_v28  ;;  %v2061_v62 = vrot.slane %v1805_v39, %v6870_v28  ;;  %v2669_v27 = vrot.slane %v2619_v54, %v6890_v8  ;;  %v2676_v2 = vrot.slane %v2620_v61, %v6890_v8 }
 0x2cc   : > { %v2805_v57 = vrot.slane %v2755_v51, %v6890_v8  ;;  %v2812_v60 = vrot.slane %v2756_v55, %v6890_v8 }
 0x2cd   : > { %v2891_v43 = vcombine.low %v2026_v52, %v2054_v56  ;;  %v2892_v1 = vcombine.high %v2026_v52, %v2054_v56  ;;  %v3027_v3 = vcombine.low %v2033_v16, %v2061_v62  ;;  %v3028_v10 = vcombine.high %v2033_v16, %v2061_v62 }
 0x2ce   : > { %v2681_v28 = vcombine.low %v7131_v11, %v2669_v27  ;;  %v2683_v23 = vcombine.low %v7147_v33, %v2676_v2  ;;  %v2817_v39 = vcombine.low %v2791_v58, %v2805_v57  ;;  %v2819_v34 = vcombine.low %v7154_v41, %v2812_v60 }
 0x2cf   : > { %v2941_v17 = vrot.slane %v2891_v43, %v6890_v8  ;;  %v7210_v0 = vrot.slane %v2892_v1, %v6890_v8  ;;  %v7213_v54 = vrot.slane %v3027_v3, %v6890_v8  ;;  %v7216_v61 = vrot.slane %v3028_v10, %v6890_v8 }
 0x2d0   : > { %v7219_v16 = vrot.slane %v2681_v28, %v6890_v8  ;;  %v7222_v51 = vrot.slane %v2817_v39, %v6890_v8  ;;  %v2682_v55 = vcombine.high %v7131_v11, %v2669_v27  ;;  %v2818_v52 = vcombine.high %v2791_v58, %v2805_v57 }
 0x2d1   : > { %v2953_v56 = vcombine.low %v7157_v4, %v2941_v17  ;;  %v2955_v62 = vcombine.low %v7162_v59, %v7210_v0  ;;  %v2820_v27 = vcombine.high %v7154_v41, %v2812_v60  ;;  %v7244_v10 = vrot.slane %v2819_v34, %v6890_v8 }
 0x2d2   : > { %v2733_v1 = vrot.slane %v2682_v55, %v6890_v8  ;;  %v7234_v3 = vrot.slane %v2818_v52, %v6890_v8  ;;  %v2741_v11 = vcombine.low %v7105_v15, %v7219_v16  ;;  %v2877_v58 = vcombine.low %v7111_v6, %v7222_v51 }
 0x2d3   : > { %v2742_v57 = vcombine.high %v7105_v15, %v7219_v16  ;;  %v2684_v28 = vcombine.high %v7147_v33, %v2676_v2  ;;  %v2954_v43 = vcombine.high %v7157_v4, %v2941_v17  ;;  %v7253_v53 = vrot.slane %v2820_v27, %v6890_v8  ;;  %v2275_v4 = vld [vmem:[%s8839_s5 + $0x6a8] sm:$0xff] }
 0x2d4   : > { %v2745_v39 = vcombine.low %v7122_v14, %v2733_v1  ;;  %v2881_v55 = vcombine.low %v7128_v45, %v7234_v3  ;;  %v2746_v52 = vcombine.high %v7122_v14, %v2733_v1  ;;  %v2879_v41 = vcombine.low %v7144_v24, %v7244_v10  ;;  %v2274_v14 = vld [vmem:[%s8839_s5 + $0x6a0] sm:$0xff] }
 0x2d5   : > { %v7258_v60 = vrot.slane %v2684_v28, %v6890_v8  ;;  %v7261_v33 = vrot.slane %v2683_v23, %v6890_v8  ;;  %v7270_v2 = vrot.slane %v2954_v43, %v6890_v8  ;;  %v7273_v34 = vrot.slane %v2953_v56, %v6890_v8  ;;  %v2098_v1 = vld [vmem:[%s8839_s5 + $0x120] sm:$0xff]  ;;  %v2099_v43 = vld [vmem:[%s8839_s5 + $0x128] sm:$0xff]  ;;  %v2116_v28 = vld [vmem:[%s8839_s5 + $0x1b0] sm:$0xff] }
 0x2d6   : > { %3253 = vmatprep.mubr.f32.mxu0 %v2745_v39  ;;  %3533 = vmatprep.mubr.f32.mxu1 %v2881_v55  ;;  %v2956_v23 = vcombine.high %v7162_v59, %v7210_v0  ;;  %v2883_v17 = vcombine.low %v7138_v25, %v7253_v53  ;;  %v8846_v59 = vpack.c.bf16 %v6989_v46, %v6984_v44  ;;  %v2117_v39 = vld [vmem:[%s8839_s5 + $0x1b8] sm:$0xff]  ;;  %v2276_v55 = vld [vmem:[%s8839_s5 + $0x6b0] sm:$0xff] }
 0x2d7   : > { %3254 = vmatmul.mubr.f32.vlgmr.msra.gmra.mrb[16].mxu0 %v2741_v11  ;;  %3534 = vmatmul.mubr.f32.vlgmr.msra.gmra.mrb[32].mxu1 %v2877_v58  ;;  %v2747_v56 = vcombine.low %v7178_v29, %v7258_v60  ;;  %v8847_v0 = vpack.c.bf16 %v7018_v21, %v7013_v13  ;;  %v2258_v11 = vld [vmem:[%s8839_s5 + $0x620] sm:$0xff]  ;;  %v2259_v58 = vld [vmem:[%s8839_s5 + $0x628] sm:$0xff]  ;;  %v3017_v44 = vcombine.low %v7184_v26, %v7270_v2 }
 0x2d8   : > { %5354 = vmatpush3.bf16.msra.mxu0 %v8846_v59  ;;  %3323 = vmatprep.mubr.f32.mxu0 %v2746_v52  ;;  %v5519_v21 = vpack.c.bf16 %v2275_v4, %v2274_v14  ;;  %v2277_v59 = vld [vmem:[%s8839_s5 + $0x6b8] sm:$0xff]  ;;  %v7326_v52 = vrot.slane %v2956_v23, %v6890_v8  ;;  %v8848_v14 = vpack.c.bf16 %v7032_v35, %v7027_v32 }
 0x2d9   : > { %5514 = vmatpush3.bf16.msra.mxu1 %v8847_v0  ;;  %3673 = vmatprep.mubr.f32.mxu1 %v2883_v17  ;;  %v7323_v0 = vrot.slane %v2952_v38, %v6890_v8  ;;  %v8849_v4 = vpack.c.bf16 %v7043_v48, %v7037_v37  ;;  %v5361_v17 = vpack.c.bf16 %v2099_v43, %v2098_v1  ;;  %v2100_v1 = vld [vmem:[%s8839_s5 + $0x130] sm:$0xff]  ;;  %v2278_v43 = vld [vmem:[%s8839_s5 + $0x6c0] sm:$0xff] }
 0x2da   : > { %5356 = vmatprep.subr.bf16.mxu0 %v8848_v14  ;;  %v2744_v13 = vcombine.high %v7190_v22, %v7261_v33  ;;  %v5521_v46 = vpack.c.bf16 %v2259_v58, %v2258_v11  ;;  %v8850_v23 = vcombine.low %v6916_v36, %v6957_v18  ;;  %v7345_v32 = vrot.slane %v2955_v62, %v6890_v8  ;;  %v2101_v36 = vld [vmem:[%s8839_s5 + $0x138] sm:$0xff]  ;;  %v2119_v62 = vld [vmem:[%s8839_s5 + $0x1c8] sm:$0xff] }
 0x2db   : > { %5516 = vmatprep.subr.bf16.mxu1 %v8849_v4  ;;  %v3019_v38 = vcombine.low %v7323_v0, %v7326_v52  ;;  %v8851_v35 = vpack.c.bf16 %v7053_v50, %v7048_v49  ;;  %v5363_v37 = vpack.c.bf16 %v2117_v39, %v2116_v28  ;;  %v5523_v48 = vpack.c.bf16 %v2277_v59, %v2276_v55  ;;  %v2261_v50 = vld [vmem:[%s8839_s5 + $0x638] sm:$0xff]  ;;  %v2279_v11 = vld [vmem:[%s8839_s5 + $0x6c8] sm:$0xff]  ;;  %v2102_v55 = vld [vmem:[%s8839_s5 + $0x140] sm:$0xff] }
 0x2dc   : > { %v7342_v27 = vrot.slane %v8850_v23, %v6890_v8  ;;  %v2882_v18 = vcombine.high %v7128_v45, %v7234_v3  ;;  %v8852_v49 = vpack.c.bf16 %v7094_v47, %v7089_v31  ;;  %v3086_v31 = vcombine.high %v6919_v40, %v6960_v19  ;;  %v2103_v59 = vld [vmem:[%s8839_s5 + $0x148] sm:$0xff]  ;;  %v2262_v23 = vld [vmem:[%s8839_s5 + $0x640] sm:$0xff] }
 0x2dd   : > { %5358 = vmatpush3.bf16.msra.mxu0 %v8851_v35  ;;  %5518 = vmatpush3.bf16.msra.mxu1 %v5517_v7  ;;  %v3090_v47 = vcombine.high %v7165_v63, %v7213_v54  ;;  %v5525_v39 = vpack.c.bf16 %v2261_v50, %v2260_v30  ;;  %v5367_v14 = vpack.c.bf16 %v2119_v62, %v2118_v5  ;;  %v2264_v5 = vld [vmem:[%s8839_s5 + $0x650] sm:$0xff]  ;;  %v2451_v3 = vld [vmem:[%s8839_s5 + $0xc28] sm:$0xff] }
 0x2de   : > { %5360 = vmatprep.subr.bf16.mxu0 %v8852_v49  ;;  %5520 = vmatprep.subr.bf16.mxu1 %v5519_v21  ;;  %v3015_v7 = vcombine.low %v7342_v27, %v7345_v32  ;;  %v7389_v58 = vrot.slane %v3086_v31, %v6890_v8  ;;  %v5365_v21 = vpack.c.bf16 %v2101_v36, %v2100_v1  ;;  %v2281_v1 = vld [vmem:[%s8839_s5 + $0x6d8] sm:$0xff]  ;;  %v2104_v36 = vld [vmem:[%s8839_s5 + $0x150] sm:$0xff] }
 0x2df   : > { %v7392_v28 = vrot.slane %v3090_v47, %v6890_v8  ;;  %v5527_v4 = vpack.c.bf16 %v2279_v11, %v2278_v43  ;;  %v2105_v49 = vld [vmem:[%s8839_s5 + $0x158] sm:$0xff]  ;;  %v5369_v30 = vpack.c.bf16 %v2103_v59, %v2102_v55  ;;  %v2122_v47 = vld [vmem:[%s8839_s5 + $0x1e0] sm:$0xff]  ;;  %v2123_v11 = vld [vmem:[%s8839_s5 + $0x1e8] sm:$0xff]  ;;  %v2878_v55 = vcombine.high %v7111_v6, %v7222_v51 }
 0x2e0   : > { %v2265_v31 = vld [vmem:[%s8839_s5 + $0x658] sm:$0xff]  ;;  %v5373_v59 = vpack.c.bf16 %v2105_v49, %v2104_v36  ;;  %v2124_v36 = vld [vmem:[%s8839_s5 + $0x1f0] sm:$0xff] }
 0x2e1   : > { %5362 = vmatpush3.bf16.msra.mxu0 %v5361_v17  ;;  %5522 = vmatpush3.bf16.msra.mxu1 %v5521_v46  ;;  %v2263_v46 = vld [vmem:[%s8839_s5 + $0x648] sm:$0xff]  ;;  %v2120_v17 = vld [vmem:[%s8839_s5 + $0x1d0] sm:$0xff]  ;;  %v3153_v35 = vcombine.low %v7389_v58, %v7392_v28 }
 0x2e2   : > { %5364 = vmatprep.subr.bf16.mxu0 %v5363_v37  ;;  %5524 = vmatprep.subr.bf16.mxu1 %v5523_v48  ;;  %v2121_v37 = vld [vmem:[%s8839_s5 + $0x1d8] sm:$0xff]  ;;  %v2280_v48 = vld [vmem:[%s8839_s5 + $0x6d0] sm:$0xff]  ;;  %v5529_v50 = vpack.c.bf16 %v2263_v46, %v2262_v23  ;;  %v8854_v46 = vcombine.low %v7165_v63, %v7213_v54  ;;  %v2266_v63 = vld [vmem:[%s8839_s5 + $0x660] sm:$0xff] }
 0x2e3   : > { %v5371_v62 = vpack.c.bf16 %v2121_v37, %v2120_v17  ;;  %v5531_v43 = vpack.c.bf16 %v2281_v1, %v2280_v48  ;;  %v5375_v37 = vpack.c.bf16 %v2123_v11, %v2122_v47  ;;  %v2106_v1 = vld [vmem:[%s8839_s5 + $0x160] sm:$0xff]  ;;  %v2267_v54 = vld [vmem:[%s8839_s5 + $0x668] sm:$0xff]  ;;  %v2285_v47 = vld [vmem:[%s8839_s5 + $0x6f8] sm:$0xff] }
 0x2e4   : > { %v7456_v17 = vrot.slane %v8854_v46, %v6890_v8 }
 0x2e5   : > { %5366 = vmatpush3.bf16.msra.mxu0 %v5365_v21  ;;  %5526 = vmatpush3.bf16.msra.mxu1 %v5525_v39  ;;  %v2282_v21 = vld [vmem:[%s8839_s5 + $0x6e0] sm:$0xff]  ;;  %v2283_v39 = vld [vmem:[%s8839_s5 + $0x6e8] sm:$0xff] }
 0x2e6   : > { %5368 = vmatprep.subr.bf16.mxu0 %v5367_v14  ;;  %5528 = vmatprep.subr.bf16.mxu1 %v5527_v4  ;;  %v5533_v14 = vpack.c.bf16 %v2265_v31, %v2264_v5  ;;  %v8853_v4 = vcombine.low %v6919_v40, %v6960_v19  ;;  %v5535_v48 = vpack.c.bf16 %v2283_v39, %v2282_v21  ;;  %v2107_v40 = vld [vmem:[%s8839_s5 + $0x168] sm:$0xff]  ;;  %v2125_v5 = vld [vmem:[%s8839_s5 + $0x1f8] sm:$0xff]  ;;  %v2284_v31 = vld [vmem:[%s8839_s5 + $0x6f0] sm:$0xff] }
 0x2e7   : > { %v2884_v19 = vcombine.high %v7138_v25, %v7253_v53  ;;  %v5377_v11 = vpack.c.bf16 %v2107_v40, %v2106_v1  ;;  %v5537_v21 = vpack.c.bf16 %v2267_v54, %v2266_v63  ;;  %v2108_v39 = vld [vmem:[%s8839_s5 + $0x170] sm:$0xff]  ;;  %v5379_v46 = vpack.c.bf16 %v2125_v5, %v2124_v36  ;;  %v2335_v40 = vld [vmem:[%s8839_s5 + $0x888] sm:$0xff]  ;;  %v2126_v36 = vld [vmem:[%s8839_s5 + $0x200] sm:$0xff] }
 0x2e8   : > { %v7450_v23 = vrot.slane %v8853_v4, %v6890_v8  ;;  %v2109_v4 = vld [vmem:[%s8839_s5 + $0x178] sm:$0xff]  ;;  %v2127_v5 = vld [vmem:[%s8839_s5 + $0x208] sm:$0xff]  ;;  %v2880_v1 = vcombine.high %v7144_v24, %v7244_v10  ;;  %v2372_v10 = vld [vmem:[%s8839_s5 + $0x9b0] sm:$0xff] }
 0x2e9   : > { %5370 = vmatpush3.bf16.msra.mxu0 %v5369_v30  ;;  %5530 = vmatpush3.bf16.msra.mxu1 %v5529_v50  ;;  %v3088_v30 = vcombine.high %v6922_v42, %v6963_v20  ;;  %v3092_v50 = vcombine.high %v7168_v12, %v7216_v61  ;;  %v5381_v63 = vpack.c.bf16 %v2109_v4, %v2108_v39  ;;  %v2144_v39 = vld [vmem:[%s8839_s5 + $0x290] sm:$0xff]  ;;  %v2515_v53 = vld [vmem:[%s8839_s5 + $0xe28] sm:$0xff] }
 0x2ea   : > { %5372 = vmatprep.subr.bf16.mxu0 %v5371_v62  ;;  %5532 = vmatprep.subr.bf16.mxu1 %v5531_v43  ;;  %v3149_v49 = vcombine.low %v7450_v23, %v7456_v17  ;;  %v8855_v4 = vcombine.low %v6922_v42, %v6963_v20  ;;  %v2336_v42 = vld [vmem:[%s8839_s5 + $0x890] sm:$0xff]  ;;  %v2337_v20 = vld [vmem:[%s8839_s5 + $0x898] sm:$0xff]  ;;  %v2355_v24 = vld [vmem:[%s8839_s5 + $0x928] sm:$0xff] }
 0x2eb   : > { %v7491_v62 = vrot.slane %v3088_v30, %v6890_v8  ;;  %v7494_v43 = vrot.slane %v3092_v50, %v6890_v8  ;;  %v5539_v30 = vpack.c.bf16 %v2285_v47, %v2284_v31  ;;  %v2268_v50 = vld [vmem:[%s8839_s5 + $0x670] sm:$0xff] }
 0x2ed   : > { %5374 = vmatpush3.bf16.msra.mxu0 %v5373_v59  ;;  %5534 = vmatpush3.bf16.msra.mxu1 %v5533_v14  ;;  %v2269_v59 = vld [vmem:[%s8839_s5 + $0x678] sm:$0xff]  ;;  %v2142_v14 = vld [vmem:[%s8839_s5 + $0x280] sm:$0xff] }
 0x2ee   : > { %5376 = vmatprep.subr.bf16.mxu0 %v5375_v37  ;;  %5536 = vmatprep.subr.bf16.mxu1 %v5535_v48  ;;  %v2143_v37 = vld [vmem:[%s8839_s5 + $0x288] sm:$0xff]  ;;  %v2334_v48 = vld [vmem:[%s8839_s5 + $0x880] sm:$0xff]  ;;  %v5541_v54 = vpack.c.bf16 %v2269_v59, %v2268_v50  ;;  %v3018_v59 = vcombine.high %v7184_v26, %v7270_v2 }
 0x2ef   : > { %v5383_v31 = vpack.c.bf16 %v2143_v37, %v2142_v14  ;;  %v5575_v47 = vpack.c.bf16 %v2335_v40, %v2334_v48  ;;  %v5385_v14 = vpack.c.bf16 %v2127_v5, %v2126_v36  ;;  %v2145_v37 = vld [vmem:[%s8839_s5 + $0x298] sm:$0xff]  ;;  %v3016_v48 = vcombine.high %v7342_v27, %v7345_v32  ;;  %v2128_v5 = vld [vmem:[%s8839_s5 + $0x210] sm:$0xff]  ;;  %v2147_v40 = vld [vmem:[%s8839_s5 + $0x2a8] sm:$0xff] }
 0x2f0   : > { %v2500_v27 = vld [vmem:[%s8839_s5 + $0xdb0] sm:$0xff]  ;;  %v2501_v32 = vld [vmem:[%s8839_s5 + $0xdb8] sm:$0xff] }
 0x2f1   : > { %5378 = vmatpush3.bf16.msra.mxu0 %v5377_v11  ;;  %5538 = vmatpush3.bf16.msra.mxu1 %v5537_v21  ;;  %v2318_v11 = vld [vmem:[%s8839_s5 + $0x800] sm:$0xff]  ;;  %v2319_v21 = vld [vmem:[%s8839_s5 + $0x808] sm:$0xff] }
 0x2f2   : > { %5380 = vmatprep.subr.bf16.mxu0 %v5379_v46  ;;  %5540 = vmatprep.subr.bf16.mxu1 %v5539_v30  ;;  %v7543_v46 = vrot.slane %v8855_v4, %v6890_v8  ;;  %v8856_v30 = vcombine.low %v7168_v12, %v7216_v61  ;;  %v3020_v12 = vcombine.high %v7323_v0, %v7326_v52 }
 0x2f3   : > { %v5577_v36 = vpack.c.bf16 %v2319_v21, %v2318_v11  ;;  %v5579_v11 = vpack.c.bf16 %v2337_v20, %v2336_v42  ;;  %v2321_v21 = vld [vmem:[%s8839_s5 + $0x818] sm:$0xff]  ;;  %v2148_v20 = vld [vmem:[%s8839_s5 + $0x2b0] sm:$0xff] }
 0x2f4   : > { %v7549_v50 = vrot.slane %v8856_v30, %v6890_v8  ;;  %v3014_v8 = vcombine.high %v7199_v9, %v7273_v34  ;;  %v2146_v30 = vld [vmem:[%s8839_s5 + $0x2a0] sm:$0xff] }
 0x2f5   : > { %5382 = vmatpush3.bf16.msra.mxu0 %v5381_v63  ;;  %5542 = vmatpush3.bf16.msra.mxu1 %v5541_v54  ;;  %v2129_v63 = vld [vmem:[%s8839_s5 + $0x218] sm:$0xff]  ;;  %v2320_v54 = vld [vmem:[%s8839_s5 + $0x810] sm:$0xff]  ;;  %v5391_v16 = vpack.c.bf16 %v2147_v40, %v2146_v30 }
 0x2f6   : > { %v3151_v61 = vcombine.low %v7543_v46, %v7549_v50  ;;  %5384 = vmatprep.subr.bf16.mxu0 %v5383_v31  ;;  %5576 = vmatprep.subr.bf16.mxu1 %v5575_v47  ;;  %v3156_v31 = vcombine.high %v7491_v62, %v7494_v43  ;;  %v5387_v47 = vpack.c.bf16 %v2145_v37, %v2144_v39  ;;  %v2338_v39 = vld [vmem:[%s8839_s5 + $0x8a0] sm:$0xff]  ;;  %v2339_v37 = vld [vmem:[%s8839_s5 + $0x8a8] sm:$0xff]  ;;  %v2149_v40 = vld [vmem:[%s8839_s5 + $0x2b8] sm:$0xff] }
 0x2f7   : > { %v3152_v4 = vcombine.high %v7543_v46, %v7549_v50  ;;  %v5389_v42 = vpack.c.bf16 %v2129_v63, %v2128_v5  ;;  %v5581_v15 = vpack.c.bf16 %v2321_v21, %v2320_v54  ;;  %v2341_v5 = vld [vmem:[%s8839_s5 + $0x8b8] sm:$0xff]  ;;  %v2324_v30 = vld [vmem:[%s8839_s5 + $0x830] sm:$0xff] }
 0x2f8   : > { %3324 = vmatmul.mubr.f32.vlgmr.msra.gmra.mrb[18].mxu0 %v2742_v57  ;;  %3674 = vmatmul.mubr.f32.vlgmr.msra.gmra.mrb[34].mxu1 %v2879_v41  ;;  %v2130_v57 = vld [vmem:[%s8839_s5 + $0x220] sm:$0xff]  ;;  %v2131_v41 = vld [vmem:[%s8839_s5 + $0x228] sm:$0xff]  ;;  %v2133_v21 = vld [vmem:[%s8839_s5 + $0x238] sm:$0xff] }
 0x2f9   : > { %5386 = vmatpush3.bf16.msra.mxu0 %v5385_v14  ;;  %3393 = vmatprep.mubr.f32.mxu0 %v2747_v56  ;;  %v2322_v56 = vld [vmem:[%s8839_s5 + $0x820] sm:$0xff]  ;;  %v5583_v14 = vpack.c.bf16 %v2339_v37, %v2338_v39  ;;  %v5393_v63 = vpack.c.bf16 %v2131_v41, %v2130_v57  ;;  %v2325_v37 = vld [vmem:[%s8839_s5 + $0x838] sm:$0xff]  ;;  %v2343_v57 = vld [vmem:[%s8839_s5 + $0x8c8] sm:$0xff] }
 0x2fa   : > { %5578 = vmatpush3.bf16.msra.mxu1 %v5577_v36  ;;  %3813 = vmatprep.mubr.f32.mxu1 %v3017_v44  ;;  %v2323_v44 = vld [vmem:[%s8839_s5 + $0x828] sm:$0xff]  ;;  %v2340_v36 = vld [vmem:[%s8839_s5 + $0x8b0] sm:$0xff] }
 0x2fb   : > { %5388 = vmatprep.subr.bf16.mxu0 %v5387_v47  ;;  %5580 = vmatprep.subr.bf16.mxu1 %v5579_v11  ;;  %v5585_v54 = vpack.c.bf16 %v2323_v44, %v2322_v56  ;;  %v5395_v47 = vpack.c.bf16 %v2149_v40, %v2148_v20  ;;  %v2132_v11 = vld [vmem:[%s8839_s5 + $0x230] sm:$0xff]  ;;  %v5587_v39 = vpack.c.bf16 %v2341_v5, %v2340_v36  ;;  %v2134_v44 = vld [vmem:[%s8839_s5 + $0x240] sm:$0xff]  ;;  %v2135_v20 = vld [vmem:[%s8839_s5 + $0x248] sm:$0xff] }
 0x2fc   : > { %v5397_v41 = vpack.c.bf16 %v2133_v21, %v2132_v11  ;;  %v5589_v56 = vpack.c.bf16 %v2325_v37, %v2324_v30  ;;  %v2326_v40 = vld [vmem:[%s8839_s5 + $0x840] sm:$0xff]  ;;  %v2327_v5 = vld [vmem:[%s8839_s5 + $0x848] sm:$0xff]  ;;  %v2345_v11 = vld [vmem:[%s8839_s5 + $0x8d8] sm:$0xff]  ;;  %v5401_v21 = vpack.c.bf16 %v2135_v20, %v2134_v44 }
 0x2fd   : > { %5390 = vmatpush3.bf16.msra.mxu0 %v5389_v42  ;;  %v2150_v42 = vld [vmem:[%s8839_s5 + $0x2c0] sm:$0xff]  ;;  %v5593_v30 = vpack.c.bf16 %v2327_v5, %v2326_v40  ;;  %v2136_v37 = vld [vmem:[%s8839_s5 + $0x250] sm:$0xff]  ;;  %v2347_v44 = vld [vmem:[%s8839_s5 + $0x8e8] sm:$0xff] }
 0x2fe   : > { %5582 = vmatpush3.bf16.msra.mxu1 %v5581_v15  ;;  %5392 = vmatprep.subr.bf16.mxu0 %v5391_v16  ;;  %v2151_v15 = vld [vmem:[%s8839_s5 + $0x2c8] sm:$0xff]  ;;  %v2342_v16 = vld [vmem:[%s8839_s5 + $0x8c0] sm:$0xff] }
 0x2ff   : > { %5584 = vmatprep.subr.bf16.mxu1 %v5583_v14  ;;  %v5399_v14 = vpack.c.bf16 %v2151_v15, %v2150_v42  ;;  %v5591_v36 = vpack.c.bf16 %v2343_v57, %v2342_v16  ;;  %v2137_v42 = vld [vmem:[%s8839_s5 + $0x258] sm:$0xff]  ;;  %v2328_v15 = vld [vmem:[%s8839_s5 + $0x850] sm:$0xff]  ;;  %v2138_v5 = vld [vmem:[%s8839_s5 + $0x260] sm:$0xff] }
 0x300   : > { %v2329_v57 = vld [vmem:[%s8839_s5 + $0x858] sm:$0xff]  ;;  %v5405_v20 = vpack.c.bf16 %v2137_v42, %v2136_v37 }
 0x301   : > { %5394 = vmatpush3.bf16.msra.mxu0 %v5393_v63  ;;  %v2152_v63 = vld [vmem:[%s8839_s5 + $0x2d0] sm:$0xff]  ;;  %v5597_v40 = vpack.c.bf16 %v2329_v57, %v2328_v15  ;;  %v2349_v37 = vld [vmem:[%s8839_s5 + $0x8f8] sm:$0xff] }
 0x302   : > { %5586 = vmatpush3.bf16.msra.mxu1 %v5585_v54  ;;  %5396 = vmatprep.subr.bf16.mxu0 %v5395_v47  ;;  %v2153_v54 = vld [vmem:[%s8839_s5 + $0x2d8] sm:$0xff]  ;;  %v2344_v47 = vld [vmem:[%s8839_s5 + $0x8d0] sm:$0xff] }
 0x303   : > { %5588 = vmatprep.subr.bf16.mxu1 %v5587_v39  ;;  %v5403_v39 = vpack.c.bf16 %v2153_v54, %v2152_v63  ;;  %v5595_v16 = vpack.c.bf16 %v2345_v11, %v2344_v47  ;;  %v2139_v63 = vld [vmem:[%s8839_s5 + $0x268] sm:$0xff]  ;;  %v2330_v54 = vld [vmem:[%s8839_s5 + $0x860] sm:$0xff]  ;;  %v2140_v57 = vld [vmem:[%s8839_s5 + $0x270] sm:$0xff] }
 0x304   : > { %v2331_v11 = vld [vmem:[%s8839_s5 + $0x868] sm:$0xff]  ;;  %v5409_v42 = vpack.c.bf16 %v2139_v63, %v2138_v5 }
 0x305   : > { %5398 = vmatpush3.bf16.msra.mxu0 %v5397_v41  ;;  %v2154_v41 = vld [vmem:[%s8839_s5 + $0x2e0] sm:$0xff]  ;;  %v5601_v15 = vpack.c.bf16 %v2331_v11, %v2330_v54  ;;  %v2399_v5 = vld [vmem:[%s8839_s5 + $0xa88] sm:$0xff] }
 0x306   : > { %5590 = vmatpush3.bf16.msra.mxu1 %v5589_v56  ;;  %5400 = vmatprep.subr.bf16.mxu0 %v5399_v14  ;;  %v2155_v56 = vld [vmem:[%s8839_s5 + $0x2e8] sm:$0xff]  ;;  %v2346_v14 = vld [vmem:[%s8839_s5 + $0x8e0] sm:$0xff] }
 0x307   : > { %5592 = vmatprep.subr.bf16.mxu1 %v5591_v36  ;;  %v5407_v36 = vpack.c.bf16 %v2155_v56, %v2154_v41  ;;  %v5599_v47 = vpack.c.bf16 %v2347_v44, %v2346_v14  ;;  %v2141_v41 = vld [vmem:[%s8839_s5 + $0x278] sm:$0xff]  ;;  %v2332_v56 = vld [vmem:[%s8839_s5 + $0x870] sm:$0xff]  ;;  %v2158_v11 = vld [vmem:[%s8839_s5 + $0x300] sm:$0xff] }
 0x308   : > { %v2333_v44 = vld [vmem:[%s8839_s5 + $0x878] sm:$0xff]  ;;  %v5413_v63 = vpack.c.bf16 %v2141_v41, %v2140_v57  ;;  %v2400_v57 = vld [vmem:[%s8839_s5 + $0xa90] sm:$0xff] }
 0x309   : > { %5402 = vmatpush3.bf16.msra.mxu0 %v5401_v21  ;;  %v2156_v21 = vld [vmem:[%s8839_s5 + $0x2f0] sm:$0xff]  ;;  %v5605_v54 = vpack.c.bf16 %v2333_v44, %v2332_v56  ;;  %v2401_v41 = vld [vmem:[%s8839_s5 + $0xa98] sm:$0xff] }
 0x30a   : > { %5594 = vmatpush3.bf16.msra.mxu1 %v5593_v30  ;;  %5404 = vmatprep.subr.bf16.mxu0 %v5403_v39  ;;  %v2157_v30 = vld [vmem:[%s8839_s5 + $0x2f8] sm:$0xff]  ;;  %v2348_v39 = vld [vmem:[%s8839_s5 + $0x8f0] sm:$0xff] }
 0x30b   : > { %5596 = vmatprep.subr.bf16.mxu1 %v5595_v16  ;;  %v5411_v16 = vpack.c.bf16 %v2157_v30, %v2156_v21  ;;  %v5603_v14 = vpack.c.bf16 %v2349_v37, %v2348_v39  ;;  %v2159_v21 = vld [vmem:[%s8839_s5 + $0x308] sm:$0xff]  ;;  %v2382_v39 = vld [vmem:[%s8839_s5 + $0xa00] sm:$0xff]  ;;  %v2161_v44 = vld [vmem:[%s8839_s5 + $0x318] sm:$0xff] }
 0x30c   : > { %v2383_v37 = vld [vmem:[%s8839_s5 + $0xa08] sm:$0xff] }
 0x30d   : > { %5406 = vmatpush3.bf16.msra.mxu0 %v5405_v20  ;;  %v2174_v20 = vld [vmem:[%s8839_s5 + $0x380] sm:$0xff]  ;;  %v5641_v56 = vpack.c.bf16 %v2383_v37, %v2382_v39  ;;  %v8859_v37 = vcombine.high %v7178_v29, %v7258_v60  ;;  %v2387_v60 = vld [vmem:[%s8839_s5 + $0xa28] sm:$0xff] }
 0x30e   : > { %5598 = vmatpush3.bf16.msra.mxu1 %v5597_v40  ;;  %5408 = vmatprep.subr.bf16.mxu0 %v5407_v36  ;;  %v2175_v40 = vld [vmem:[%s8839_s5 + $0x388] sm:$0xff]  ;;  %v2398_v36 = vld [vmem:[%s8839_s5 + $0xa80] sm:$0xff] }
 0x30f   : > { %5600 = vmatprep.subr.bf16.mxu1 %v5599_v47  ;;  %v5415_v47 = vpack.c.bf16 %v2175_v40, %v2174_v20  ;;  %v5639_v30 = vpack.c.bf16 %v2399_v5, %v2398_v36  ;;  %v2384_v20 = vld [vmem:[%s8839_s5 + $0xa10] sm:$0xff]  ;;  %v2385_v36 = vld [vmem:[%s8839_s5 + $0xa18] sm:$0xff]  ;;  %v2178_v5 = vld [vmem:[%s8839_s5 + $0x3a0] sm:$0xff] }
 0x311   : > { %5410 = vmatpush3.bf16.msra.mxu0 %v5409_v42  ;;  %v2176_v42 = vld [vmem:[%s8839_s5 + $0x390] sm:$0xff] }
 0x312   : > { %5602 = vmatpush3.bf16.msra.mxu1 %v5601_v15  ;;  %5412 = vmatprep.subr.bf16.mxu0 %v5411_v16  ;;  %v2177_v15 = vld [vmem:[%s8839_s5 + $0x398] sm:$0xff]  ;;  %v5417_v16 = vpack.c.bf16 %v2159_v21, %v2158_v11  ;;  %v2402_v11 = vld [vmem:[%s8839_s5 + $0xaa0] sm:$0xff]  ;;  %v2403_v21 = vld [vmem:[%s8839_s5 + $0xaa8] sm:$0xff] }
 0x313   : > { %5604 = vmatprep.subr.bf16.mxu1 %v5603_v14  ;;  %v2160_v14 = vld [vmem:[%s8839_s5 + $0x310] sm:$0xff]  ;;  %v5419_v40 = vpack.c.bf16 %v2177_v15, %v2176_v42  ;;  %v5645_v42 = vpack.c.bf16 %v2385_v36, %v2384_v20  ;;  %v5647_v29 = vpack.c.bf16 %v2403_v21, %v2402_v11  ;;  %v2389_v11 = vld [vmem:[%s8839_s5 + $0xa38] sm:$0xff]  ;;  %v2182_v21 = vld [vmem:[%s8839_s5 + $0x3c0] sm:$0xff] }
 0x314   : > { %v5421_v39 = vpack.c.bf16 %v2161_v44, %v2160_v14  ;;  %v2181_v14 = vld [vmem:[%s8839_s5 + $0x3b8] sm:$0xff]  ;;  %v2404_v44 = vld [vmem:[%s8839_s5 + $0xab0] sm:$0xff] }
 0x315   : > { %5414 = vmatpush3.bf16.msra.mxu0 %v5413_v63  ;;  %v2179_v63 = vld [vmem:[%s8839_s5 + $0x3a8] sm:$0xff] }
 0x316   : > { %5606 = vmatpush3.bf16.msra.mxu1 %v5605_v54  ;;  %5416 = vmatprep.subr.bf16.mxu0 %v5415_v47  ;;  %v8857_v54 = vcombine.low %v7190_v22, %v7261_v33  ;;  %v5643_v47 = vpack.c.bf16 %v2401_v41, %v2400_v57  ;;  %v5423_v15 = vpack.c.bf16 %v2179_v63, %v2178_v5  ;;  %v2162_v57 = vld [vmem:[%s8839_s5 + $0x320] sm:$0xff]  ;;  %v2163_v41 = vld [vmem:[%s8839_s5 + $0x328] sm:$0xff]  ;;  %v2164_v5 = vld [vmem:[%s8839_s5 + $0x330] sm:$0xff] }
 0x317   : > { %5640 = vmatprep.subr.bf16.mxu1 %v5639_v30  ;;  %v8858_v30 = vcombine.low %v7199_v9, %v7273_v34  ;;  %v5425_v20 = vpack.c.bf16 %v2163_v41, %v2162_v57  ;;  %v2165_v63 = vld [vmem:[%s8839_s5 + $0x338] sm:$0xff]  ;;  %v2166_v41 = vld [vmem:[%s8839_s5 + $0x340] sm:$0xff]  ;;  %v2436_v9 = vld [vmem:[%s8839_s5 + $0xbb0] sm:$0xff] }
 0x318   : > { %3394 = vmatmul.mubr.f32.vlgmr.msra.gmra.mrb[20].mxu0 %v8857_v54  ;;  %v2388_v54 = vld [vmem:[%s8839_s5 + $0xa30] sm:$0xff]  ;;  %v2437_v34 = vld [vmem:[%s8839_s5 + $0xbb8] sm:$0xff] }
 0x319   : > { %3814 = vmatmul.mubr.f32.vlgmr.msra.gmra.mrb[36].mxu1 %v8858_v30  ;;  %5418 = vmatpush3.bf16.msra.mxu0 %v5417_v16  ;;  %v2386_v16 = vld [vmem:[%s8839_s5 + $0xa20] sm:$0xff]  ;;  %v2183_v30 = vld [vmem:[%s8839_s5 + $0x3c8] sm:$0xff]  ;;  %v5683_v52 = vpack.c.bf16 %v2437_v34, %v2436_v9 }
 0x31a   : > { %3463 = vmatprep.mubr.f32.mxu0 %v8859_v37  ;;  %5642 = vmatpush3.bf16.msra.mxu1 %v5641_v56  ;;  %v2180_v56 = vld [vmem:[%s8839_s5 + $0x3b0] sm:$0xff]  ;;  %v2407_v37 = vld [vmem:[%s8839_s5 + $0xac8] sm:$0xff]  ;;  %v5431_v57 = vpack.c.bf16 %v2183_v30, %v2182_v21  ;;  %v2393_v21 = vld [vmem:[%s8839_s5 + $0xa58] sm:$0xff] }
 0x31b   : > { %3953 = vmatprep.mubr.f32.mxu1 %v3019_v38  ;;  %5420 = vmatprep.subr.bf16.mxu0 %v5419_v40  ;;  %v2405_v38 = vld [vmem:[%s8839_s5 + $0xab8] sm:$0xff]  ;;  %v5649_v40 = vpack.c.bf16 %v2387_v60, %v2386_v16  ;;  %v5427_v36 = vpack.c.bf16 %v2181_v14, %v2180_v56  ;;  %v2167_v16 = vld [vmem:[%s8839_s5 + $0x348] sm:$0xff]  ;;  %v2184_v14 = vld [vmem:[%s8839_s5 + $0x3d0] sm:$0xff] }
 0x31c   : > { %5644 = vmatprep.subr.bf16.mxu1 %v5643_v47  ;;  %v5651_v47 = vpack.c.bf16 %v2405_v38, %v2404_v44  ;;  %v2391_v56 = vld [vmem:[%s8839_s5 + $0xa48] sm:$0xff]  ;;  %v2185_v44 = vld [vmem:[%s8839_s5 + $0x3d8] sm:$0xff]  ;;  %v2408_v38 = vld [vmem:[%s8839_s5 + $0xad0] sm:$0xff] }
 0x31d   : > { %5422 = vmatpush3.bf16.msra.mxu0 %v5421_v39  ;;  %v2406_v39 = vld [vmem:[%s8839_s5 + $0xac0] sm:$0xff] }
 0x31e   : > { %5646 = vmatpush3.bf16.msra.mxu1 %v5645_v42  ;;  %5424 = vmatprep.subr.bf16.mxu0 %v5423_v15  ;;  %v5429_v42 = vpack.c.bf16 %v2165_v63, %v2164_v5  ;;  %v5653_v15 = vpack.c.bf16 %v2389_v11, %v2388_v54  ;;  %v5655_v60 = vpack.c.bf16 %v2407_v37, %v2406_v39  ;;  %v2168_v63 = vld [vmem:[%s8839_s5 + $0x350] sm:$0xff]  ;;  %v2169_v54 = vld [vmem:[%s8839_s5 + $0x358] sm:$0xff]  ;;  %v2186_v30 = vld [vmem:[%s8839_s5 + $0x3e0] sm:$0xff] }
 0x31f   : > { %5648 = vmatprep.subr.bf16.mxu1 %v5647_v29  ;;  %v2390_v29 = vld [vmem:[%s8839_s5 + $0xa40] sm:$0xff]  ;;  %v5435_v5 = vpack.c.bf16 %v2185_v44, %v2184_v14  ;;  %v2187_v39 = vld [vmem:[%s8839_s5 + $0x3e8] sm:$0xff]  ;;  %v2188_v44 = vld [vmem:[%s8839_s5 + $0x3f0] sm:$0xff] }
 0x320   : > { %v2410_v37 = vld [vmem:[%s8839_s5 + $0xae0] sm:$0xff]  ;;  %v2395_v14 = vld [vmem:[%s8839_s5 + $0xa68] sm:$0xff] }
 0x321   : > { %5426 = vmatpush3.bf16.msra.mxu0 %v5425_v20  ;;  %v2409_v20 = vld [vmem:[%s8839_s5 + $0xad8] sm:$0xff] }
 0x322   : > { %5650 = vmatpush3.bf16.msra.mxu1 %v5649_v40  ;;  %5428 = vmatprep.subr.bf16.mxu0 %v5427_v36  ;;  %v5433_v40 = vpack.c.bf16 %v2167_v16, %v2166_v41  ;;  %v5657_v36 = vpack.c.bf16 %v2391_v56, %v2390_v29  ;;  %v5659_v11 = vpack.c.bf16 %v2409_v20, %v2408_v38  ;;  %v2170_v16 = vld [vmem:[%s8839_s5 + $0x360] sm:$0xff]  ;;  %v2171_v29 = vld [vmem:[%s8839_s5 + $0x368] sm:$0xff]  ;;  %v2189_v38 = vld [vmem:[%s8839_s5 + $0x3f8] sm:$0xff] }
 0x323   : > { %5652 = vmatprep.subr.bf16.mxu1 %v5651_v47  ;;  %v2392_v47 = vld [vmem:[%s8839_s5 + $0xa50] sm:$0xff]  ;;  %v5439_v41 = vpack.c.bf16 %v2187_v39, %v2186_v30  ;;  %v2397_v30 = vld [vmem:[%s8839_s5 + $0xa78] sm:$0xff]  ;;  %v2238_v39 = vld [vmem:[%s8839_s5 + $0x580] sm:$0xff] }
 0x324   : > { %v2412_v20 = vld [vmem:[%s8839_s5 + $0xaf0] sm:$0xff] }
 0x325   : > { %5430 = vmatpush3.bf16.msra.mxu0 %v5429_v42  ;;  %v2411_v42 = vld [vmem:[%s8839_s5 + $0xae8] sm:$0xff] }
 0x326   : > { %5654 = vmatpush3.bf16.msra.mxu1 %v5653_v15  ;;  %5432 = vmatprep.subr.bf16.mxu0 %v5431_v57  ;;  %v5437_v15 = vpack.c.bf16 %v2169_v54, %v2168_v63  ;;  %v5661_v57 = vpack.c.bf16 %v2393_v21, %v2392_v47  ;;  %v5663_v56 = vpack.c.bf16 %v2411_v42, %v2410_v37  ;;  %v2172_v54 = vld [vmem:[%s8839_s5 + $0x370] sm:$0xff]  ;;  %v2173_v47 = vld [vmem:[%s8839_s5 + $0x378] sm:$0xff]  ;;  %v2239_v37 = vld [vmem:[%s8839_s5 + $0x588] sm:$0xff] }
 0x327   : > { %5656 = vmatprep.subr.bf16.mxu1 %v5655_v60  ;;  %v2394_v60 = vld [vmem:[%s8839_s5 + $0xa60] sm:$0xff]  ;;  %v5443_v63 = vpack.c.bf16 %v2189_v38, %v2188_v44  ;;  %v2447_v44 = vld [vmem:[%s8839_s5 + $0xc08] sm:$0xff]  ;;  %v2240_v38 = vld [vmem:[%s8839_s5 + $0x590] sm:$0xff] }
 0x328   : > { %v2462_v42 = vld [vmem:[%s8839_s5 + $0xc80] sm:$0xff] }
 0x329   : > { %5434 = vmatpush3.bf16.msra.mxu0 %v5433_v40  ;;  %v2413_v40 = vld [vmem:[%s8839_s5 + $0xaf8] sm:$0xff] }
 0x32a   : > { %5658 = vmatpush3.bf16.msra.mxu1 %v5657_v36  ;;  %5436 = vmatprep.subr.bf16.mxu0 %v5435_v5  ;;  %v5441_v36 = vpack.c.bf16 %v2171_v29, %v2170_v16  ;;  %v5665_v5 = vpack.c.bf16 %v2395_v14, %v2394_v60  ;;  %v5667_v21 = vpack.c.bf16 %v2413_v40, %v2412_v20  ;;  %v2222_v29 = vld [vmem:[%s8839_s5 + $0x500] sm:$0xff]  ;;  %v2223_v60 = vld [vmem:[%s8839_s5 + $0x508] sm:$0xff]  ;;  %v2241_v20 = vld [vmem:[%s8839_s5 + $0x598] sm:$0xff] }
 0x32b   : > { %5660 = vmatprep.subr.bf16.mxu1 %v5659_v11  ;;  %v2396_v11 = vld [vmem:[%s8839_s5 + $0xa70] sm:$0xff]  ;;  %v5479_v16 = vpack.c.bf16 %v2239_v37, %v2238_v39  ;;  %v2446_v14 = vld [vmem:[%s8839_s5 + $0xc00] sm:$0xff]  ;;  %v5481_v40 = vpack.c.bf16 %v2223_v60, %v2222_v29  ;;  %v2243_v37 = vld [vmem:[%s8839_s5 + $0x5a8] sm:$0xff] }
 0x32c   : > { %v2242_v39 = vld [vmem:[%s8839_s5 + $0x5a0] sm:$0xff]  ;;  %v2245_v29 = vld [vmem:[%s8839_s5 + $0x5b8] sm:$0xff]  ;;  %v2468_v60 = vld [vmem:[%s8839_s5 + $0xcb0] sm:$0xff] }
 0x32d   : > { %5438 = vmatpush3.bf16.msra.mxu0 %v5437_v15  ;;  %v2463_v15 = vld [vmem:[%s8839_s5 + $0xc88] sm:$0xff]  ;;  %v5487_v33 = vpack.c.bf16 %v2243_v37, %v2242_v39  ;;  %v2230_v37 = vld [vmem:[%s8839_s5 + $0x540] sm:$0xff] }
 0x32e   : > { %5662 = vmatpush3.bf16.msra.mxu1 %v5661_v57  ;;  %5440 = vmatprep.subr.bf16.mxu0 %v5439_v41  ;;  %v5445_v57 = vpack.c.bf16 %v2173_v47, %v2172_v54  ;;  %v5669_v41 = vpack.c.bf16 %v2397_v30, %v2396_v11  ;;  %v2224_v54 = vld [vmem:[%s8839_s5 + $0x510] sm:$0xff]  ;;  %v2225_v47 = vld [vmem:[%s8839_s5 + $0x518] sm:$0xff] }
 0x32f   : > { %5664 = vmatprep.subr.bf16.mxu1 %v5663_v56  ;;  %v5703_v56 = vpack.c.bf16 %v2463_v15, %v2462_v42  ;;  %v2448_v11 = vld [vmem:[%s8839_s5 + $0xc10] sm:$0xff]  ;;  %v2449_v30 = vld [vmem:[%s8839_s5 + $0xc18] sm:$0xff]  ;;  %v2466_v15 = vld [vmem:[%s8839_s5 + $0xca0] sm:$0xff] }
 0x330   : > { %v5709_v22 = vpack.c.bf16 %v2449_v30, %v2448_v11  ;;  %v2471_v11 = vld [vmem:[%s8839_s5 + $0xcc8] sm:$0xff] }
 0x331   : > { %5442 = vmatpush3.bf16.msra.mxu0 %v5441_v36  ;;  %v2464_v36 = vld [vmem:[%s8839_s5 + $0xc90] sm:$0xff] }
 0x332   : > { %5666 = vmatpush3.bf16.msra.mxu1 %v5665_v5  ;;  %5444 = vmatprep.subr.bf16.mxu0 %v5443_v63  ;;  %v2465_v5 = vld [vmem:[%s8839_s5 + $0xc98] sm:$0xff]  ;;  %v5705_v63 = vpack.c.bf16 %v2447_v44, %v2446_v14 }
 0x333   : > { %5668 = vmatprep.subr.bf16.mxu1 %v5667_v21  ;;  %v5483_v21 = vpack.c.bf16 %v2241_v20, %v2240_v38  ;;  %v5707_v42 = vpack.c.bf16 %v2465_v5, %v2464_v36  ;;  %v2228_v38 = vld [vmem:[%s8839_s5 + $0x530] sm:$0xff]  ;;  %v2229_v20 = vld [vmem:[%s8839_s5 + $0x538] sm:$0xff] }
 0x334   : > { %v2453_v5 = vld [vmem:[%s8839_s5 + $0xc38] sm:$0xff] }
 0x335   : > { %5446 = vmatpush3.bf16.msra.mxu0 %v5445_v57  ;;  %v2467_v57 = vld [vmem:[%s8839_s5 + $0xca8] sm:$0xff] }
 0x336   : > { %5670 = vmatpush3.bf16.msra.mxu1 %v5669_v41  ;;  %5480 = vmatprep.subr.bf16.mxu0 %v5479_v16  ;;  %v5485_v41 = vpack.c.bf16 %v2225_v47, %v2224_v54  ;;  %v2227_v16 = vld [vmem:[%s8839_s5 + $0x528] sm:$0xff]  ;;  %v5711_v45 = vpack.c.bf16 %v2467_v57, %v2466_v15  ;;  %v2470_v47 = vld [vmem:[%s8839_s5 + $0xcc0] sm:$0xff] }
 0x337   : > { %5704 = vmatprep.subr.bf16.mxu1 %v5703_v56  ;;  %v2247_v54 = vld [vmem:[%s8839_s5 + $0x5c8] sm:$0xff]  ;;  %v2454_v15 = vld [vmem:[%s8839_s5 + $0xc40] sm:$0xff]  ;;  %v5719_v57 = vpack.c.bf16 %v2471_v11, %v2470_v47 }
 0x338   : > { %3464 = vmatmul.mubr.f32.vlgmr.msra.gmra.mrb[22].mxu0 %v2744_v13  ;;  %v2226_v13 = vld [vmem:[%s8839_s5 + $0x520] sm:$0xff] }
 0x339   : > { %3954 = vmatmul.mubr.f32.vlgmr.msra.gmra.mrb[38].mxu1 %v3015_v7  ;;  %5482 = vmatpush3.bf16.msra.mxu0 %v5481_v40  ;;  %v2450_v7 = vld [vmem:[%s8839_s5 + $0xc20] sm:$0xff]  ;;  %v5489_v56 = vpack.c.bf16 %v2227_v16, %v2226_v13  ;;  %v2452_v40 = vld [vmem:[%s8839_s5 + $0xc30] sm:$0xff]  ;;  %v2473_v16 = vld [vmem:[%s8839_s5 + $0xcd8] sm:$0xff] }
 0x33a   : > { %3603 = vmatprep.mubr.f32.mxu0 %v2882_v18  ;;  %5706 = vmatpush3.bf16.msra.mxu1 %v5705_v63  ;;  %v2244_v18 = vld [vmem:[%s8839_s5 + $0x5b0] sm:$0xff]  ;;  %v5713_v14 = vpack.c.bf16 %v2451_v3, %v2450_v7  ;;  %v2246_v63 = vld [vmem:[%s8839_s5 + $0x5c0] sm:$0xff]  ;;  %v5717_v30 = vpack.c.bf16 %v2453_v5, %v2452_v40 }
 0x33b   : > { %4093 = vmatprep.mubr.f32.mxu1 %v3153_v35  ;;  %5484 = vmatprep.subr.bf16.mxu0 %v5483_v21  ;;  %v2469_v35 = vld [vmem:[%s8839_s5 + $0xcb8] sm:$0xff]  ;;  %v5491_v44 = vpack.c.bf16 %v2245_v29, %v2244_v18  ;;  %v5493_v21 = vpack.c.bf16 %v2229_v20, %v2228_v38  ;;  %v5495_v39 = vpack.c.bf16 %v2247_v54, %v2246_v63  ;;  %v2472_v13 = vld [vmem:[%s8839_s5 + $0xcd0] sm:$0xff]  ;;  %v2474_v38 = vld [vmem:[%s8839_s5 + $0xce0] sm:$0xff] }
 0x33c   : > { %5708 = vmatprep.subr.bf16.mxu1 %v5707_v42  ;;  %v5715_v36 = vpack.c.bf16 %v2469_v35, %v2468_v60  ;;  %v2231_v42 = vld [vmem:[%s8839_s5 + $0x548] sm:$0xff]  ;;  %v2232_v18 = vld [vmem:[%s8839_s5 + $0x550] sm:$0xff]  ;;  %v2233_v29 = vld [vmem:[%s8839_s5 + $0x558] sm:$0xff]  ;;  %v5723_v35 = vpack.c.bf16 %v2473_v16, %v2472_v13 }
 0x33d   : > { %5486 = vmatpush3.bf16.msra.mxu0 %v5485_v41  ;;  %v2455_v41 = vld [vmem:[%s8839_s5 + $0xc48] sm:$0xff]  ;;  %v5497_v7 = vpack.c.bf16 %v2231_v42, %v2230_v37  ;;  %v2456_v60 = vld [vmem:[%s8839_s5 + $0xc50] sm:$0xff]  ;;  %v5501_v40 = vpack.c.bf16 %v2233_v29, %v2232_v18  ;;  %v2234_v63 = vld [vmem:[%s8839_s5 + $0x560] sm:$0xff] }
 0x33e   : > { %5710 = vmatpush3.bf16.msra.mxu1 %v5709_v22  ;;  %5488 = vmatprep.subr.bf16.mxu0 %v5487_v33  ;;  %v2248_v22 = vld [vmem:[%s8839_s5 + $0x5d0] sm:$0xff]  ;;  %v2249_v33 = vld [vmem:[%s8839_s5 + $0x5d8] sm:$0xff]  ;;  %v2475_v20 = vld [vmem:[%s8839_s5 + $0xce8] sm:$0xff] }
 0x33f   : > { %5712 = vmatprep.subr.bf16.mxu1 %v5711_v45  ;;  %v5721_v45 = vpack.c.bf16 %v2455_v41, %v2454_v15  ;;  %v5499_v3 = vpack.c.bf16 %v2249_v33, %v2248_v22  ;;  %v2235_v54 = vld [vmem:[%s8839_s5 + $0x568] sm:$0xff]  ;;  %v2458_v47 = vld [vmem:[%s8839_s5 + $0xc60] sm:$0xff]  ;;  %v5727_v11 = vpack.c.bf16 %v2475_v20, %v2474_v38  ;;  %v2476_v37 = vld [vmem:[%s8839_s5 + $0xcf0] sm:$0xff] }
 0x340   : > { %v2477_v42 = vld [vmem:[%s8839_s5 + $0xcf8] sm:$0xff]  ;;  %v5505_v15 = vpack.c.bf16 %v2235_v54, %v2234_v63  ;;  %v2236_v22 = vld [vmem:[%s8839_s5 + $0x570] sm:$0xff]  ;;  %v2526_v18 = vld [vmem:[%s8839_s5 + $0xe80] sm:$0xff] }
 0x341   : > { %5490 = vmatpush3.bf16.msra.mxu0 %v5489_v56  ;;  %v2457_v56 = vld [vmem:[%s8839_s5 + $0xc58] sm:$0xff]  ;;  %v2460_v13 = vld [vmem:[%s8839_s5 + $0xc70] sm:$0xff]  ;;  %v5731_v16 = vpack.c.bf16 %v2477_v42, %v2476_v37  ;;  %v2527_v29 = vld [vmem:[%s8839_s5 + $0xe88] sm:$0xff] }
 0x342   : > { %5714 = vmatpush3.bf16.msra.mxu1 %v5713_v14  ;;  %5492 = vmatprep.subr.bf16.mxu0 %v5491_v44  ;;  %v2250_v14 = vld [vmem:[%s8839_s5 + $0x5e0] sm:$0xff]  ;;  %v2251_v44 = vld [vmem:[%s8839_s5 + $0x5e8] sm:$0xff]  ;;  %v2237_v33 = vld [vmem:[%s8839_s5 + $0x578] sm:$0xff]  ;;  %v5767_v38 = vpack.c.bf16 %v2527_v29, %v2526_v18 }
 0x343   : > { %5716 = vmatprep.subr.bf16.mxu1 %v5715_v36  ;;  %v5725_v36 = vpack.c.bf16 %v2457_v56, %v2456_v60  ;;  %v5503_v5 = vpack.c.bf16 %v2251_v44, %v2250_v14  ;;  %v5509_v60 = vpack.c.bf16 %v2237_v33, %v2236_v22  ;;  %v2286_v14 = vld [vmem:[%s8839_s5 + $0x700] sm:$0xff]  ;;  %v2287_v44 = vld [vmem:[%s8839_s5 + $0x708] sm:$0xff]  ;;  %v2528_v54 = vld [vmem:[%s8839_s5 + $0xe90] sm:$0xff] }
 0x344   : > { %v2510_v20 = vld [vmem:[%s8839_s5 + $0xe00] sm:$0xff]  ;;  %v5545_v63 = vpack.c.bf16 %v2287_v44, %v2286_v14  ;;  %v2513_v42 = vld [vmem:[%s8839_s5 + $0xe18] sm:$0xff]  ;;  %v2531_v33 = vld [vmem:[%s8839_s5 + $0xea8] sm:$0xff] }
 0x345   : > { %5494 = vmatpush3.bf16.msra.mxu0 %v5493_v21  ;;  %v2459_v21 = vld [vmem:[%s8839_s5 + $0xc68] sm:$0xff]  ;;  %v2530_v22 = vld [vmem:[%s8839_s5 + $0xea0] sm:$0xff]  ;;  %v2533_v18 = vld [vmem:[%s8839_s5 + $0xeb8] sm:$0xff] }
 0x346   : > { %5718 = vmatpush3.bf16.msra.mxu1 %v5717_v30  ;;  %5496 = vmatprep.subr.bf16.mxu0 %v5495_v39  ;;  %v2252_v30 = vld [vmem:[%s8839_s5 + $0x5f0] sm:$0xff]  ;;  %v2253_v39 = vld [vmem:[%s8839_s5 + $0x5f8] sm:$0xff]  ;;  %v5775_v25 = vpack.c.bf16 %v2531_v33, %v2530_v22 }
 0x347   : > { %5720 = vmatprep.subr.bf16.mxu1 %v5719_v57  ;;  %v5729_v57 = vpack.c.bf16 %v2459_v21, %v2458_v47  ;;  %v5507_v41 = vpack.c.bf16 %v2253_v39, %v2252_v30  ;;  %v2529_v47 = vld [vmem:[%s8839_s5 + $0xe98] sm:$0xff]  ;;  %v2288_v21 = vld [vmem:[%s8839_s5 + $0x710] sm:$0xff] }
 0x348   : > { %v2289_v30 = vld [vmem:[%s8839_s5 + $0x718] sm:$0xff]  ;;  %v2512_v39 = vld [vmem:[%s8839_s5 + $0xe10] sm:$0xff] }
 0x349   : > { %5498 = vmatpush3.bf16.msra.mxu0 %v5497_v7  ;;  %v2461_v7 = vld [vmem:[%s8839_s5 + $0xc78] sm:$0xff]  ;;  %v5773_v6 = vpack.c.bf16 %v2513_v42, %v2512_v39  ;;  %v2516_v44 = vld [vmem:[%s8839_s5 + $0xe30] sm:$0xff]  ;;  %v2518_v39 = vld [vmem:[%s8839_s5 + $0xe40] sm:$0xff] }
 0x34a   : > { %5722 = vmatpush3.bf16.msra.mxu1 %v5721_v45  ;;  %5500 = vmatprep.subr.bf16.mxu0 %v5499_v3  ;;  %v2302_v45 = vld [vmem:[%s8839_s5 + $0x780] sm:$0xff]  ;;  %v2303_v3 = vld [vmem:[%s8839_s5 + $0x788] sm:$0xff]  ;;  %v2293_v14 = vld [vmem:[%s8839_s5 + $0x738] sm:$0xff] }
 0x34b   : > { %5724 = vmatprep.subr.bf16.mxu1 %v5723_v35  ;;  %v5733_v35 = vpack.c.bf16 %v2461_v7, %v2460_v13  ;;  %v5543_v56 = vpack.c.bf16 %v2303_v3, %v2302_v45  ;;  %v5549_v13 = vpack.c.bf16 %v2289_v30, %v2288_v21  ;;  %v8860_v7 = vcombine.low %v7491_v62, %v7494_v43  ;;  %v2309_v45 = vld [vmem:[%s8839_s5 + $0x7b8] sm:$0xff]  ;;  %v2532_v3 = vld [vmem:[%s8839_s5 + $0xeb0] sm:$0xff]  ;;  %v2294_v21 = vld [vmem:[%s8839_s5 + $0x740] sm:$0xff] }
 0x34c   : > { %v2295_v30 = vld [vmem:[%s8839_s5 + $0x748] sm:$0xff]  ;;  %v2537_v22 = vld [vmem:[%s8839_s5 + $0xed8] sm:$0xff] }
 0x34d   : > { %5502 = vmatpush3.bf16.msra.mxu0 %v5501_v40  ;;  %v2511_v40 = vld [vmem:[%s8839_s5 + $0xe08] sm:$0xff]  ;;  %v5561_v33 = vpack.c.bf16 %v2295_v30, %v2294_v21  ;;  %v2524_v21 = vld [vmem:[%s8839_s5 + $0xe70] sm:$0xff] }
 0x34e   : > { %5726 = vmatpush3.bf16.msra.mxu1 %v5725_v36  ;;  %5504 = vmatprep.subr.bf16.mxu0 %v5503_v5  ;;  %v2304_v36 = vld [vmem:[%s8839_s5 + $0x790] sm:$0xff]  ;;  %v2305_v5 = vld [vmem:[%s8839_s5 + $0x798] sm:$0xff]  ;;  %v2519_v42 = vld [vmem:[%s8839_s5 + $0xe48] sm:$0xff] }
 0x34f   : > { %5728 = vmatprep.subr.bf16.mxu1 %v5727_v11  ;;  %v5769_v11 = vpack.c.bf16 %v2511_v40, %v2510_v20  ;;  %v5547_v37 = vpack.c.bf16 %v2305_v5, %v2304_v36  ;;  %v2517_v20 = vld [vmem:[%s8839_s5 + $0xe38] sm:$0xff]  ;;  %v2310_v40 = vld [vmem:[%s8839_s5 + $0x7c0] sm:$0xff]  ;;  %v2311_v36 = vld [vmem:[%s8839_s5 + $0x7c8] sm:$0xff] }
 0x350   : > { %v2534_v5 = vld [vmem:[%s8839_s5 + $0xec0] sm:$0xff] }
 0x351   : > { %5506 = vmatpush3.bf16.msra.mxu0 %v5505_v15  ;;  %v2306_v15 = vld [vmem:[%s8839_s5 + $0x7a0] sm:$0xff] }
 0x352   : > { %5730 = vmatpush3.bf16.msra.mxu1 %v5729_v57  ;;  %5508 = vmatprep.subr.bf16.mxu0 %v5507_v41  ;;  %v2307_v57 = vld [vmem:[%s8839_s5 + $0x7a8] sm:$0xff]  ;;  %v5771_v41 = vpack.c.bf16 %v2529_v47, %v2528_v54  ;;  %v5781_v47 = vpack.c.bf16 %v2517_v20, %v2516_v44  ;;  %v2317_v20 = vld [vmem:[%s8839_s5 + $0x7f8] sm:$0xff] }
 0x353   : > { %5732 = vmatprep.subr.bf16.mxu1 %v5731_v16  ;;  %v5551_v51 = vpack.c.bf16 %v2307_v57, %v2306_v15  ;;  %v2291_v16 = vld [vmem:[%s8839_s5 + $0x728] sm:$0xff]  ;;  %v2312_v15 = vld [vmem:[%s8839_s5 + $0x7d0] sm:$0xff]  ;;  %v2313_v57 = vld [vmem:[%s8839_s5 + $0x7d8] sm:$0xff] }
 0x354   : > { %v2523_v44 = vld [vmem:[%s8839_s5 + $0xe68] sm:$0xff] }
 0x355   : > { %5510 = vmatpush3.bf16.msra.mxu0 %v5509_v60 }
 0x356   : > { %5734 = vmatpush3.bf16.msra.mxu1 %v5733_v35  ;;  %5544 = vmatprep.subr.bf16.mxu0 %v5543_v56  ;;  %v2292_v56 = vld [vmem:[%s8839_s5 + $0x730] sm:$0xff] }
 0x357   : > { %5768 = vmatprep.subr.bf16.mxu1 %v5767_v38  ;;  %v5779_v38 = vpack.c.bf16 %v2533_v18, %v2532_v3  ;;  %v5557_v54 = vpack.c.bf16 %v2293_v14, %v2292_v56  ;;  %v2522_v56 = vld [vmem:[%s8839_s5 + $0xe60] sm:$0xff] }
 0x358   : > { %3604 = vmatmul.mubr.f32.vlgmr.msra.gmra.mrb[24].mxu0 %v2878_v55  ;;  %v2290_v55 = vld [vmem:[%s8839_s5 + $0x720] sm:$0xff] }
 0x359   : > { %4094 = vmatmul.mubr.f32.vlgmr.msra.gmra.mrb[40].mxu1 %v3149_v49  ;;  %5546 = vmatpush3.bf16.msra.mxu0 %v5545_v63  ;;  %v2514_v49 = vld [vmem:[%s8839_s5 + $0xe20] sm:$0xff]  ;;  %v5553_v29 = vpack.c.bf16 %v2291_v16, %v2290_v55  ;;  %v2535_v63 = vld [vmem:[%s8839_s5 + $0xec8] sm:$0xff]  ;;  %v2297_v55 = vld [vmem:[%s8839_s5 + $0x758] sm:$0xff] }
 0x35a   : > { %3743 = vmatprep.mubr.f32.mxu0 %v2884_v19  ;;  %5770 = vmatpush3.bf16.msra.mxu1 %v5769_v11  ;;  %v2308_v19 = vld [vmem:[%s8839_s5 + $0x7b0] sm:$0xff]  ;;  %v5777_v60 = vpack.c.bf16 %v2515_v53, %v2514_v49  ;;  %v5559_v11 = vpack.c.bf16 %v2311_v36, %v2310_v40  ;;  %v2315_v53 = vld [vmem:[%s8839_s5 + $0x7e8] sm:$0xff]  ;;  %v2541_v36 = vld [vmem:[%s8839_s5 + $0xef8] sm:$0xff] }
 0x35b   : > { %4233 = vmatprep.mubr.f32.mxu1 %v8860_v7  ;;  %5548 = vmatprep.subr.bf16.mxu0 %v5547_v37  ;;  %v5555_v35 = vpack.c.bf16 %v2309_v45, %v2308_v19  ;;  %v5783_v37 = vpack.c.bf16 %v2535_v63, %v2534_v5  ;;  %v2520_v16 = vld [vmem:[%s8839_s5 + $0xe50] sm:$0xff]  ;;  %v2521_v7 = vld [vmem:[%s8839_s5 + $0xe58] sm:$0xff]  ;;  %v2538_v19 = vld [vmem:[%s8839_s5 + $0xee0] sm:$0xff]  ;;  %v5793_v63 = vpack.c.bf16 %v2523_v44, %v2522_v56 }
 0x35c   : > { %5772 = vmatprep.subr.bf16.mxu1 %v5771_v41  ;;  %v2536_v41 = vld [vmem:[%s8839_s5 + $0xed0] sm:$0xff]  ;;  %v2539_v45 = vld [vmem:[%s8839_s5 + $0xee8] sm:$0xff]  ;;  %v5789_v18 = vpack.c.bf16 %v2521_v7, %v2520_v16  ;;  %v2370_v7 = vld [vmem:[%s8839_s5 + $0x9a0] sm:$0xff] }
 0x35d   : > { %5550 = vmatpush3.bf16.msra.mxu0 %v5549_v13  ;;  %v5785_v13 = vpack.c.bf16 %v2519_v42, %v2518_v39  ;;  %v5787_v49 = vpack.c.bf16 %v2537_v22, %v2536_v41  ;;  %v5791_v14 = vpack.c.bf16 %v2539_v45, %v2538_v19  ;;  %v2540_v40 = vld [vmem:[%s8839_s5 + $0xef0] sm:$0xff]  ;;  %v2525_v39 = vld [vmem:[%s8839_s5 + $0xe78] sm:$0xff]  ;;  %v2367_v42 = vld [vmem:[%s8839_s5 + $0x988] sm:$0xff] }
 0x35e   : > { %5774 = vmatpush3.bf16.msra.mxu1 %v5773_v6  ;;  %5552 = vmatprep.subr.bf16.mxu0 %v5551_v51  ;;  %v5563_v6 = vpack.c.bf16 %v2313_v57, %v2312_v15  ;;  %v2296_v51 = vld [vmem:[%s8839_s5 + $0x750] sm:$0xff]  ;;  %v5795_v30 = vpack.c.bf16 %v2541_v36, %v2540_v40  ;;  %v5797_v57 = vpack.c.bf16 %v2525_v39, %v2524_v21  ;;  %v2350_v22 = vld [vmem:[%s8839_s5 + $0x900] sm:$0xff]  ;;  %v2359_v56 = vld [vmem:[%s8839_s5 + $0x948] sm:$0xff] }
 0x35f   : > { %5776 = vmatprep.subr.bf16.mxu1 %v5775_v25  ;;  %v2314_v25 = vld [vmem:[%s8839_s5 + $0x7e0] sm:$0xff]  ;;  %v5565_v3 = vpack.c.bf16 %v2297_v55, %v2296_v51  ;;  %v2352_v16 = vld [vmem:[%s8839_s5 + $0x910] sm:$0xff]  ;;  %v2377_v44 = vld [vmem:[%s8839_s5 + $0x9d8] sm:$0xff] }
 0x360   : > { %v2354_v45 = vld [vmem:[%s8839_s5 + $0x920] sm:$0xff]  ;;  %v2360_v40 = vld [vmem:[%s8839_s5 + $0x950] sm:$0xff]  ;;  %v2361_v36 = vld [vmem:[%s8839_s5 + $0x958] sm:$0xff] }
 0x361   : > { %5554 = vmatpush3.bf16.msra.mxu0 %v5553_v29  ;;  %v5567_v29 = vpack.c.bf16 %v2315_v53, %v2314_v25  ;;  %v2371_v25 = vld [vmem:[%s8839_s5 + $0x9a8] sm:$0xff]  ;;  %v5617_v26 = vpack.c.bf16 %v2355_v24, %v2354_v45  ;;  %v2381_v39 = vld [vmem:[%s8839_s5 + $0x9f8] sm:$0xff] }
 0x362   : > { %5778 = vmatpush3.bf16.msra.mxu1 %v5777_v60  ;;  %5556 = vmatprep.subr.bf16.mxu0 %v5555_v35  ;;  %v2298_v60 = vld [vmem:[%s8839_s5 + $0x760] sm:$0xff]  ;;  %v2299_v35 = vld [vmem:[%s8839_s5 + $0x768] sm:$0xff]  ;;  %v5615_v19 = vpack.c.bf16 %v2371_v25, %v2370_v7  ;;  %v2416_v25 = vld [vmem:[%s8839_s5 + $0xb10] sm:$0xff] }
 0x363   : > { %5780 = vmatprep.subr.bf16.mxu1 %v5779_v38  ;;  %v2316_v38 = vld [vmem:[%s8839_s5 + $0x7f0] sm:$0xff]  ;;  %v5569_v5 = vpack.c.bf16 %v2299_v35, %v2298_v60  ;;  %v2358_v35 = vld [vmem:[%s8839_s5 + $0x940] sm:$0xff]  ;;  %v2363_v21 = vld [vmem:[%s8839_s5 + $0x968] sm:$0xff] }
 0x364   : > { %v2435_v45 = vld [vmem:[%s8839_s5 + $0xba8] sm:$0xff] }
 0x365   : > { %5558 = vmatpush3.bf16.msra.mxu0 %v5557_v54  ;;  %v5571_v54 = vpack.c.bf16 %v2317_v20, %v2316_v38  ;;  %v5625_v38 = vpack.c.bf16 %v2359_v56, %v2358_v35  ;;  %v2441_v35 = vld [vmem:[%s8839_s5 + $0xbd8] sm:$0xff] }
 0x366   : > { %5782 = vmatpush3.bf16.msra.mxu1 %v5781_v47  ;;  %5560 = vmatprep.subr.bf16.mxu0 %v5559_v11  ;;  %v2300_v47 = vld [vmem:[%s8839_s5 + $0x770] sm:$0xff]  ;;  %v2301_v11 = vld [vmem:[%s8839_s5 + $0x778] sm:$0xff] }
 0x367   : > { %5784 = vmatprep.subr.bf16.mxu1 %v5783_v37  ;;  %v2366_v37 = vld [vmem:[%s8839_s5 + $0x980] sm:$0xff]  ;;  %v5573_v15 = vpack.c.bf16 %v2301_v11, %v2300_v47 }
 0x368   : > { %v5607_v41 = vpack.c.bf16 %v2367_v42, %v2366_v37  ;;  %v2362_v11 = vld [vmem:[%s8839_s5 + $0x960] sm:$0xff] }
 0x369   : > { %5562 = vmatpush3.bf16.msra.mxu0 %v5561_v33  ;;  %v2351_v33 = vld [vmem:[%s8839_s5 + $0x908] sm:$0xff]  ;;  %v5633_v37 = vpack.c.bf16 %v2363_v21, %v2362_v11  ;;  %v2444_v21 = vld [vmem:[%s8839_s5 + $0xbf0] sm:$0xff] }
 0x36a   : > { %5786 = vmatpush3.bf16.msra.mxu1 %v5785_v13  ;;  %5564 = vmatprep.subr.bf16.mxu0 %v5563_v6  ;;  %v2368_v13 = vld [vmem:[%s8839_s5 + $0x990] sm:$0xff]  ;;  %v2369_v6 = vld [vmem:[%s8839_s5 + $0x998] sm:$0xff]  ;;  %v5609_v51 = vpack.c.bf16 %v2351_v33, %v2350_v22  ;;  %v2431_v22 = vld [vmem:[%s8839_s5 + $0xb88] sm:$0xff] }
 0x36b   : > { %5788 = vmatprep.subr.bf16.mxu1 %v5787_v49  ;;  %v5611_v55 = vpack.c.bf16 %v2369_v6, %v2368_v13  ;;  %v2353_v49 = vld [vmem:[%s8839_s5 + $0x918] sm:$0xff]  ;;  %v2414_v6 = vld [vmem:[%s8839_s5 + $0xb00] sm:$0xff] }
 0x36c   : > { %v5613_v53 = vpack.c.bf16 %v2353_v49, %v2352_v16  ;;  %v2433_v16 = vld [vmem:[%s8839_s5 + $0xb98] sm:$0xff] }
 0x36d   : > { %5566 = vmatpush3.bf16.msra.mxu0 %v5565_v3  ;;  %v2374_v3 = vld [vmem:[%s8839_s5 + $0x9c0] sm:$0xff] }
 0x36e   : > { %5790 = vmatpush3.bf16.msra.mxu1 %v5789_v18  ;;  %5568 = vmatprep.subr.bf16.mxu0 %v5567_v29  ;;  %v2375_v18 = vld [vmem:[%s8839_s5 + $0x9c8] sm:$0xff] }
 0x36f   : > { %5792 = vmatprep.subr.bf16.mxu1 %v5791_v14  ;;  %v5623_v60 = vpack.c.bf16 %v2375_v18, %v2374_v3  ;;  %v2376_v14 = vld [vmem:[%s8839_s5 + $0x9d0] sm:$0xff]  ;;  %v2422_v18 = vld [vmem:[%s8839_s5 + $0xb40] sm:$0xff] }
 0x370   : > { %v5627_v20 = vpack.c.bf16 %v2377_v44, %v2376_v14  ;;  %v2424_v44 = vld [vmem:[%s8839_s5 + $0xb50] sm:$0xff] }
 0x371   : > { %5570 = vmatpush3.bf16.msra.mxu0 %v5569_v5  ;;  %v2378_v5 = vld [vmem:[%s8839_s5 + $0x9e0] sm:$0xff] }
 0x372   : > { %5794 = vmatpush3.bf16.msra.mxu1 %v5793_v63  ;;  %5572 = vmatprep.subr.bf16.mxu0 %v5571_v54  ;;  %v2379_v63 = vld [vmem:[%s8839_s5 + $0x9e8] sm:$0xff]  ;;  %v5629_v54 = vpack.c.bf16 %v2361_v36, %v2360_v40 }
 0x373   : > { %5796 = vmatprep.subr.bf16.mxu1 %v5795_v30  ;;  %v5631_v47 = vpack.c.bf16 %v2379_v63, %v2378_v5  ;;  %v2380_v30 = vld [vmem:[%s8839_s5 + $0x9f0] sm:$0xff]  ;;  %v2443_v40 = vld [vmem:[%s8839_s5 + $0xbe8] sm:$0xff]  ;;  %v2426_v63 = vld [vmem:[%s8839_s5 + $0xb60] sm:$0xff] }
 0x374   : > { %v5635_v42 = vpack.c.bf16 %v2381_v39, %v2380_v30  ;;  %v2445_v30 = vld [vmem:[%s8839_s5 + $0xbf8] sm:$0xff] }
 0x375   : > { %5574 = vmatpush3.bf16.msra.mxu0 %v5573_v15  ;;  %v2364_v15 = vld [vmem:[%s8839_s5 + $0x970] sm:$0xff] }
 0x376   : > { %5798 = vmatpush3.bf16.msra.mxu1 %v5797_v57  ;;  %5608 = vmatprep.subr.bf16.mxu0 %v5607_v41  ;;  %v2365_v57 = vld [vmem:[%s8839_s5 + $0x978] sm:$0xff]  ;;  %v2430_v41 = vld [vmem:[%s8839_s5 + $0xb80] sm:$0xff] }
 0x377   : > { %v5637_v33 = vpack.c.bf16 %v2365_v57, %v2364_v15  ;;  %v5671_v13 = vpack.c.bf16 %v2431_v22, %v2430_v41  ;;  %v5699_v41 = vpack.c.bf16 %v2445_v30, %v2444_v21  ;;  %v2428_v22 = vld [vmem:[%s8839_s5 + $0xb70] sm:$0xff]  ;;  %v2509_v30 = vld [vmem:[%s8839_s5 + $0xdf8] sm:$0xff] }
 0x378   : > { %3744 = vmatmul.mubr.f32.vlgmr.msra.gmra.mrb[26].mxu0 %v2880_v1  ;;  %v2373_v1 = vld [vmem:[%s8839_s5 + $0x9b8] sm:$0xff]  ;;  %v2508_v21 = vld [vmem:[%s8839_s5 + $0xdf0] sm:$0xff] }
 0x379   : > { %4234 = vmatmul.mubr.f32.vlgmr.msra.gmra.mrb[42].mxu1 %v3151_v61  ;;  %5610 = vmatpush3.bf16.msra.mxu0 %v5609_v51  ;;  %v5619_v2 = vpack.c.bf16 %v2373_v1, %v2372_v10  ;;  %v2357_v61 = vld [vmem:[%s8839_s5 + $0x938] sm:$0xff]  ;;  %v2415_v51 = vld [vmem:[%s8839_s5 + $0xb08] sm:$0xff]  ;;  %v2418_v1 = vld [vmem:[%s8839_s5 + $0xb20] sm:$0xff] }
 0x37a   : > { %3883 = vmatprep.mubr.f32.mxu0 %v3018_v59  ;;  %5612 = vmatprep.subr.bf16.mxu0 %v5611_v55  ;;  %v2356_v59 = vld [vmem:[%s8839_s5 + $0x930] sm:$0xff]  ;;  %v5673_v49 = vpack.c.bf16 %v2415_v51, %v2414_v6  ;;  %v2495_v6 = vld [vmem:[%s8839_s5 + $0xd88] sm:$0xff] }
 0x37b   : > { %v5621_v29 = vpack.c.bf16 %v2357_v61, %v2356_v59  ;;  %v2432_v55 = vld [vmem:[%s8839_s5 + $0xb90] sm:$0xff]  ;;  %v2439_v59 = vld [vmem:[%s8839_s5 + $0xbc8] sm:$0xff] }
 0x37c   : > { %v5675_v7 = vpack.c.bf16 %v2433_v16, %v2432_v55  ;;  %v2478_v16 = vld [vmem:[%s8839_s5 + $0xd00] sm:$0xff] }
 0x37d   : > { %5614 = vmatpush3.bf16.msra.mxu0 %v5613_v53  ;;  %v2417_v53 = vld [vmem:[%s8839_s5 + $0xb18] sm:$0xff] }
 0x37e   : > { %5616 = vmatprep.subr.bf16.mxu0 %v5615_v19  ;;  %v2434_v19 = vld [vmem:[%s8839_s5 + $0xba0] sm:$0xff]  ;;  %v5677_v24 = vpack.c.bf16 %v2417_v53, %v2416_v25  ;;  %v2497_v25 = vld [vmem:[%s8839_s5 + $0xd98] sm:$0xff] }
 0x37f   : > { %v5679_v10 = vpack.c.bf16 %v2435_v45, %v2434_v19  ;;  %v2480_v45 = vld [vmem:[%s8839_s5 + $0xd10] sm:$0xff] }
 0x381   : > { %5618 = vmatpush3.bf16.msra.mxu0 %v5617_v26  ;;  %v2419_v26 = vld [vmem:[%s8839_s5 + $0xb28] sm:$0xff] }
 0x382   : > { %5620 = vmatprep.subr.bf16.mxu0 %v5619_v2  ;;  %v5681_v0 = vpack.c.bf16 %v2419_v26, %v2418_v1  ;;  %v2438_v2 = vld [vmem:[%s8839_s5 + $0xbc0] sm:$0xff]  ;;  %v2499_v1 = vld [vmem:[%s8839_s5 + $0xda8] sm:$0xff]  ;;  %v8861_v26 = vcombine.high %v7389_v58, %v7392_v28  ;;  %v5747_v28 = vpack.c.bf16 %v2501_v32, %v2500_v27 }
 0x383   : > { %v5687_v3 = vpack.c.bf16 %v2439_v59, %v2438_v2  ;;  %v2503_v2 = vld [vmem:[%s8839_s5 + $0xdc8] sm:$0xff]  ;;  %v2546_v32 = vld [vmem:[%s8839_s5 + $0xf20] sm:$0xff] }
 0x385   : > { %5622 = vmatpush3.bf16.msra.mxu0 %v5621_v29  ;;  %v2423_v29 = vld [vmem:[%s8839_s5 + $0xb48] sm:$0xff] }
 0x386   : > { %5624 = vmatprep.subr.bf16.mxu0 %v5623_v60  ;;  %v2440_v60 = vld [vmem:[%s8839_s5 + $0xbd0] sm:$0xff]  ;;  %v5689_v56 = vpack.c.bf16 %v2423_v29, %v2422_v18  ;;  %v2487_v18 = vld [vmem:[%s8839_s5 + $0xd48] sm:$0xff] }
 0x387   : > { %v5691_v14 = vpack.c.bf16 %v2441_v35, %v2440_v60  ;;  %v2504_v29 = vld [vmem:[%s8839_s5 + $0xdd0] sm:$0xff]  ;;  %v2505_v60 = vld [vmem:[%s8839_s5 + $0xdd8] sm:$0xff] }
 0x389   : > { %5626 = vmatpush3.bf16.msra.mxu0 %v5625_v38  ;;  %v2425_v38 = vld [vmem:[%s8839_s5 + $0xb58] sm:$0xff] }
 0x38a   : > { %5628 = vmatprep.subr.bf16.mxu0 %v5627_v20  ;;  %v2442_v20 = vld [vmem:[%s8839_s5 + $0xbe0] sm:$0xff]  ;;  %v5693_v36 = vpack.c.bf16 %v2425_v38, %v2424_v44  ;;  %v2489_v44 = vld [vmem:[%s8839_s5 + $0xd58] sm:$0xff] }
 0x38b   : > { %v5695_v5 = vpack.c.bf16 %v2443_v40, %v2442_v20  ;;  %v2506_v38 = vld [vmem:[%s8839_s5 + $0xde0] sm:$0xff]  ;;  %v2507_v20 = vld [vmem:[%s8839_s5 + $0xde8] sm:$0xff] }
 0x38d   : > { %5630 = vmatpush3.bf16.msra.mxu0 %v5629_v54  ;;  %v2427_v54 = vld [vmem:[%s8839_s5 + $0xb68] sm:$0xff] }
 0x38e   : > { %5632 = vmatprep.subr.bf16.mxu0 %v5631_v47  ;;  %v5697_v57 = vpack.c.bf16 %v2427_v54, %v2426_v63  ;;  %v2490_v63 = vld [vmem:[%s8839_s5 + $0xd60] sm:$0xff]  ;;  %v2491_v54 = vld [vmem:[%s8839_s5 + $0xd68] sm:$0xff] }
 0x391   : > { %5634 = vmatpush3.bf16.msra.mxu0 %v5633_v37 }
 0x392   : > { %5636 = vmatprep.subr.bf16.mxu0 %v5635_v42 }
 0x395   : > { %5638 = vmatpush3.bf16.msra.mxu0 %v5637_v33  ;;  %v2429_v33 = vld [vmem:[%s8839_s5 + $0xb78] sm:$0xff] }
 0x396   : > { %5672 = vmatprep.subr.bf16.mxu0 %v5671_v13  ;;  %v2494_v13 = vld [vmem:[%s8839_s5 + $0xd80] sm:$0xff]  ;;  %v5701_v51 = vpack.c.bf16 %v2429_v33, %v2428_v22  ;;  %v5761_v33 = vpack.c.bf16 %v2491_v54, %v2490_v63  ;;  %v2572_v63 = vld [vmem:[%s8839_s5 + $0xff0] sm:$0xff]  ;;  %v2573_v54 = vld [vmem:[%s8839_s5 + $0xff8] sm:$0xff] }
 0x397   : > { %v5735_v55 = vpack.c.bf16 %v2495_v6, %v2494_v13  ;;  %v5763_v13 = vpack.c.bf16 %v2509_v30, %v2508_v21  ;;  %v2492_v6 = vld [vmem:[%s8839_s5 + $0xd70] sm:$0xff] }
 0x398   : > { %3884 = vmatmul.mubr.f32.vlgmr.msra.gmra.mrb[28].mxu0 %v3014_v8  ;;  %v2420_v8 = vld [vmem:[%s8839_s5 + $0xb30] sm:$0xff] }
 0x399   : > { %5674 = vmatpush3.bf16.msra.mxu0 %v5673_v49  ;;  %4023 = vmatprep.mubr.f32.mxu0 %v3020_v12  ;;  %v2421_v12 = vld [vmem:[%s8839_s5 + $0xb38] sm:$0xff]  ;;  %v2479_v49 = vld [vmem:[%s8839_s5 + $0xd08] sm:$0xff] }
 0x39a   : > { %5676 = vmatprep.subr.bf16.mxu0 %v5675_v7  ;;  %v5685_v61 = vpack.c.bf16 %v2421_v12, %v2420_v8  ;;  %v2496_v7 = vld [vmem:[%s8839_s5 + $0xd90] sm:$0xff]  ;;  %v5737_v53 = vpack.c.bf16 %v2479_v49, %v2478_v16  ;;  %v2485_v8 = vld [vmem:[%s8839_s5 + $0xd38] sm:$0xff]  ;;  %v2502_v12 = vld [vmem:[%s8839_s5 + $0xdc0] sm:$0xff] }
 0x39b   : > { %v5739_v19 = vpack.c.bf16 %v2497_v25, %v2496_v7  ;;  %v2559_v16 = vld [vmem:[%s8839_s5 + $0xf88] sm:$0xff]  ;;  %v2542_v25 = vld [vmem:[%s8839_s5 + $0xf00] sm:$0xff] }
 0x39d   : > { %5678 = vmatpush3.bf16.msra.mxu0 %v5677_v24  ;;  %v2481_v24 = vld [vmem:[%s8839_s5 + $0xd18] sm:$0xff] }
 0x39e   : > { %5680 = vmatprep.subr.bf16.mxu0 %v5679_v10  ;;  %v2498_v10 = vld [vmem:[%s8839_s5 + $0xda0] sm:$0xff]  ;;  %v5741_v9 = vpack.c.bf16 %v2481_v24, %v2480_v45  ;;  %v2561_v45 = vld [vmem:[%s8839_s5 + $0xf98] sm:$0xff] }
 0x39f   : > { %v5743_v34 = vpack.c.bf16 %v2499_v1, %v2498_v10  ;;  %v2544_v1 = vld [vmem:[%s8839_s5 + $0xf10] sm:$0xff] }
 0x3a1   : > { %5682 = vmatpush3.bf16.msra.mxu0 %v5681_v0  ;;  %v2482_v0 = vld [vmem:[%s8839_s5 + $0xd20] sm:$0xff] }
 0x3a2   : > { %5684 = vmatprep.subr.bf16.mxu0 %v5683_v52  ;;  %v2483_v52 = vld [vmem:[%s8839_s5 + $0xd28] sm:$0xff] }
 0x3a3   : > { %v5745_v58 = vpack.c.bf16 %v2483_v52, %v2482_v0  ;;  %v8862_v0 = vcombine.high %v7450_v23, %v7456_v17  ;;  %v2564_v23 = vld [vmem:[%s8839_s5 + $0xfb0] sm:$0xff]  ;;  %v2565_v17 = vld [vmem:[%s8839_s5 + $0xfb8] sm:$0xff] }
 0x3a4   : > { %v5811_v43 = vpack.c.bf16 %v2565_v17, %v2564_v23 }
 0x3a5   : > { %5686 = vmatpush3.bf16.msra.mxu0 %v5685_v61  ;;  %v5751_v61 = vpack.c.bf16 %v2503_v2, %v2502_v12 }
 0x3a6   : > { %5688 = vmatprep.subr.bf16.mxu0 %v5687_v3  ;;  %v2486_v3 = vld [vmem:[%s8839_s5 + $0xd40] sm:$0xff] }
 0x3a7   : > { %v5753_v35 = vpack.c.bf16 %v2487_v18, %v2486_v3  ;;  %v2568_v3 = vld [vmem:[%s8839_s5 + $0xfd0] sm:$0xff]  ;;  %v2569_v18 = vld [vmem:[%s8839_s5 + $0xfd8] sm:$0xff] }
 0x3a9   : > { %5690 = vmatpush3.bf16.msra.mxu0 %v5689_v56  ;;  %v5755_v56 = vpack.c.bf16 %v2505_v60, %v2504_v29  ;;  %v5819_v60 = vpack.c.bf16 %v2569_v18, %v2568_v3 }
 0x3aa   : > { %5692 = vmatprep.subr.bf16.mxu0 %v5691_v14  ;;  %v4599_v47 = vpop.f32.mrb[16].mxu0  ;;  %v4739_v11 = vpop.f32.mrb[32].mxu1  ;;  %v2488_v14 = vld [vmem:[%s8839_s5 + $0xd50] sm:$0xff] }
 0x3ab   : > { %v4600_v39 = vpop.f32.mrb[17].mxu0  ;;  %v4740_v37 = vpop.f32.mrb[33].mxu1  ;;  %v5757_v40 = vpack.c.bf16 %v2489_v44, %v2488_v14  ;;  %v2570_v14 = vld [vmem:[%s8839_s5 + $0xfe0] sm:$0xff]  ;;  %v2571_v44 = vld [vmem:[%s8839_s5 + $0xfe8] sm:$0xff] }
 0x3ac   : > { %v8559_v42 = vadd.f32 %v4600_v39, %v4599_v47  ;;  %v8561_v15 = vadd.f32 %v4740_v37, %v4739_v11 }
 0x3ad   : > { %5694 = vmatpush3.bf16.msra.mxu0 %v5693_v36  ;;  %v4508_v36 = vld [vmem:[%s8840_s6] ss:$0 sm:$0xff] }
 0x3ae   : > { %5696 = vmatprep.subr.bf16.mxu0 %v5695_v5  ;;  %v5759_v5 = vpack.c.bf16 %v2507_v20, %v2506_v38  ;;  %v5823_v20 = vpack.c.bf16 %v2571_v44, %v2570_v14 }
 0x3b1   : > { %5698 = vmatpush3.bf16.msra.mxu0 %v5697_v57  ;;  %v3256_v57 = vadd.f32 %v8559_v42, %v4508_v36  ;;  %v2558_v42 = vld [vmem:[%s8839_s5 + $0xf80] sm:$0xff]  ;;  %v2555_v36 = vld [vmem:[%s8839_s5 + $0xf68] sm:$0xff] }
 0x3b2   : > { %5700 = vmatprep.subr.bf16.mxu0 %v5699_v41  ;;  %v5799_v7 = vpack.c.bf16 %v2559_v16, %v2558_v42 }
 0x3b5   : > { %5702 = vmatpush3.bf16.msra.mxu0 %v5701_v51  ;;  %v2493_v51 = vld [vmem:[%s8839_s5 + $0xd78] sm:$0xff] }
 0x3b6   : > { %5736 = vmatprep.subr.bf16.mxu0 %v5735_v55  ;;  %v5765_v49 = vpack.c.bf16 %v2493_v51, %v2492_v6 }
 0x3b8   : > { %4024 = vmatmul.mubr.f32.vlgmr.msra.gmra.mrb[30].mxu0 %v3016_v48  ;;  %v2484_v48 = vld [vmem:[%s8839_s5 + $0xd30] sm:$0xff] }
 0x3b9   : > { %5738 = vmatpush3.bf16.msra.mxu0 %v5737_v53  ;;  %4163 = vmatprep.mubr.f32.mxu0 %v8861_v26  ;;  %v5749_v59 = vpack.c.bf16 %v2485_v8, %v2484_v48  ;;  %v2543_v53 = vld [vmem:[%s8839_s5 + $0xf08] sm:$0xff]  ;;  %v2545_v26 = vld [vmem:[%s8839_s5 + $0xf18] sm:$0xff]  ;;  %v2566_v48 = vld [vmem:[%s8839_s5 + $0xfc0] sm:$0xff] }
 0x3ba   : > { %5740 = vmatprep.subr.bf16.mxu0 %v5739_v19  ;;  %v2560_v19 = vld [vmem:[%s8839_s5 + $0xf90] sm:$0xff]  ;;  %v5801_v24 = vpack.c.bf16 %v2543_v53, %v2542_v25  ;;  %v5805_v52 = vpack.c.bf16 %v2545_v26, %v2544_v1  ;;  %v2567_v8 = vld [vmem:[%s8839_s5 + $0xfc8] sm:$0xff] }
 0x3bb   : > { %v5803_v10 = vpack.c.bf16 %v2561_v45, %v2560_v19  ;;  %v5815_v2 = vpack.c.bf16 %v2567_v8, %v2566_v48 }
 0x3bd   : > { %5742 = vmatpush3.bf16.msra.mxu0 %v5741_v9  ;;  %v2562_v9 = vld [vmem:[%s8839_s5 + $0xfa0] sm:$0xff] }
 0x3be   : > { %5744 = vmatprep.subr.bf16.mxu0 %v5743_v34  ;;  %v2563_v34 = vld [vmem:[%s8839_s5 + $0xfa8] sm:$0xff] }
 0x3bf   : > { %v5807_v27 = vpack.c.bf16 %v2563_v34, %v2562_v9 }
 0x3c1   : > { %5746 = vmatpush3.bf16.msra.mxu0 %v5745_v58  ;;  %v2547_v58 = vld [vmem:[%s8839_s5 + $0xf28] sm:$0xff] }
 0x3c2   : > { %5748 = vmatprep.subr.bf16.mxu0 %v5747_v28  ;;  %v5809_v62 = vpack.c.bf16 %v2547_v58, %v2546_v32  ;;  %v2549_v28 = vld [vmem:[%s8839_s5 + $0xf38] sm:$0xff] }
 0x3c5   : > { %5750 = vmatpush3.bf16.msra.mxu0 %v5749_v59  ;;  %v2550_v59 = vld [vmem:[%s8839_s5 + $0xf40] sm:$0xff] }
 0x3c6   : > { %5752 = vmatprep.subr.bf16.mxu0 %v5751_v61  ;;  %v2551_v61 = vld [vmem:[%s8839_s5 + $0xf48] sm:$0xff] }
 0x3c7   : > { %v5817_v29 = vpack.c.bf16 %v2551_v61, %v2550_v59 }
 0x3c9   : > { %5754 = vmatpush3.bf16.msra.mxu0 %v5753_v35  ;;  %v2552_v35 = vld [vmem:[%s8839_s5 + $0xf50] sm:$0xff] }
 0x3ca   : > { %5756 = vmatprep.subr.bf16.mxu0 %v5755_v56  ;;  %v2553_v56 = vld [vmem:[%s8839_s5 + $0xf58] sm:$0xff] }
 0x3cb   : > { %v4634_v47 = vpop.f32.mrb[18].mxu0  ;;  %v4809_v11 = vpop.f32.mrb[34].mxu1  ;;  %v5821_v38 = vpack.c.bf16 %v2553_v56, %v2552_v35 }
 0x3cc   : > { %v4635_v39 = vpop.f32.mrb[19].mxu0  ;;  %v4810_v37 = vpop.f32.mrb[35].mxu1 }
 0x3cd   : > { %v4636_v41 = vadd.f32 %v4635_v39, %v4634_v47  ;;  %v8669_v22 = vadd.f32 %v4810_v37, %v4809_v11  ;;  %5758 = vmatpush3.bf16.msra.mxu0 %v5757_v40  ;;  %v2554_v40 = vld [vmem:[%s8839_s5 + $0xf60] sm:$0xff] }
 0x3ce   : > { %5760 = vmatprep.subr.bf16.mxu0 %v5759_v5  ;;  %v5825_v39 = vpack.c.bf16 %v2555_v36, %v2554_v40 }
 0x3cf   : > { %v8677_v55 = vadd.f32 %v4636_v41, %v3256_v57  ;;  %v5827_v57 = vpack.c.bf16 %v2573_v54, %v2572_v63  ;;  %v2556_v41 = vld [vmem:[%s8839_s5 + $0xf70] sm:$0xff] }
 0x3d1   : > { %5762 = vmatpush3.bf16.msra.mxu0 %v5761_v33  ;;  %v2557_v33 = vld [vmem:[%s8839_s5 + $0xf78] sm:$0xff] }
 0x3d2   : > { %5764 = vmatprep.subr.bf16.mxu0 %v5763_v13  ;;  %v5829_v6 = vpack.c.bf16 %v2557_v33, %v2556_v41 }
 0x3d5   : > { %5766 = vmatpush3.bf16.msra.mxu0 %v5765_v49 }
 0x3d6   : > { %5800 = vmatprep.subr.bf16.mxu0 %v5799_v7 }
 0x3d8   : > { %4164 = vmatmul.mubr.f32.vlgmr.msra.gmra.mrb[32].mxu0 %v8862_v0 }
 0x3d9   : > { %5802 = vmatpush3.bf16.msra.mxu0 %v5801_v24  ;;  %4303 = vmatprep.mubr.f32.mxu0 %v3156_v31  ;;  %v2548_v31 = vld [vmem:[%s8839_s5 + $0xf30] sm:$0xff] }
 0x3da   : > { %5804 = vmatprep.subr.bf16.mxu0 %v5803_v10  ;;  %v5813_v12 = vpack.c.bf16 %v2549_v28, %v2548_v31 }
 0x3dd   : > { %5806 = vmatpush3.bf16.msra.mxu0 %v5805_v52 }
 0x3de   : > { %5808 = vmatprep.subr.bf16.mxu0 %v5807_v27 }
 0x3e1   : > { %5810 = vmatpush3.bf16.msra.mxu0 %v5809_v62 }
 0x3e2   : > { %5812 = vmatprep.subr.bf16.mxu0 %v5811_v43 }
 0x3e5   : > { %5814 = vmatpush3.bf16.msra.mxu0 %v5813_v12 }
 0x3e6   : > { %5816 = vmatprep.subr.bf16.mxu0 %v5815_v2 }
 0x3e9   : > { %5818 = vmatpush3.bf16.msra.mxu0 %v5817_v29 }
 0x3ea   : > { %5820 = vmatprep.subr.bf16.mxu0 %v5819_v60 }
 0x3eb   : > { %v4669_v5 = vpop.f32.mrb[20].mxu0 }
 0x3ec   : > { %v4879_v47 = vpop.f32.mrb[36].mxu1  ;;  %v4670_v11 = vpop.f32.mrb[21].mxu0 }
 0x3ed   : > { %v4671_v21 = vadd.f32 %v4670_v11, %v4669_v5  ;;  %v4880_v30 = vpop.f32.mrb[37].mxu1  ;;  %5822 = vmatpush3.bf16.msra.mxu0 %v5821_v38 }
 0x3ee   : > { %v4881_v37 = vadd.f32 %v4880_v30, %v4879_v47  ;;  %5824 = vmatprep.subr.bf16.mxu0 %v5823_v20 }
 0x3ef   : > { %v3396_v13 = vadd.f32 %v4671_v21, %v8677_v55 }
 0x3f1   : > { %5826 = vmatpush3.bf16.msra.mxu0 %v5825_v39 }
 0x3f2   : > { %5828 = vmatprep.subr.bf16.mxu0 %v5827_v57 }
 0x3f5   : > { %5830 = vmatpush3.bf16.msra.mxu0 %v5829_v6 }
 0x3f8   : > { %4304 = vmatmul.mubr.f32.vlgmr.msra.gmra.mrb[34].mxu0 %v3152_v4 }
 0x40b   : > { %v4704_v51 = vpop.f32.mrb[22].mxu0 }
 0x40c   : > { %v4949_v42 = vpop.f32.mrb[38].mxu1  ;;  %v4705_v16 = vpop.f32.mrb[23].mxu0 }
 0x40d   : > { %v4706_v49 = vadd.f32 %v4705_v16, %v4704_v51  ;;  %v4950_v7 = vpop.f32.mrb[39].mxu1 }
 0x40e   : > { %v4951_v25 = vadd.f32 %v4950_v7, %v4949_v42 }
 0x40f   : > { %v3466_v53 = vadd.f32 %v4706_v49, %v3396_v13 }
 0x411   : > { %v3536_v19 = vadd.f32 %v8561_v15, %v3466_v53 }
 0x42b   : > { %v4774_v45 = vpop.f32.mrb[24].mxu0 }
 0x42c   : > { %v5019_v24 = vpop.f32.mrb[40].mxu1  ;;  %v4775_v55 = vpop.f32.mrb[25].mxu0 }
 0x42d   : > { %v4776_v10 = vadd.f32 %v4775_v55, %v4774_v45  ;;  %v5020_v1 = vpop.f32.mrb[41].mxu1 }
 0x42e   : > { %v5021_v26 = vadd.f32 %v5020_v1, %v5019_v24 }
 0x42f   : > { %v3606_v9 = vadd.f32 %v4776_v10, %v3536_v19 }
 0x431   : > { %v3676_v34 = vadd.f32 %v8669_v22, %v3606_v9 }
 0x44b   : > { %v4844_v46 = vpop.f32.mrb[26].mxu0 }
 0x44c   : > { %v5089_v50 = vpop.f32.mrb[42].mxu1  ;;  %v4845_v4 = vpop.f32.mrb[27].mxu0 }
 0x44d   : > { %v4846_v0 = vadd.f32 %v4845_v4, %v4844_v46  ;;  %v5090_v52 = vpop.f32.mrb[43].mxu1 }
 0x44e   : > { %v5091_v27 = vadd.f32 %v5090_v52, %v5089_v50 }
 0x44f   : > { %v3746_v32 = vadd.f32 %v4846_v0, %v3676_v34 }
 0x451   : > { %v3816_v58 = vadd.f32 %v4881_v37, %v3746_v32 }
 0x46b   : > { %v4914_v23 = vpop.f32.mrb[28].mxu0 }
 0x46c   : > { %v4915_v15 = vpop.f32.mrb[29].mxu0 }
 0x46d   : > { %v4916_v17 = vadd.f32 %v4915_v15, %v4914_v23 }
 0x46f   : > { %v3886_v62 = vadd.f32 %v4916_v17, %v3816_v58 }
 0x471   : > { %v3956_v43 = vadd.f32 %v4951_v25, %v3886_v62 }
 0x48b   : > { %v4984_v31 = vpop.f32.mrb[30].mxu0 }
 0x48c   : > { %v4985_v28 = vpop.f32.mrb[31].mxu0 }
 0x48d   : > { %v4986_v48 = vadd.f32 %v4985_v28, %v4984_v31 }
 0x48f   : > { %v4026_v8 = vadd.f32 %v4986_v48, %v3956_v43 }
 0x491   : > { %v4096_v22 = vadd.f32 %v5021_v26, %v4026_v8 }
 0x4ab   : > { %v5054_v12 = vpop.f32.mrb[32].mxu0 }
 0x4ac   : > { %v5055_v2 = vpop.f32.mrb[33].mxu0 }
 0x4ad   : > { %v5056_v59 = vadd.f32 %v5055_v2, %v5054_v12 }
 0x4af   : > { %v4166_v61 = vadd.f32 %v5056_v59, %v4096_v22 }
 0x4b1   : > { %v4236_v3 = vadd.f32 %v5091_v27, %v4166_v61 }
 0x4cb   : > { %v5124_v18 = vpop.f32.mrb[34].mxu0 }
 0x4cc   : > { %v5125_v29 = vpop.f32.mrb[35].mxu0 }
 0x4cd   : > { %v5126_v60 = vadd.f32 %v5125_v29, %v5124_v18 }
 0x4cf   : > { %v4306_v35 = vadd.f32 %v5126_v60, %v4236_v3 }
 0x4d1   : > { %4310 = vst.msk [vmem:[%s274_s8] sm:$0xff] %vm4309_vm1, %v4306_v35 }
 0x4d2   : > { %5983 = shalt.err (!%p5980_p3)
}
 0x4d3   : > { %s5984_s21 = scalar_lea.hbm %s8792_s16, 128  ;;  %s5988_s23 = scalar_lea.hbm %s8841_s7, 256 }
 0x4d4   : > { %p5985_p4 = scmp.ne.s32.totalorder %s8792_s16, %s5984_s21  ;;  %p5989_p9 = scmp.lt.u32.totalorder %s8792_s16, %s8841_s7 }
 0x4d5   : > { %p5990_p10 = scmp.lt.u32.totalorder %s5988_s23, %s5984_s21  ;;  %p5992_p12 = scmp.lt.u32.totalorder %s5984_s21, %s8792_s16 }
 0x4d6   : > { %p5986_p7 = pnand %p5985_p4, %p6116_p5 }
 0x4d7   : > { %p5991_p11 = por %p5990_p10, %p5989_p9 }
 0x4d8   : > { %p5987_p8 = pneg %p5986_p7 }
 0x4d9   : > { %p5993_p13 = por %p5992_p12, %p5991_p11 }
 0x4db   : > { %p5994_p0 = pnand %p5993_p13, %p5987_p8 }
 0x4dd   : > { %5997 = shalt.err (!%p5994_p0)
}
 0x4de   : > { %5928 = dma.vmem_to_hbm [thread:$0]  (%p6116_p5), %s8794_s9, 128, %s8792_s16, %s4312_s18  }
 0x4df PF: > { %p5934_p1 = scmp.ge.s32.totalorder %s6032_s27, 2  ;;  %s4337_s14 = sand.u32 1, %s6020_s24  }
 0x4e0   : > { %s4338_s15 = scalar_lea.sflag [#allocation4], %s4337_s14 }
 0x4e1   : > { %p5931_p2 = pnand %p5934_p1, %p6120_p6 }
 0x4e3   : > { %6015 = dma.done.wait (!%p5931_p2), %s4338_s15, 128  }
 0x4e4   : > { %6017 = vsyncadd (!%p5931_p2), %s4338_s15, 4294967168  ;;  %p17_p3 = scmp.ge.s32.totalorder %s6103_s30, 4   ;;  %s8863_s24 = smov %s6024_s25 }
 0x4e5   : > { %s8864_s25 = smov %s6028_s26  ;;  %s8865_s26 = smov %s6114_s10 }
 0x4e6   : > { %s8866_s27 = smov %s6103_s30  ;;  %19 = sbr.rel (!%p17_p3) target bundleno = 3 (0x3), region = 87 }
 0x4ed   :  { %4343 = vsyncpa [#allocation4], 1 }
 0x4ee   :  { %4345 = vsyncpa [#allocation4 + $0x1], 1 }

</bundles_post_ra>
